<compile_context>
chip_gen: v7x
topology: tpu7x:2x2x1
jax: 0.10.0
libtpu: 0.0.40
codegen_flags: <defaults>
</compile_context>

<pallas_src>
import jax
import jax.numpy as jnp
from jax.experimental import pallas as pl
from jax.experimental.pallas import tpu as pltpu

MAPPING_LAYERS = 8
STYLE_DIM = 512


def _mapping_kernel(x_ref, w_ref, b_ref, o_ref):
    """All 8 layers in a single invocation.

    x_ref: (B, D)     f32 input latents
    w_ref: (L, D, D)  bf16 weights, layout (in, out) -> compute act @ W
    b_ref: (L, 1, D)  f32 biases
    o_ref: (B, D)     f32 output
    """
    h = x_ref[...].astype(jnp.float32)
    # MAPPING_LAYERS is a static Python constant -> fully unrolled at trace time.
    for layer in range(MAPPING_LAYERS):
        z = jnp.dot(
            h.astype(jnp.bfloat16),          # bf16 operands, f32 accumulate
            w_ref[layer],                    # (D, D) bf16, static index
            preferred_element_type=jnp.float32,
        )
        z = z + b_ref[layer]                 # (1, D) broadcasts over batch
        h = jnp.maximum(z, 0.2 * z)          # LeakyReLU(0.2)
    o_ref[...] = h.astype(o_ref.dtype)


def mapping_network(x, weights, biases):
    """x: (B, D) f32; weights: (L, D, D) with layout (in, out); biases: (L, D)."""
    B, D = x.shape
    L = weights.shape[0]
    w_bf16 = weights.astype(jnp.bfloat16)                  # 4 MiB resident in VMEM
    b_f32 = biases.astype(jnp.float32).reshape(L, 1, D)    # tiny, keep f32
    return pl.pallas_call(
        _mapping_kernel,
        out_shape=jax.ShapeDtypeStruct((B, D), x.dtype),
        grid_spec=pltpu.PrefetchScalarGridSpec(
            num_scalar_prefetch=0,
            grid=(1,),
            in_specs=[
                pl.BlockSpec((B, D), lambda i: (0, 0)),        # latents
                pl.BlockSpec((L, D, D), lambda i: (0, 0, 0)),  # all weights, resident
                pl.BlockSpec((L, 1, D), lambda i: (0, 0, 0)),  # all biases, resident
            ],
            out_specs=pl.BlockSpec((B, D), lambda i: (0, 0)),
        ),
        compiler_params=pltpu.CompilerParams(
            dimension_semantics=("arbitrary",),
        ),
    )(x, w_bf16, b_f32)


def _reference(x, weights, biases, *, cast_bf16):
    """Pure-JAX forward. cast_bf16=True mimics the kernel's quantization."""
    h = x.astype(jnp.float32)
    for l in range(weights.shape[0]):
        if cast_bf16:
            z = jnp.dot(
                h.astype(jnp.bfloat16),
                weights[l].astype(jnp.bfloat16),
                preferred_element_type=jnp.float32,
            ) + biases[l]
        else:
            z = h @ weights[l] + biases[l]
        h = jnp.maximum(z, 0.2 * z)
    return h


if __name__ == "__main__":
    key = jax.random.PRNGKey(0)
    kx, kw, kb = jax.random.split(key, 3)

    B, D, L = 8, STYLE_DIM, MAPPING_LAYERS

    # Deterministic synthetic parameters (scaled like nn.Linear's uniform init).
    x = jax.random.normal(kx, (B, D), dtype=jnp.float32)
    bound = 1.0 / (D ** 0.5)
    weights = jax.random.uniform(kw, (L, D, D), minval=-bound, maxval=bound,
                                 dtype=jnp.float32)
    biases = jax.random.uniform(kb, (L, D), minval=-bound, maxval=bound,
                                dtype=jnp.float32)

    out = jax.block_until_ready(mapping_network(x, weights, biases))
    assert out.shape == (B, D)

    # Quantization-matched reference (same bf16 weights/acts, f32 accumulate).
    ref_bf16 = _reference(x, weights, biases, cast_bf16=True)
    assert jnp.allclose(out, ref_bf16, atol=5e-3, rtol=5e-3), "mismatch vs bf16 reference"

    # Sanity vs the pure-f32 PyTorch-equivalent forward (bf16 weights cost ~1e-3 abs).
    ref_f32 = _reference(x, weights, biases, cast_bf16=False)
    assert float(jnp.max(jnp.abs(out - ref_f32))) < 5e-2, "too far from f32 reference"

    print("KERNEL_OK")
</pallas_src>

<mosaic_0001>
module attributes {stable_mosaic.version = 11 : i64} {
  func.func @_mapping_kernel(%arg0: i32, %arg1: memref<8x512xf32, #tpu.memory_space<vmem>>, %arg2: memref<8x512x512xbf16, #tpu.memory_space<vmem>>, %arg3: memref<8x1x512xf32, #tpu.memory_space<vmem>>, %arg4: memref<8x512xf32, #tpu.memory_space<vmem>>) attributes {dimension_semantics = [#tpu.dimension_semantics<arbitrary>], iteration_bounds = array<i64: 1>, scalar_prefetch = 0 : i64, scratch_operands = 0 : i64, tpu.core_type = #tpu.core_type<tc>, window_params = [{pipeline_mode = #tpu.pipeline_mode<synchronous>, transform_indices = @transform_0, window_bounds = array<i64: 8, 512>}, {pipeline_mode = #tpu.pipeline_mode<synchronous>, transform_indices = @transform_1, window_bounds = array<i64: 8, 512, 512>}, {pipeline_mode = #tpu.pipeline_mode<synchronous>, transform_indices = @transform_2, window_bounds = array<i64: 8, 1, 512>}, {pipeline_mode = #tpu.pipeline_mode<synchronous>, transform_indices = @transform_3, window_bounds = array<i64: 8, 512>}]} {
    %c0 = arith.constant 0 : index
    %c0_0 = arith.constant 0 : index
    %0 = vector.load %arg1[%c0, %c0_0] : memref<8x512xf32, #tpu.memory_space<vmem>>, vector<8x512xf32>
    %1 = arith.truncf %0 : vector<8x512xf32> to vector<8x512xbf16>
    %c0_1 = arith.constant 0 : index
    %c0_2 = arith.constant 0 : index
    %c0_3 = arith.constant 0 : index
    %2 = vector.load %arg2[%c0_1, %c0_2, %c0_3] : memref<8x512x512xbf16, #tpu.memory_space<vmem>>, vector<1x512x512xbf16>
    %3 = vector.shape_cast %2 : vector<1x512x512xbf16> to vector<512x512xbf16>
    %cst = arith.constant dense<0.000000e+00> : vector<8x512xf32>
    %4 = tpu.matmul %1, %3, %cst {dimension_numbers = #tpu.dot_dimension_numbers<[1], [0], [0], [1], [0, 0, 1, 1], [], []>} : vector<8x512xbf16>, vector<512x512xbf16>, vector<8x512xf32> -> vector<8x512xf32>
    %c0_4 = arith.constant 0 : index
    %c0_5 = arith.constant 0 : index
    %c0_6 = arith.constant 0 : index
    %5 = vector.load %arg3[%c0_4, %c0_5, %c0_6] : memref<8x1x512xf32, #tpu.memory_space<vmem>>, vector<1x1x512xf32>
    %6 = vector.shape_cast %5 : vector<1x1x512xf32> to vector<1x512xf32>
    %7 = vector.broadcast %6 : vector<1x512xf32> to vector<8x512xf32>
    %8 = arith.addf %4, %7 : vector<8x512xf32>
    %cst_7 = arith.constant 2.000000e-01 : f32
    %9 = vector.broadcast %cst_7 : f32 to vector<8x512xf32>
    %10 = arith.mulf %9, %8 : vector<8x512xf32>
    %11 = arith.maximumf %8, %10 : vector<8x512xf32>
    %12 = arith.truncf %11 : vector<8x512xf32> to vector<8x512xbf16>
    %c1 = arith.constant 1 : index
    %c0_8 = arith.constant 0 : index
    %c0_9 = arith.constant 0 : index
    %13 = vector.load %arg2[%c1, %c0_8, %c0_9] : memref<8x512x512xbf16, #tpu.memory_space<vmem>>, vector<1x512x512xbf16>
    %14 = vector.shape_cast %13 : vector<1x512x512xbf16> to vector<512x512xbf16>
    %cst_10 = arith.constant dense<0.000000e+00> : vector<8x512xf32>
    %15 = tpu.matmul %12, %14, %cst_10 {dimension_numbers = #tpu.dot_dimension_numbers<[1], [0], [0], [1], [0, 0, 1, 1], [], []>} : vector<8x512xbf16>, vector<512x512xbf16>, vector<8x512xf32> -> vector<8x512xf32>
    %c1_11 = arith.constant 1 : index
    %c0_12 = arith.constant 0 : index
    %c0_13 = arith.constant 0 : index
    %16 = vector.load %arg3[%c1_11, %c0_12, %c0_13] : memref<8x1x512xf32, #tpu.memory_space<vmem>>, vector<1x1x512xf32>
    %17 = vector.shape_cast %16 : vector<1x1x512xf32> to vector<1x512xf32>
    %18 = vector.broadcast %17 : vector<1x512xf32> to vector<8x512xf32>
    %19 = arith.addf %15, %18 : vector<8x512xf32>
    %cst_14 = arith.constant 2.000000e-01 : f32
    %20 = vector.broadcast %cst_14 : f32 to vector<8x512xf32>
    %21 = arith.mulf %20, %19 : vector<8x512xf32>
    %22 = arith.maximumf %19, %21 : vector<8x512xf32>
    %23 = arith.truncf %22 : vector<8x512xf32> to vector<8x512xbf16>
    %c2 = arith.constant 2 : index
    %c0_15 = arith.constant 0 : index
    %c0_16 = arith.constant 0 : index
    %24 = vector.load %arg2[%c2, %c0_15, %c0_16] : memref<8x512x512xbf16, #tpu.memory_space<vmem>>, vector<1x512x512xbf16>
    %25 = vector.shape_cast %24 : vector<1x512x512xbf16> to vector<512x512xbf16>
    %cst_17 = arith.constant dense<0.000000e+00> : vector<8x512xf32>
    %26 = tpu.matmul %23, %25, %cst_17 {dimension_numbers = #tpu.dot_dimension_numbers<[1], [0], [0], [1], [0, 0, 1, 1], [], []>} : vector<8x512xbf16>, vector<512x512xbf16>, vector<8x512xf32> -> vector<8x512xf32>
    %c2_18 = arith.constant 2 : index
    %c0_19 = arith.constant 0 : index
    %c0_20 = arith.constant 0 : index
    %27 = vector.load %arg3[%c2_18, %c0_19, %c0_20] : memref<8x1x512xf32, #tpu.memory_space<vmem>>, vector<1x1x512xf32>
    %28 = vector.shape_cast %27 : vector<1x1x512xf32> to vector<1x512xf32>
    %29 = vector.broadcast %28 : vector<1x512xf32> to vector<8x512xf32>
    %30 = arith.addf %26, %29 : vector<8x512xf32>
    %cst_21 = arith.constant 2.000000e-01 : f32
    %31 = vector.broadcast %cst_21 : f32 to vector<8x512xf32>
    %32 = arith.mulf %31, %30 : vector<8x512xf32>
    %33 = arith.maximumf %30, %32 : vector<8x512xf32>
    %34 = arith.truncf %33 : vector<8x512xf32> to vector<8x512xbf16>
    %c3 = arith.constant 3 : index
    %c0_22 = arith.constant 0 : index
    %c0_23 = arith.constant 0 : index
    %35 = vector.load %arg2[%c3, %c0_22, %c0_23] : memref<8x512x512xbf16, #tpu.memory_space<vmem>>, vector<1x512x512xbf16>
    %36 = vector.shape_cast %35 : vector<1x512x512xbf16> to vector<512x512xbf16>
    %cst_24 = arith.constant dense<0.000000e+00> : vector<8x512xf32>
    %37 = tpu.matmul %34, %36, %cst_24 {dimension_numbers = #tpu.dot_dimension_numbers<[1], [0], [0], [1], [0, 0, 1, 1], [], []>} : vector<8x512xbf16>, vector<512x512xbf16>, vector<8x512xf32> -> vector<8x512xf32>
    %c3_25 = arith.constant 3 : index
    %c0_26 = arith.constant 0 : index
    %c0_27 = arith.constant 0 : index
    %38 = vector.load %arg3[%c3_25, %c0_26, %c0_27] : memref<8x1x512xf32, #tpu.memory_space<vmem>>, vector<1x1x512xf32>
    %39 = vector.shape_cast %38 : vector<1x1x512xf32> to vector<1x512xf32>
    %40 = vector.broadcast %39 : vector<1x512xf32> to vector<8x512xf32>
    %41 = arith.addf %37, %40 : vector<8x512xf32>
    %cst_28 = arith.constant 2.000000e-01 : f32
    %42 = vector.broadcast %cst_28 : f32 to vector<8x512xf32>
    %43 = arith.mulf %42, %41 : vector<8x512xf32>
    %44 = arith.maximumf %41, %43 : vector<8x512xf32>
    %45 = arith.truncf %44 : vector<8x512xf32> to vector<8x512xbf16>
    %c4 = arith.constant 4 : index
    %c0_29 = arith.constant 0 : index
    %c0_30 = arith.constant 0 : index
    %46 = vector.load %arg2[%c4, %c0_29, %c0_30] : memref<8x512x512xbf16, #tpu.memory_space<vmem>>, vector<1x512x512xbf16>
    %47 = vector.shape_cast %46 : vector<1x512x512xbf16> to vector<512x512xbf16>
    %cst_31 = arith.constant dense<0.000000e+00> : vector<8x512xf32>
    %48 = tpu.matmul %45, %47, %cst_31 {dimension_numbers = #tpu.dot_dimension_numbers<[1], [0], [0], [1], [0, 0, 1, 1], [], []>} : vector<8x512xbf16>, vector<512x512xbf16>, vector<8x512xf32> -> vector<8x512xf32>
    %c4_32 = arith.constant 4 : index
    %c0_33 = arith.constant 0 : index
    %c0_34 = arith.constant 0 : index
    %49 = vector.load %arg3[%c4_32, %c0_33, %c0_34] : memref<8x1x512xf32, #tpu.memory_space<vmem>>, vector<1x1x512xf32>
    %50 = vector.shape_cast %49 : vector<1x1x512xf32> to vector<1x512xf32>
    %51 = vector.broadcast %50 : vector<1x512xf32> to vector<8x512xf32>
    %52 = arith.addf %48, %51 : vector<8x512xf32>
    %cst_35 = arith.constant 2.000000e-01 : f32
    %53 = vector.broadcast %cst_35 : f32 to vector<8x512xf32>
    %54 = arith.mulf %53, %52 : vector<8x512xf32>
    %55 = arith.maximumf %52, %54 : vector<8x512xf32>
    %56 = arith.truncf %55 : vector<8x512xf32> to vector<8x512xbf16>
    %c5 = arith.constant 5 : index
    %c0_36 = arith.constant 0 : index
    %c0_37 = arith.constant 0 : index
    %57 = vector.load %arg2[%c5, %c0_36, %c0_37] : memref<8x512x512xbf16, #tpu.memory_space<vmem>>, vector<1x512x512xbf16>
    %58 = vector.shape_cast %57 : vector<1x512x512xbf16> to vector<512x512xbf16>
    %cst_38 = arith.constant dense<0.000000e+00> : vector<8x512xf32>
    %59 = tpu.matmul %56, %58, %cst_38 {dimension_numbers = #tpu.dot_dimension_numbers<[1], [0], [0], [1], [0, 0, 1, 1], [], []>} : vector<8x512xbf16>, vector<512x512xbf16>, vector<8x512xf32> -> vector<8x512xf32>
    %c5_39 = arith.constant 5 : index
    %c0_40 = arith.constant 0 : index
    %c0_41 = arith.constant 0 : index
    %60 = vector.load %arg3[%c5_39, %c0_40, %c0_41] : memref<8x1x512xf32, #tpu.memory_space<vmem>>, vector<1x1x512xf32>
    %61 = vector.shape_cast %60 : vector<1x1x512xf32> to vector<1x512xf32>
    %62 = vector.broadcast %61 : vector<1x512xf32> to vector<8x512xf32>
    %63 = arith.addf %59, %62 : vector<8x512xf32>
    %cst_42 = arith.constant 2.000000e-01 : f32
    %64 = vector.broadcast %cst_42 : f32 to vector<8x512xf32>
    %65 = arith.mulf %64, %63 : vector<8x512xf32>
    %66 = arith.maximumf %63, %65 : vector<8x512xf32>
    %67 = arith.truncf %66 : vector<8x512xf32> to vector<8x512xbf16>
    %c6 = arith.constant 6 : index
    %c0_43 = arith.constant 0 : index
    %c0_44 = arith.constant 0 : index
    %68 = vector.load %arg2[%c6, %c0_43, %c0_44] : memref<8x512x512xbf16, #tpu.memory_space<vmem>>, vector<1x512x512xbf16>
    %69 = vector.shape_cast %68 : vector<1x512x512xbf16> to vector<512x512xbf16>
    %cst_45 = arith.constant dense<0.000000e+00> : vector<8x512xf32>
    %70 = tpu.matmul %67, %69, %cst_45 {dimension_numbers = #tpu.dot_dimension_numbers<[1], [0], [0], [1], [0, 0, 1, 1], [], []>} : vector<8x512xbf16>, vector<512x512xbf16>, vector<8x512xf32> -> vector<8x512xf32>
    %c6_46 = arith.constant 6 : index
    %c0_47 = arith.constant 0 : index
    %c0_48 = arith.constant 0 : index
    %71 = vector.load %arg3[%c6_46, %c0_47, %c0_48] : memref<8x1x512xf32, #tpu.memory_space<vmem>>, vector<1x1x512xf32>
    %72 = vector.shape_cast %71 : vector<1x1x512xf32> to vector<1x512xf32>
    %73 = vector.broadcast %72 : vector<1x512xf32> to vector<8x512xf32>
    %74 = arith.addf %70, %73 : vector<8x512xf32>
    %cst_49 = arith.constant 2.000000e-01 : f32
    %75 = vector.broadcast %cst_49 : f32 to vector<8x512xf32>
    %76 = arith.mulf %75, %74 : vector<8x512xf32>
    %77 = arith.maximumf %74, %76 : vector<8x512xf32>
    %78 = arith.truncf %77 : vector<8x512xf32> to vector<8x512xbf16>
    %c7 = arith.constant 7 : index
    %c0_50 = arith.constant 0 : index
    %c0_51 = arith.constant 0 : index
    %79 = vector.load %arg2[%c7, %c0_50, %c0_51] : memref<8x512x512xbf16, #tpu.memory_space<vmem>>, vector<1x512x512xbf16>
    %80 = vector.shape_cast %79 : vector<1x512x512xbf16> to vector<512x512xbf16>
    %cst_52 = arith.constant dense<0.000000e+00> : vector<8x512xf32>
    %81 = tpu.matmul %78, %80, %cst_52 {dimension_numbers = #tpu.dot_dimension_numbers<[1], [0], [0], [1], [0, 0, 1, 1], [], []>} : vector<8x512xbf16>, vector<512x512xbf16>, vector<8x512xf32> -> vector<8x512xf32>
    %c7_53 = arith.constant 7 : index
    %c0_54 = arith.constant 0 : index
    %c0_55 = arith.constant 0 : index
    %82 = vector.load %arg3[%c7_53, %c0_54, %c0_55] : memref<8x1x512xf32, #tpu.memory_space<vmem>>, vector<1x1x512xf32>
    %83 = vector.shape_cast %82 : vector<1x1x512xf32> to vector<1x512xf32>
    %84 = vector.broadcast %83 : vector<1x512xf32> to vector<8x512xf32>
    %85 = arith.addf %81, %84 : vector<8x512xf32>
    %cst_56 = arith.constant 2.000000e-01 : f32
    %86 = vector.broadcast %cst_56 : f32 to vector<8x512xf32>
    %87 = arith.mulf %86, %85 : vector<8x512xf32>
    %88 = arith.maximumf %85, %87 : vector<8x512xf32>
    %c0_57 = arith.constant 0 : index
    %c0_58 = arith.constant 0 : index
    %89 = vector.load %arg4[%c0_57, %c0_58] : memref<8x512xf32, #tpu.memory_space<vmem>>, vector<8x512xf32>
    tpu.vector_store %arg4[%c0_57, %c0_58], %88 {strides = array<i32>} : memref<8x512xf32, #tpu.memory_space<vmem>>, vector<8x512xf32>,
    return
  }
  func.func @transform_0(%arg0: i32) -> (i32, i32) {
    %c0_i32 = arith.constant 0 : i32
    %c0_i32_0 = arith.constant 0 : i32
    %c0_i32_1 = arith.constant 0 : i32
    return %c0_i32, %c0_i32_0 : i32, i32
  }
  func.func @transform_1(%arg0: i32) -> (i32, i32, i32) {
    %c0_i32 = arith.constant 0 : i32
    %c0_i32_0 = arith.constant 0 : i32
    %c0_i32_1 = arith.constant 0 : i32
    %c0_i32_2 = arith.constant 0 : i32
    return %c0_i32, %c0_i32_0, %c0_i32_1 : i32, i32, i32
  }
  func.func @transform_2(%arg0: i32) -> (i32, i32, i32) {
    %c0_i32 = arith.constant 0 : i32
    %c0_i32_0 = arith.constant 0 : i32
    %c0_i32_1 = arith.constant 0 : i32
    %c0_i32_2 = arith.constant 0 : i32
    return %c0_i32, %c0_i32_0, %c0_i32_1 : i32, i32, i32
  }
  func.func @transform_3(%arg0: i32) -> (i32, i32) {
    %c0_i32 = arith.constant 0 : i32
    %c0_i32_0 = arith.constant 0 : i32
    %c0_i32_1 = arith.constant 0 : i32
    return %c0_i32, %c0_i32_0 : i32, i32
  }
}

</mosaic_0001>

<bundles_post_ra>
// kernel: tpu_custom_call.1
= control target key start
LH: loop header
LB: loop body
LE: loop exit
PB: predicated region body
PF: predicated region fallthrough
CT: control target
= control target key end

     0   :  { %8 = vsyncpa [#allocation3], 0  ;;  %s10763_s0 = inlined_call_operand.hbm [shape: f32[8,512], index: 0, kind: input, shape index: {}]   ;;  %s10764_s1 = inlined_call_operand.hbm [shape: bf16[8,512,512], index: 1, kind: input, shape index: {}]   ;;  %s10765_s2 = inlined_call_operand.hbm [shape: f32[8,1,512], index: 2, kind: input, shape index: {}]   ;;  %s10766_s3 = inlined_call_operand.hbm [shape: f32[8,512], index: 3, kind: output, shape index: {}]  }
   0x1   :  { %9 = vsyncpa [#allocation6], 0 }
   0x2   :  { %10 = vsyncpa [#allocation4], 0  ;;  %s10578_s12 = smov [#allocation5]   ;;  %s10484_s16 = scalar_lea.hbm %s10764_s1, 131072 }
   0x3   :  { %s26_s13 = sshll.u32 %s10578_s12, 4  ;;  %p10485_p0 = scmp.ne.s32.totalorder %s10764_s1, %s10484_s16  ;;  %s27_s13 = int_to_ptr.vmem [resolvable:$true] %s26_s13 }
   0x4   :  { %p10488_p1 = scmp.lt.u32.totalorder %s10484_s16, %s10764_s1 }
   0x6   :  { %p10490_p2 = pnand %p10488_p1, %p10485_p0 }
   0x8   :  { %10493 = shalt.err (!%p10490_p2)
}
   0x9   :  { %s10494_s21 = scalar_lea.vmem %s27_s13, 131072  ;;  %p10499_p4 = scmp.lt.s32.totalorder %s27_s13, %s27_s13 }
   0xa   :  { %p10495_p3 = scmp.ne.s32.totalorder %s27_s13, %s10494_s21  ;;  %p10500_p5 = scmp.lt.s32.totalorder %s10494_s21, %s10494_s21 }
   0xc   :  { %p10501_p6 = por %p10500_p5, %p10499_p4 }
   0xe   :  { %p10502_p7 = pnand %p10501_p6, %p10495_p3 }
  0x10   :  { %10505 = shalt.err (!%p10502_p7)
}
  0x11   :  { %s10579_s22 = smov 256   ;;  %s10580_s23 = smov 16  }
  0x12   :  { %32 = dma.hbm_to_vmem [thread:$0]  %s10764_s1, 131072, %s27_s13, [#allocation6], %s10579_s22, %s10579_s22, %s10580_s23  }
  0x13   :  { %s10581_s26 = smov [#allocation2]   ;;  %s10582_s28 = smov [#allocation7]  }
  0x14   :  { %s17_s27 = sshll.u32 %s10581_s26, 4  ;;  %s38_s29 = sshll.u32 %s10582_s28, 4  ;;  %s18_s27 = int_to_ptr.vmem [resolvable:$true] %s17_s27  ;;  %s39_s29 = int_to_ptr.vmem [resolvable:$true] %s38_s29 }
  0x15   :  { %s10506_s5 = scalar_lea.hbm %s10763_s0, 512 }
  0x16   :  { %p10507_p8 = scmp.ne.s32.totalorder %s10763_s0, %s10506_s5  ;;  %p10510_p9 = scmp.lt.u32.totalorder %s10506_s5, %s10763_s0 }
  0x18   :  { %p10512_p10 = pnand %p10510_p9, %p10507_p8 }
  0x1a   :  { %10515 = shalt.err (!%p10512_p10)
}
  0x1b   :  { %s10516_s1 = scalar_lea.vmem %s18_s27, 512  ;;  %p10521_p12 = scmp.lt.s32.totalorder %s18_s27, %s18_s27 }
  0x1c   :  { %p10517_p11 = scmp.ne.s32.totalorder %s18_s27, %s10516_s1  ;;  %p10522_p13 = scmp.lt.s32.totalorder %s10516_s1, %s10516_s1 }
  0x1e   :  { %p10523_p0 = por %p10522_p13, %p10521_p12 }
  0x20   :  { %p10524_p1 = pnand %p10523_p0, %p10517_p11 }
  0x22   :  { %10527 = shalt.err (!%p10524_p1)
}
  0x23   :  { %20 = dma.hbm_to_vmem [thread:$0]  %s10763_s0, 512, %s18_s27, [#allocation3]  }
  0x24   :  { %s10528_s14 = scalar_lea.hbm %s10765_s2, 512 }
  0x25   :  { %p10529_p2 = scmp.ne.s32.totalorder %s10765_s2, %s10528_s14  ;;  %p10532_p3 = scmp.lt.u32.totalorder %s10528_s14, %s10765_s2 }
  0x27   :  { %p10534_p4 = pnand %p10532_p3, %p10529_p2 }
  0x29   :  { %10537 = shalt.err (!%p10534_p4)
}
  0x2a   :  { %s10538_s19 = scalar_lea.vmem %s39_s29, 512  ;;  %p10543_p6 = scmp.lt.s32.totalorder %s39_s29, %s39_s29 }
  0x2b   :  { %p10539_p5 = scmp.ne.s32.totalorder %s39_s29, %s10538_s19  ;;  %p10544_p7 = scmp.lt.s32.totalorder %s10538_s19, %s10538_s19 }
  0x2d   :  { %p10545_p8 = por %p10544_p7, %p10543_p6 }
  0x2f   :  { %p10546_p9 = pnand %p10545_p8, %p10539_p5 }
  0x31   :  { %10549 = shalt.err (!%p10546_p9)
}
  0x32   :  { %s10583_s0 = smov 64   ;;  %s10584_s20 = smov 4  }
  0x33   :  { %44 = dma.hbm_to_vmem [thread:$0]  %s10765_s2, 512, %s39_s29, [#allocation6], %s10583_s0, %s10583_s0, %s10584_s20  }
  0x34   :  { %10572 = dma.done.wait [#allocation3], 512  }
  0x35   :  { %10573 = vsyncadd [#allocation3], 4294966784 }
  0x36   :  { %10574 = dma.done.wait [#allocation6], 131584  }
  0x37   :  { %10575 = vsyncadd [#allocation6], 4294835712  ;;  %v8948_v0 = vld [vmem:[#allocation5 + $0x4] ss:$16 sps:$4 sm:$0xff]   ;;  %v8950_v1 = vld [vmem:[#allocation5 + $0xc] ss:$16 sps:$4 sm:$0xff]  }
  0x38   :  { %852 = vmatprep.subr.bf16.mxu0 %v8948_v0  ;;  %v8952_v2 = vld [vmem:[#allocation5] ss:$16 sps:$4 sm:$0xff]   ;;  %v8953_v3 = vld [vmem:[#allocation5 + $0x8] ss:$16 sps:$4 sm:$0xff]   ;;  %934 = vmatprep.subr.bf16.mxu1 %v8950_v1  ;;  %v8954_v4 = vld [vmem:[#allocation5 + $0x24] ss:$16 sps:$4 sm:$0xff]  }
  0x39   :  { %853 = vmatpush1.bf16.msra.mxu0 %v8952_v2  ;;  %935 = vmatpush1.bf16.msra.mxu1 %v8953_v3  ;;  %v8956_v5 = vld [vmem:[#allocation5 + $0x2c] ss:$16 sps:$4 sm:$0xff]   ;;  %v8958_v6 = vld [vmem:[#allocation5 + $0x20] ss:$16 sps:$4 sm:$0xff]   ;;  %v8959_v7 = vld [vmem:[#allocation5 + $0x28] ss:$16 sps:$4 sm:$0xff]  }
  0x3a   :  { %854 = vmatprep.subr.bf16.mxu0 %v8954_v4  ;;  %936 = vmatprep.subr.bf16.mxu1 %v8956_v5  ;;  %v8960_v8 = vld [vmem:[#allocation5 + $0x44] ss:$16 sps:$4 sm:$0xff]   ;;  %v8962_v9 = vld [vmem:[#allocation5 + $0x4c] ss:$16 sps:$4 sm:$0xff]   ;;  %v8964_v10 = vld [vmem:[#allocation5 + $0x40] ss:$16 sps:$4 sm:$0xff]  }
  0x3b   :  { %v8965_v11 = vld [vmem:[#allocation5 + $0x48] ss:$16 sps:$4 sm:$0xff]   ;;  %v8966_v12 = vld [vmem:[#allocation5 + $0x64] ss:$16 sps:$4 sm:$0xff]   ;;  %v8968_v13 = vld [vmem:[#allocation5 + $0x6c] ss:$16 sps:$4 sm:$0xff]  }
  0x3c   :  { %v8970_v14 = vld [vmem:[#allocation5 + $0x60] ss:$16 sps:$4 sm:$0xff]   ;;  %v8971_v15 = vld [vmem:[#allocation5 + $0x68] ss:$16 sps:$4 sm:$0xff]   ;;  %v8972_v16 = vld [vmem:[#allocation5 + $0x84] ss:$16 sps:$4 sm:$0xff]  }
  0x3d   :  { %855 = vmatpush1.bf16.msra.mxu0 %v8958_v6  ;;  %937 = vmatpush1.bf16.msra.mxu1 %v8959_v7  ;;  %v8974_v17 = vld [vmem:[#allocation5 + $0x8c] ss:$16 sps:$4 sm:$0xff]   ;;  %v8976_v18 = vld [vmem:[#allocation5 + $0x80] ss:$16 sps:$4 sm:$0xff]   ;;  %v8977_v19 = vld [vmem:[#allocation5 + $0x88] ss:$16 sps:$4 sm:$0xff]  }
  0x3e   :  { %856 = vmatprep.subr.bf16.mxu0 %v8960_v8  ;;  %938 = vmatprep.subr.bf16.mxu1 %v8962_v9  ;;  %v8978_v20 = vld [vmem:[#allocation5 + $0xa4] ss:$16 sps:$4 sm:$0xff]   ;;  %v8980_v21 = vld [vmem:[#allocation5 + $0xac] ss:$16 sps:$4 sm:$0xff]   ;;  %v8982_v22 = vld [vmem:[#allocation5 + $0xa0] ss:$16 sps:$4 sm:$0xff]  }
  0x3f   :  { %v8983_v23 = vld [vmem:[#allocation5 + $0xa8] ss:$16 sps:$4 sm:$0xff]   ;;  %v8984_v24 = vld [vmem:[#allocation5 + $0xc4] ss:$16 sps:$4 sm:$0xff]   ;;  %v8986_v25 = vld [vmem:[#allocation5 + $0xcc] ss:$16 sps:$4 sm:$0xff]  }
  0x40   :  { %v8988_v26 = vld [vmem:[#allocation5 + $0xc0] ss:$16 sps:$4 sm:$0xff]   ;;  %v8989_v27 = vld [vmem:[#allocation5 + $0xc8] ss:$16 sps:$4 sm:$0xff]   ;;  %v8990_v28 = vld [vmem:[#allocation5 + $0xe4] ss:$16 sps:$4 sm:$0xff]  }
  0x41   :  { %857 = vmatpush1.bf16.msra.mxu0 %v8964_v10  ;;  %939 = vmatpush1.bf16.msra.mxu1 %v8965_v11  ;;  %v8992_v29 = vld [vmem:[#allocation5 + $0xec] ss:$16 sps:$4 sm:$0xff]   ;;  %v8994_v30 = vld [vmem:[#allocation5 + $0xe0] ss:$16 sps:$4 sm:$0xff]   ;;  %v8995_v31 = vld [vmem:[#allocation5 + $0xe8] ss:$16 sps:$4 sm:$0xff]  }
  0x42   :  { %858 = vmatprep.subr.bf16.mxu0 %v8966_v12  ;;  %940 = vmatprep.subr.bf16.mxu1 %v8968_v13  ;;  %v8996_v32 = vld [vmem:[#allocation5 + $0x104] ss:$16 sps:$4 sm:$0xff]   ;;  %v8998_v33 = vld [vmem:[#allocation5 + $0x10c] ss:$16 sps:$4 sm:$0xff]   ;;  %v9000_v34 = vld [vmem:[#allocation5 + $0x100] ss:$16 sps:$4 sm:$0xff]  }
  0x43   :  { %v9001_v35 = vld [vmem:[#allocation5 + $0x108] ss:$16 sps:$4 sm:$0xff]   ;;  %v9002_v36 = vld [vmem:[#allocation5 + $0x124] ss:$16 sps:$4 sm:$0xff]   ;;  %v9004_v37 = vld [vmem:[#allocation5 + $0x12c] ss:$16 sps:$4 sm:$0xff]  }
  0x44   :  { %v9006_v38 = vld [vmem:[#allocation5 + $0x120] ss:$16 sps:$4 sm:$0xff]   ;;  %v9007_v39 = vld [vmem:[#allocation5 + $0x128] ss:$16 sps:$4 sm:$0xff]   ;;  %v9008_v40 = vld [vmem:[#allocation5 + $0x144] ss:$16 sps:$4 sm:$0xff]  }
  0x45   :  { %859 = vmatpush1.bf16.msra.mxu0 %v8970_v14  ;;  %941 = vmatpush1.bf16.msra.mxu1 %v8971_v15  ;;  %v9010_v41 = vld [vmem:[#allocation5 + $0x14c] ss:$16 sps:$4 sm:$0xff]   ;;  %v9012_v42 = vld [vmem:[#allocation5 + $0x140] ss:$16 sps:$4 sm:$0xff]   ;;  %v9013_v43 = vld [vmem:[#allocation5 + $0x148] ss:$16 sps:$4 sm:$0xff]  }
  0x46   :  { %860 = vmatprep.subr.bf16.mxu0 %v8972_v16  ;;  %942 = vmatprep.subr.bf16.mxu1 %v8974_v17  ;;  %v9014_v44 = vld [vmem:[#allocation5 + $0x164] ss:$16 sps:$4 sm:$0xff]   ;;  %v9016_v45 = vld [vmem:[#allocation5 + $0x16c] ss:$16 sps:$4 sm:$0xff]   ;;  %v9018_v47 = vld [vmem:[#allocation5 + $0x160] ss:$16 sps:$4 sm:$0xff]  }
  0x47   :  { %v55_v46 = vld [vmem:[#allocation2 + $0x8] sm:$0xff]  ;;  %v9020_v50 = vld [vmem:[#allocation5 + $0x184] ss:$16 sps:$4 sm:$0xff]   ;;  %v9024_v52 = vld [vmem:[#allocation5 + $0x180] ss:$16 sps:$4 sm:$0xff]   ;;  %s10585_s2 = smov [#allocation8]  }
  0x48   :  { %v59_v48 = vpack.c.bf16 %v55_v46, %v55_v46  ;;  %v9019_v49 = vld [vmem:[#allocation5 + $0x168] ss:$16 sps:$4 sm:$0xff]   ;;  %v9022_v51 = vld [vmem:[#allocation5 + $0x18c] ss:$16 sps:$4 sm:$0xff]   ;;  %v9026_v54 = vld [vmem:[#allocation5 + $0x1a4] ss:$16 sps:$4 sm:$0xff]  }
  0x49   :  { %861 = vmatpush1.bf16.msra.mxu0 %v8976_v18  ;;  %943 = vmatpush1.bf16.msra.mxu1 %v8977_v19  ;;  %v9025_v53 = vld [vmem:[#allocation5 + $0x188] ss:$16 sps:$4 sm:$0xff]   ;;  %v9028_v55 = vld [vmem:[#allocation5 + $0x1ac] ss:$16 sps:$4 sm:$0xff]   ;;  %v9030_v56 = vld [vmem:[#allocation5 + $0x1a0] ss:$16 sps:$4 sm:$0xff]  }
  0x4a   :  { %862 = vmatprep.subr.bf16.mxu0 %v8978_v20  ;;  %944 = vmatprep.subr.bf16.mxu1 %v8980_v21  ;;  %v9031_v57 = vld [vmem:[#allocation5 + $0x1a8] ss:$16 sps:$4 sm:$0xff]   ;;  %v9032_v58 = vld [vmem:[#allocation5 + $0x1c4] ss:$16 sps:$4 sm:$0xff]   ;;  %v9034_v59 = vld [vmem:[#allocation5 + $0x1cc] ss:$16 sps:$4 sm:$0xff]  }
  0x4b   :  { %884 = vmatprep.mubr.bf16.mxu0 %v59_v48  ;;  %966 = vmatprep.mubr.bf16.mxu1 %v59_v48  ;;  %v9036_v60 = vld [vmem:[#allocation5 + $0x1c0] ss:$16 sps:$4 sm:$0xff]   ;;  %v9037_v61 = vld [vmem:[#allocation5 + $0x1c8] ss:$16 sps:$4 sm:$0xff]   ;;  %v9038_v62 = vld [vmem:[#allocation5 + $0x1e4] ss:$16 sps:$4 sm:$0xff]  }
  0x4c   :  { %v9040_v63 = vld [vmem:[#allocation5 + $0x1ec] ss:$16 sps:$4 sm:$0xff]   ;;  %v9042_v0 = vld [vmem:[#allocation5 + $0x1e0] ss:$16 sps:$4 sm:$0xff]   ;;  %v9043_v1 = vld [vmem:[#allocation5 + $0x1e8] ss:$16 sps:$4 sm:$0xff]  }
  0x4d   :  { %863 = vmatpush1.bf16.msra.mxu0 %v8982_v22  ;;  %945 = vmatpush1.bf16.msra.mxu1 %v8983_v23  ;;  %v54_v2 = vld [vmem:[#allocation2] sm:$0xff]  ;;  %v9049_v4 = vld [vmem:[#allocation5 + $0x20c] ss:$16 sps:$4 sm:$0xff]   ;;  %v9047_v7 = vld [vmem:[#allocation5 + $0x208] ss:$16 sps:$4 sm:$0xff]   ;;  %s7810_s23 = sshll.u32 %s10585_s2, 4  ;;  %s7811_s23 = int_to_ptr.vmem [resolvable:$true] %s7810_s23 }
  0x4e   :  { %864 = vmatprep.subr.bf16.mxu0 %v8984_v24  ;;  %946 = vmatprep.subr.bf16.mxu1 %v8986_v25  ;;  %v9046_v3 = vld [vmem:[#allocation5 + $0x204] ss:$16 sps:$4 sm:$0xff]   ;;  %v58_v5 = vpack.c.bf16 %v54_v2, %v54_v2  ;;  %v9044_v6 = vld [vmem:[#allocation5 + $0x200] ss:$16 sps:$4 sm:$0xff]   ;;  %v9055_v9 = vld [vmem:[#allocation5 + $0x22c] ss:$16 sps:$4 sm:$0xff]   ;;  %p10555_p11 = scmp.lt.s32.totalorder %s7811_s23, %s7811_s23 }
  0x4f   :  { %v9052_v8 = vld [vmem:[#allocation5 + $0x224] ss:$16 sps:$4 sm:$0xff]   ;;  %v9050_v10 = vld [vmem:[#allocation5 + $0x220] ss:$16 sps:$4 sm:$0xff]   ;;  %v9053_v11 = vld [vmem:[#allocation5 + $0x228] ss:$16 sps:$4 sm:$0xff]  }
  0x50   :  { %v9058_v12 = vld [vmem:[#allocation5 + $0x244] ss:$16 sps:$4 sm:$0xff]   ;;  %v9061_v13 = vld [vmem:[#allocation5 + $0x24c] ss:$16 sps:$4 sm:$0xff]   ;;  %v9056_v14 = vld [vmem:[#allocation5 + $0x240] ss:$16 sps:$4 sm:$0xff]  }
  0x51   :  { %865 = vmatpush1.bf16.msra.mxu0 %v8988_v26  ;;  %947 = vmatpush1.bf16.msra.mxu1 %v8989_v27  ;;  %v9059_v15 = vld [vmem:[#allocation5 + $0x248] ss:$16 sps:$4 sm:$0xff]   ;;  %v9064_v16 = vld [vmem:[#allocation5 + $0x264] ss:$16 sps:$4 sm:$0xff]   ;;  %v9067_v17 = vld [vmem:[#allocation5 + $0x26c] ss:$16 sps:$4 sm:$0xff]  }
  0x52   :  { %866 = vmatprep.subr.bf16.mxu0 %v8990_v28  ;;  %948 = vmatprep.subr.bf16.mxu1 %v8992_v29  ;;  %v9062_v18 = vld [vmem:[#allocation5 + $0x260] ss:$16 sps:$4 sm:$0xff]   ;;  %v9065_v19 = vld [vmem:[#allocation5 + $0x268] ss:$16 sps:$4 sm:$0xff]   ;;  %v9070_v20 = vld [vmem:[#allocation5 + $0x284] ss:$16 sps:$4 sm:$0xff]  }
  0x53   :  { %v9073_v21 = vld [vmem:[#allocation5 + $0x28c] ss:$16 sps:$4 sm:$0xff]   ;;  %v9068_v22 = vld [vmem:[#allocation5 + $0x280] ss:$16 sps:$4 sm:$0xff]   ;;  %v9071_v23 = vld [vmem:[#allocation5 + $0x288] ss:$16 sps:$4 sm:$0xff]  }
  0x54   :  { %v9076_v24 = vld [vmem:[#allocation5 + $0x2a4] ss:$16 sps:$4 sm:$0xff]   ;;  %v9079_v25 = vld [vmem:[#allocation5 + $0x2ac] ss:$16 sps:$4 sm:$0xff]   ;;  %v9074_v26 = vld [vmem:[#allocation5 + $0x2a0] ss:$16 sps:$4 sm:$0xff]  }
  0x55   :  { %867 = vmatpush1.bf16.msra.mxu0 %v8994_v30  ;;  %949 = vmatpush1.bf16.msra.mxu1 %v8995_v31  ;;  %v9077_v27 = vld [vmem:[#allocation5 + $0x2a8] ss:$16 sps:$4 sm:$0xff]   ;;  %v9082_v28 = vld [vmem:[#allocation5 + $0x2c4] ss:$16 sps:$4 sm:$0xff]   ;;  %v9085_v29 = vld [vmem:[#allocation5 + $0x2cc] ss:$16 sps:$4 sm:$0xff]  }
  0x56   :  { %868 = vmatprep.subr.bf16.mxu0 %v8996_v32  ;;  %950 = vmatprep.subr.bf16.mxu1 %v8998_v33  ;;  %v57_v30 = vld [vmem:[#allocation2 + $0x18] sm:$0xff]  ;;  %v9080_v31 = vld [vmem:[#allocation5 + $0x2c0] ss:$16 sps:$4 sm:$0xff]   ;;  %v9106_v46 = vld [vmem:[#allocation5 + $0x344] ss:$16 sps:$4 sm:$0xff]   ;;  %s10550_s24 = scalar_lea.vmem %s7811_s23, 512 }
  0x57   :  { %v9083_v32 = vld [vmem:[#allocation5 + $0x2c8] ss:$16 sps:$4 sm:$0xff]   ;;  %v61_v33 = vpack.c.bf16 %v57_v30, %v57_v30  ;;  %v9104_v48 = vld [vmem:[#allocation5 + $0x340] ss:$16 sps:$4 sm:$0xff]   ;;  %v9136_v2 = vld [vmem:[#allocation5 + $0x3e4] ss:$16 sps:$4 sm:$0xff]   ;;  %p10551_p10 = scmp.ne.s32.totalorder %s7811_s23, %s10550_s24  ;;  %p10556_p12 = scmp.lt.s32.totalorder %s10550_s24, %s10550_s24 }
  0x58   :  { %v9170_v30 = vld [vmem:[#allocation5 + $0x4a0] ss:$16 sps:$4 sm:$0xff]  }
  0x59   :  { %869 = vmatpush1.bf16.msra.mxu0 %v9000_v34  ;;  %951 = vmatpush1.bf16.msra.mxu1 %v9001_v35  ;;  %v9088_v34 = vld [vmem:[#allocation5 + $0x2e4] ss:$16 sps:$4 sm:$0xff]   ;;  %v9091_v35 = vld [vmem:[#allocation5 + $0x2ec] ss:$16 sps:$4 sm:$0xff]   ;;  %p10557_p13 = por %p10556_p12, %p10555_p11 }
  0x5a   :  { %870 = vmatprep.subr.bf16.mxu0 %v9002_v36  ;;  %952 = vmatprep.subr.bf16.mxu1 %v9004_v37  ;;  %v9086_v36 = vld [vmem:[#allocation5 + $0x2e0] ss:$16 sps:$4 sm:$0xff]   ;;  %v9089_v37 = vld [vmem:[#allocation5 + $0x2e8] ss:$16 sps:$4 sm:$0xff]  }
  0x5b   :  { %p10558_p0 = pnand %p10557_p13, %p10551_p10 }
  0x5d   :  { %871 = vmatpush1.bf16.msra.mxu0 %v9006_v38  ;;  %953 = vmatpush1.bf16.msra.mxu1 %v9007_v39  ;;  %v9094_v38 = vld [vmem:[#allocation5 + $0x304] ss:$16 sps:$4 sm:$0xff]   ;;  %v9097_v39 = vld [vmem:[#allocation5 + $0x30c] ss:$16 sps:$4 sm:$0xff]  }
  0x5e   :  { %872 = vmatprep.subr.bf16.mxu0 %v9008_v40  ;;  %954 = vmatprep.subr.bf16.mxu1 %v9010_v41  ;;  %v9092_v40 = vld [vmem:[#allocation5 + $0x300] ss:$16 sps:$4 sm:$0xff]   ;;  %v9095_v41 = vld [vmem:[#allocation5 + $0x308] ss:$16 sps:$4 sm:$0xff]  }
  0x61   :  { %873 = vmatpush1.bf16.msra.mxu0 %v9012_v42  ;;  %955 = vmatpush1.bf16.msra.mxu1 %v9013_v43  ;;  %v9100_v42 = vld [vmem:[#allocation5 + $0x324] ss:$16 sps:$4 sm:$0xff]   ;;  %v9103_v43 = vld [vmem:[#allocation5 + $0x32c] ss:$16 sps:$4 sm:$0xff]  }
  0x62   :  { %874 = vmatprep.subr.bf16.mxu0 %v9014_v44  ;;  %956 = vmatprep.subr.bf16.mxu1 %v9016_v45  ;;  %v9098_v44 = vld [vmem:[#allocation5 + $0x320] ss:$16 sps:$4 sm:$0xff]   ;;  %v9101_v45 = vld [vmem:[#allocation5 + $0x328] ss:$16 sps:$4 sm:$0xff]  }
  0x65   :  { %875 = vmatpush1.bf16.msra.mxu0 %v9018_v47  ;;  %957 = vmatpush1.bf16.msra.mxu1 %v9019_v49  ;;  %v9109_v47 = vld [vmem:[#allocation5 + $0x34c] ss:$16 sps:$4 sm:$0xff]   ;;  %v9107_v49 = vld [vmem:[#allocation5 + $0x348] ss:$16 sps:$4 sm:$0xff]  }
  0x66   :  { %876 = vmatprep.subr.bf16.mxu0 %v9020_v50  ;;  %958 = vmatprep.subr.bf16.mxu1 %v9022_v51  ;;  %v9112_v50 = vld [vmem:[#allocation5 + $0x364] ss:$16 sps:$4 sm:$0xff]   ;;  %v9115_v51 = vld [vmem:[#allocation5 + $0x36c] ss:$16 sps:$4 sm:$0xff]  }
  0x69   :  { %877 = vmatpush1.bf16.msra.mxu0 %v9024_v52  ;;  %959 = vmatpush1.bf16.msra.mxu1 %v9025_v53  ;;  %v9110_v52 = vld [vmem:[#allocation5 + $0x360] ss:$16 sps:$4 sm:$0xff]   ;;  %v9113_v53 = vld [vmem:[#allocation5 + $0x368] ss:$16 sps:$4 sm:$0xff]  }
  0x6a   :  { %878 = vmatprep.subr.bf16.mxu0 %v9026_v54  ;;  %960 = vmatprep.subr.bf16.mxu1 %v9028_v55  ;;  %v9118_v54 = vld [vmem:[#allocation5 + $0x384] ss:$16 sps:$4 sm:$0xff]   ;;  %v9121_v55 = vld [vmem:[#allocation5 + $0x38c] ss:$16 sps:$4 sm:$0xff]  }
  0x6d   :  { %879 = vmatpush1.bf16.msra.mxu0 %v9030_v56  ;;  %961 = vmatpush1.bf16.msra.mxu1 %v9031_v57  ;;  %v9116_v56 = vld [vmem:[#allocation5 + $0x380] ss:$16 sps:$4 sm:$0xff]   ;;  %v9119_v57 = vld [vmem:[#allocation5 + $0x388] ss:$16 sps:$4 sm:$0xff]  }
  0x6e   :  { %880 = vmatprep.subr.bf16.mxu0 %v9032_v58  ;;  %962 = vmatprep.subr.bf16.mxu1 %v9034_v59  ;;  %v9124_v58 = vld [vmem:[#allocation5 + $0x3a4] ss:$16 sps:$4 sm:$0xff]   ;;  %v9127_v59 = vld [vmem:[#allocation5 + $0x3ac] ss:$16 sps:$4 sm:$0xff]  }
  0x71   :  { %881 = vmatpush1.bf16.msra.mxu0 %v9036_v60  ;;  %963 = vmatpush1.bf16.msra.mxu1 %v9037_v61  ;;  %v9122_v60 = vld [vmem:[#allocation5 + $0x3a0] ss:$16 sps:$4 sm:$0xff]   ;;  %v9125_v61 = vld [vmem:[#allocation5 + $0x3a8] ss:$16 sps:$4 sm:$0xff]  }
  0x72   :  { %882 = vmatprep.subr.bf16.mxu0 %v9038_v62  ;;  %964 = vmatprep.subr.bf16.mxu1 %v9040_v63  ;;  %v9130_v62 = vld [vmem:[#allocation5 + $0x3c4] ss:$16 sps:$4 sm:$0xff]   ;;  %v9133_v63 = vld [vmem:[#allocation5 + $0x3cc] ss:$16 sps:$4 sm:$0xff]  }
  0x75   :  { %883 = vmatpush1.bf16.msra.mxu0 %v9042_v0  ;;  %965 = vmatpush1.bf16.msra.mxu1 %v9043_v1  ;;  %v9128_v0 = vld [vmem:[#allocation5 + $0x3c0] ss:$16 sps:$4 sm:$0xff]   ;;  %v9131_v1 = vld [vmem:[#allocation5 + $0x3c8] ss:$16 sps:$4 sm:$0xff]  }
  0x76   :  { %893 = vmatprep.subr.bf16.mxu0 %v9046_v3  ;;  %975 = vmatprep.subr.bf16.mxu1 %v9049_v4  ;;  %v9139_v3 = vld [vmem:[#allocation5 + $0x3ec] ss:$16 sps:$4 sm:$0xff]   ;;  %v9134_v4 = vld [vmem:[#allocation5 + $0x3e0] ss:$16 sps:$4 sm:$0xff]  }
  0x78   :  { %885 = vmatmul.mubr.bf16.vlgmr.msra.gmra.mrb[0].mxu0 %v58_v5  ;;  %967 = vmatmul.mubr.bf16.vlgmr.msra.gmra.mrb[0].mxu1 %v58_v5  ;;  %v9137_v5 = vld [vmem:[#allocation5 + $0x3e8] ss:$16 sps:$4 sm:$0xff]  }
  0x79   :  { %894 = vmatpush1.bf16.msra.mxu0 %v9044_v6  ;;  %976 = vmatpush1.bf16.msra.mxu1 %v9047_v7  ;;  %v56_v6 = vld [vmem:[#allocation2 + $0x10] sm:$0xff] }
  0x7a   :  { %895 = vmatprep.subr.bf16.mxu0 %v9052_v8  ;;  %977 = vmatprep.subr.bf16.mxu1 %v9055_v9  ;;  %v9142_v7 = vld [vmem:[#allocation5 + $0x404] ss:$16 sps:$4 sm:$0xff]   ;;  %v9145_v8 = vld [vmem:[#allocation5 + $0x40c] ss:$16 sps:$4 sm:$0xff]   ;;  %v9140_v9 = vld [vmem:[#allocation5 + $0x400] ss:$16 sps:$4 sm:$0xff]  }
  0x7b   :  { %925 = vmatprep.mubr.bf16.mxu0 %v61_v33  ;;  %1007 = vmatprep.mubr.bf16.mxu1 %v61_v33  ;;  %v9181_v33 = vld [vmem:[#allocation5 + $0x4cc] ss:$16 sps:$4 sm:$0xff]  }
  0x7d   :  { %896 = vmatpush1.bf16.msra.mxu0 %v9050_v10  ;;  %978 = vmatpush1.bf16.msra.mxu1 %v9053_v11  ;;  %v9143_v10 = vld [vmem:[#allocation5 + $0x408] ss:$16 sps:$4 sm:$0xff]   ;;  %v60_v11 = vpack.c.bf16 %v56_v6, %v56_v6  ;;  %v9230_v6 = vld [vmem:[#allocation5 + $0x5e0] ss:$16 sps:$4 sm:$0xff]  }
  0x7e   :  { %897 = vmatprep.subr.bf16.mxu0 %v9058_v12  ;;  %979 = vmatprep.subr.bf16.mxu1 %v9061_v13  ;;  %v9148_v12 = vld [vmem:[#allocation5 + $0x424] ss:$16 sps:$4 sm:$0xff]   ;;  %v9151_v13 = vld [vmem:[#allocation5 + $0x42c] ss:$16 sps:$4 sm:$0xff]  }
  0x81   :  { %898 = vmatpush1.bf16.msra.mxu0 %v9056_v14  ;;  %980 = vmatpush1.bf16.msra.mxu1 %v9059_v15  ;;  %v9146_v14 = vld [vmem:[#allocation5 + $0x420] ss:$16 sps:$4 sm:$0xff]   ;;  %v9149_v15 = vld [vmem:[#allocation5 + $0x428] ss:$16 sps:$4 sm:$0xff]  }
  0x82   :  { %899 = vmatprep.subr.bf16.mxu0 %v9064_v16  ;;  %981 = vmatprep.subr.bf16.mxu1 %v9067_v17  ;;  %v9154_v16 = vld [vmem:[#allocation5 + $0x444] ss:$16 sps:$4 sm:$0xff]   ;;  %v9157_v17 = vld [vmem:[#allocation5 + $0x44c] ss:$16 sps:$4 sm:$0xff]  }
  0x85   :  { %900 = vmatpush1.bf16.msra.mxu0 %v9062_v18  ;;  %982 = vmatpush1.bf16.msra.mxu1 %v9065_v19  ;;  %v9152_v18 = vld [vmem:[#allocation5 + $0x440] ss:$16 sps:$4 sm:$0xff]   ;;  %v9155_v19 = vld [vmem:[#allocation5 + $0x448] ss:$16 sps:$4 sm:$0xff]  }
  0x86   :  { %901 = vmatprep.subr.bf16.mxu0 %v9070_v20  ;;  %983 = vmatprep.subr.bf16.mxu1 %v9073_v21  ;;  %v9160_v20 = vld [vmem:[#allocation5 + $0x464] ss:$16 sps:$4 sm:$0xff]   ;;  %v9163_v21 = vld [vmem:[#allocation5 + $0x46c] ss:$16 sps:$4 sm:$0xff]  }
  0x89   :  { %902 = vmatpush1.bf16.msra.mxu0 %v9068_v22  ;;  %984 = vmatpush1.bf16.msra.mxu1 %v9071_v23  ;;  %v9158_v22 = vld [vmem:[#allocation5 + $0x460] ss:$16 sps:$4 sm:$0xff]   ;;  %v9161_v23 = vld [vmem:[#allocation5 + $0x468] ss:$16 sps:$4 sm:$0xff]  }
  0x8a   :  { %903 = vmatprep.subr.bf16.mxu0 %v9076_v24  ;;  %985 = vmatprep.subr.bf16.mxu1 %v9079_v25  ;;  %v9166_v24 = vld [vmem:[#allocation5 + $0x484] ss:$16 sps:$4 sm:$0xff]   ;;  %v9169_v25 = vld [vmem:[#allocation5 + $0x48c] ss:$16 sps:$4 sm:$0xff]  }
  0x8d   :  { %904 = vmatpush1.bf16.msra.mxu0 %v9074_v26  ;;  %986 = vmatpush1.bf16.msra.mxu1 %v9077_v27  ;;  %v9164_v26 = vld [vmem:[#allocation5 + $0x480] ss:$16 sps:$4 sm:$0xff]   ;;  %v9167_v27 = vld [vmem:[#allocation5 + $0x488] ss:$16 sps:$4 sm:$0xff]  }
  0x8e   :  { %905 = vmatprep.subr.bf16.mxu0 %v9082_v28  ;;  %987 = vmatprep.subr.bf16.mxu1 %v9085_v29  ;;  %v9172_v28 = vld [vmem:[#allocation5 + $0x4a4] ss:$16 sps:$4 sm:$0xff]   ;;  %v9175_v29 = vld [vmem:[#allocation5 + $0x4ac] ss:$16 sps:$4 sm:$0xff]  }
  0x91   :  { %906 = vmatpush1.bf16.msra.mxu0 %v9080_v31  ;;  %988 = vmatpush1.bf16.msra.mxu1 %v9083_v32  ;;  %v9173_v31 = vld [vmem:[#allocation5 + $0x4a8] ss:$16 sps:$4 sm:$0xff]   ;;  %v9178_v32 = vld [vmem:[#allocation5 + $0x4c4] ss:$16 sps:$4 sm:$0xff]  }
  0x92   :  { %907 = vmatprep.subr.bf16.mxu0 %v9088_v34  ;;  %989 = vmatprep.subr.bf16.mxu1 %v9091_v35  ;;  %v9176_v34 = vld [vmem:[#allocation5 + $0x4c0] ss:$16 sps:$4 sm:$0xff]   ;;  %v9179_v35 = vld [vmem:[#allocation5 + $0x4c8] ss:$16 sps:$4 sm:$0xff]  }
  0x95   :  { %908 = vmatpush1.bf16.msra.mxu0 %v9086_v36  ;;  %990 = vmatpush1.bf16.msra.mxu1 %v9089_v37  ;;  %v9184_v36 = vld [vmem:[#allocation5 + $0x4e4] ss:$16 sps:$4 sm:$0xff]   ;;  %v9187_v37 = vld [vmem:[#allocation5 + $0x4ec] ss:$16 sps:$4 sm:$0xff]  }
  0x96   :  { %909 = vmatprep.subr.bf16.mxu0 %v9094_v38  ;;  %991 = vmatprep.subr.bf16.mxu1 %v9097_v39  ;;  %v9182_v38 = vld [vmem:[#allocation5 + $0x4e0] ss:$16 sps:$4 sm:$0xff]   ;;  %v9185_v39 = vld [vmem:[#allocation5 + $0x4e8] ss:$16 sps:$4 sm:$0xff]  }
  0x99   :  { %910 = vmatpush1.bf16.msra.mxu0 %v9092_v40  ;;  %992 = vmatpush1.bf16.msra.mxu1 %v9095_v41  ;;  %v9190_v40 = vld [vmem:[#allocation5 + $0x504] ss:$16 sps:$4 sm:$0xff]   ;;  %v9193_v41 = vld [vmem:[#allocation5 + $0x50c] ss:$16 sps:$4 sm:$0xff]  }
  0x9a   :  { %911 = vmatprep.subr.bf16.mxu0 %v9100_v42  ;;  %993 = vmatprep.subr.bf16.mxu1 %v9103_v43  ;;  %v9188_v42 = vld [vmem:[#allocation5 + $0x500] ss:$16 sps:$4 sm:$0xff]   ;;  %v9191_v43 = vld [vmem:[#allocation5 + $0x508] ss:$16 sps:$4 sm:$0xff]  }
  0x9d   :  { %912 = vmatpush1.bf16.msra.mxu0 %v9098_v44  ;;  %994 = vmatpush1.bf16.msra.mxu1 %v9101_v45  ;;  %v9196_v44 = vld [vmem:[#allocation5 + $0x524] ss:$16 sps:$4 sm:$0xff]   ;;  %v9199_v45 = vld [vmem:[#allocation5 + $0x52c] ss:$16 sps:$4 sm:$0xff]  }
  0x9e   :  { %913 = vmatprep.subr.bf16.mxu0 %v9106_v46  ;;  %995 = vmatprep.subr.bf16.mxu1 %v9109_v47  ;;  %v9194_v46 = vld [vmem:[#allocation5 + $0x520] ss:$16 sps:$4 sm:$0xff]   ;;  %v9197_v47 = vld [vmem:[#allocation5 + $0x528] ss:$16 sps:$4 sm:$0xff]  }
  0xa1   :  { %914 = vmatpush1.bf16.msra.mxu0 %v9104_v48  ;;  %996 = vmatpush1.bf16.msra.mxu1 %v9107_v49  ;;  %v9202_v48 = vld [vmem:[#allocation5 + $0x544] ss:$16 sps:$4 sm:$0xff]   ;;  %v9205_v49 = vld [vmem:[#allocation5 + $0x54c] ss:$16 sps:$4 sm:$0xff]  }
  0xa2   :  { %915 = vmatprep.subr.bf16.mxu0 %v9112_v50  ;;  %997 = vmatprep.subr.bf16.mxu1 %v9115_v51  ;;  %v9200_v50 = vld [vmem:[#allocation5 + $0x540] ss:$16 sps:$4 sm:$0xff]   ;;  %v9203_v51 = vld [vmem:[#allocation5 + $0x548] ss:$16 sps:$4 sm:$0xff]  }
  0xa5   :  { %916 = vmatpush1.bf16.msra.mxu0 %v9110_v52  ;;  %998 = vmatpush1.bf16.msra.mxu1 %v9113_v53  ;;  %v9208_v52 = vld [vmem:[#allocation5 + $0x564] ss:$16 sps:$4 sm:$0xff]   ;;  %v9211_v53 = vld [vmem:[#allocation5 + $0x56c] ss:$16 sps:$4 sm:$0xff]  }
  0xa6   :  { %917 = vmatprep.subr.bf16.mxu0 %v9118_v54  ;;  %999 = vmatprep.subr.bf16.mxu1 %v9121_v55  ;;  %v9206_v54 = vld [vmem:[#allocation5 + $0x560] ss:$16 sps:$4 sm:$0xff]   ;;  %v9209_v55 = vld [vmem:[#allocation5 + $0x568] ss:$16 sps:$4 sm:$0xff]  }
  0xa9   :  { %918 = vmatpush1.bf16.msra.mxu0 %v9116_v56  ;;  %1000 = vmatpush1.bf16.msra.mxu1 %v9119_v57  ;;  %v9214_v56 = vld [vmem:[#allocation5 + $0x584] ss:$16 sps:$4 sm:$0xff]   ;;  %v9217_v57 = vld [vmem:[#allocation5 + $0x58c] ss:$16 sps:$4 sm:$0xff]  }
  0xaa   :  { %919 = vmatprep.subr.bf16.mxu0 %v9124_v58  ;;  %1001 = vmatprep.subr.bf16.mxu1 %v9127_v59  ;;  %v9212_v58 = vld [vmem:[#allocation5 + $0x580] ss:$16 sps:$4 sm:$0xff]   ;;  %v9215_v59 = vld [vmem:[#allocation5 + $0x588] ss:$16 sps:$4 sm:$0xff]  }
  0xad   :  { %920 = vmatpush1.bf16.msra.mxu0 %v9122_v60  ;;  %1002 = vmatpush1.bf16.msra.mxu1 %v9125_v61  ;;  %v9220_v60 = vld [vmem:[#allocation5 + $0x5a4] ss:$16 sps:$4 sm:$0xff]   ;;  %v9223_v61 = vld [vmem:[#allocation5 + $0x5ac] ss:$16 sps:$4 sm:$0xff]  }
  0xae   :  { %921 = vmatprep.subr.bf16.mxu0 %v9130_v62  ;;  %1003 = vmatprep.subr.bf16.mxu1 %v9133_v63  ;;  %v9218_v62 = vld [vmem:[#allocation5 + $0x5a0] ss:$16 sps:$4 sm:$0xff]   ;;  %v9221_v63 = vld [vmem:[#allocation5 + $0x5a8] ss:$16 sps:$4 sm:$0xff]  }
  0xb1   :  { %922 = vmatpush1.bf16.msra.mxu0 %v9128_v0  ;;  %1004 = vmatpush1.bf16.msra.mxu1 %v9131_v1  ;;  %v9226_v0 = vld [vmem:[#allocation5 + $0x5c4] ss:$16 sps:$4 sm:$0xff]   ;;  %v9229_v1 = vld [vmem:[#allocation5 + $0x5cc] ss:$16 sps:$4 sm:$0xff]  }
  0xb2   :  { %923 = vmatprep.subr.bf16.mxu0 %v9136_v2  ;;  %1005 = vmatprep.subr.bf16.mxu1 %v9139_v3  ;;  %v9224_v2 = vld [vmem:[#allocation5 + $0x5c0] ss:$16 sps:$4 sm:$0xff]   ;;  %v9227_v3 = vld [vmem:[#allocation5 + $0x5c8] ss:$16 sps:$4 sm:$0xff]  }
  0xb5   :  { %924 = vmatpush1.bf16.msra.mxu0 %v9134_v4  ;;  %1006 = vmatpush1.bf16.msra.mxu1 %v9137_v5  ;;  %v9232_v4 = vld [vmem:[#allocation5 + $0x5e4] ss:$16 sps:$4 sm:$0xff]   ;;  %v9235_v5 = vld [vmem:[#allocation5 + $0x5ec] ss:$16 sps:$4 sm:$0xff]  }
  0xb6   :  { %1820 = vmatprep.subr.bf16.mxu0 %v9142_v7  ;;  %1902 = vmatprep.subr.bf16.mxu1 %v9145_v8  ;;  %v9233_v7 = vld [vmem:[#allocation5 + $0x5e8] ss:$16 sps:$4 sm:$0xff]   ;;  %v9238_v8 = vld [vmem:[#allocation5 + $0x604] ss:$16 sps:$4 sm:$0xff]  }
  0xb8   :  { %926 = vmatmul.mubr.bf16.vlgmr.msra.gmra.mrb[0].mxu0 %v60_v11  ;;  %1008 = vmatmul.mubr.bf16.vlgmr.msra.gmra.mrb[0].mxu1 %v60_v11 }
  0xb9   :  { %1821 = vmatpush1.bf16.msra.mxu0 %v9140_v9  ;;  %1903 = vmatpush1.bf16.msra.mxu1 %v9143_v10  ;;  %v9241_v9 = vld [vmem:[#allocation5 + $0x60c] ss:$16 sps:$4 sm:$0xff]   ;;  %v192_v10 = vlaneseq }
  0xba   :  { %1822 = vmatprep.subr.bf16.mxu0 %v9148_v12  ;;  %1904 = vmatprep.subr.bf16.mxu1 %v9151_v13  ;;  %v10644_v12 = vld [vmem:[#allocation7] sm:$0xf] }
  0xbb   :  { %v10642_v11 = vshrl.u32 %v192_v10, 7  ;;  %v9295_v10 = vld [vmem:[#allocation5 + $0x72c] ss:$16 sps:$4 sm:$0xff]  }
  0xbd   :  { %1823 = vmatpush1.bf16.msra.mxu0 %v9146_v14  ;;  %1905 = vmatpush1.bf16.msra.mxu1 %v9149_v15  ;;  %v10647_v13 = vsub.s32 0, %v10642_v11  ;;  %v10650_v14 = vsub.s32 1, %v10642_v11  ;;  %v10653_v15 = vsub.s32 3, %v10642_v11 }
  0xbe   :  { %1824 = vmatprep.subr.bf16.mxu0 %v9154_v16  ;;  %1906 = vmatprep.subr.bf16.mxu1 %v9157_v17 }
  0xbf   :  { %v195_v16 = vrot.slane %v10644_v12, %v10647_v13  ;;  %v199_v17 = vrot.slane %v10644_v12, %v10650_v14 }
  0xc1   :  { %1825 = vmatpush1.bf16.msra.mxu0 %v9152_v18  ;;  %1907 = vmatpush1.bf16.msra.mxu1 %v9155_v19  ;;  %v207_v18 = vrot.slane %v10644_v12, %v10653_v15 }
  0xc2   :  { %1826 = vmatprep.subr.bf16.mxu0 %v9160_v20  ;;  %1908 = vmatprep.subr.bf16.mxu1 %v9163_v21 }
  0xc5   :  { %1827 = vmatpush1.bf16.msra.mxu0 %v9158_v22  ;;  %1909 = vmatpush1.bf16.msra.mxu1 %v9161_v23 }
  0xc6   :  { %1828 = vmatprep.subr.bf16.mxu0 %v9166_v24  ;;  %1910 = vmatprep.subr.bf16.mxu1 %v9169_v25 }
  0xc9   :  { %1829 = vmatpush1.bf16.msra.mxu0 %v9164_v26  ;;  %1911 = vmatpush1.bf16.msra.mxu1 %v9167_v27 }
  0xca   :  { %1830 = vmatprep.subr.bf16.mxu0 %v9172_v28  ;;  %1912 = vmatprep.subr.bf16.mxu1 %v9175_v29 }
  0xcd   :  { %1831 = vmatpush1.bf16.msra.mxu0 %v9170_v30  ;;  %1913 = vmatpush1.bf16.msra.mxu1 %v9173_v31 }
  0xce   :  { %1832 = vmatprep.subr.bf16.mxu0 %v9178_v32  ;;  %1914 = vmatprep.subr.bf16.mxu1 %v9181_v33 }
  0xd1   :  { %1833 = vmatpush1.bf16.msra.mxu0 %v9176_v34  ;;  %1915 = vmatpush1.bf16.msra.mxu1 %v9179_v35  ;;  %v9236_v35 = vld [vmem:[#allocation5 + $0x600] ss:$16 sps:$4 sm:$0xff]  }
  0xd2   :  { %1834 = vmatprep.subr.bf16.mxu0 %v9184_v36  ;;  %1916 = vmatprep.subr.bf16.mxu1 %v9187_v37  ;;  %v9239_v36 = vld [vmem:[#allocation5 + $0x608] ss:$16 sps:$4 sm:$0xff]  }
  0xd5   :  { %1835 = vmatpush1.bf16.msra.mxu0 %v9182_v38  ;;  %1917 = vmatpush1.bf16.msra.mxu1 %v9185_v39  ;;  %v9244_v39 = vld [vmem:[#allocation5 + $0x624] ss:$16 sps:$4 sm:$0xff]  }
  0xd6   :  { %1836 = vmatprep.subr.bf16.mxu0 %v9190_v40  ;;  %1918 = vmatprep.subr.bf16.mxu1 %v9193_v41  ;;  %v9247_v40 = vld [vmem:[#allocation5 + $0x62c] ss:$16 sps:$4 sm:$0xff]  }
  0xd9   :  { %1837 = vmatpush1.bf16.msra.mxu0 %v9188_v42  ;;  %1919 = vmatpush1.bf16.msra.mxu1 %v9191_v43  ;;  %v9242_v42 = vld [vmem:[#allocation5 + $0x620] ss:$16 sps:$4 sm:$0xff]   ;;  %v9245_v43 = vld [vmem:[#allocation5 + $0x628] ss:$16 sps:$4 sm:$0xff]  }
  0xda   :  { %1838 = vmatprep.subr.bf16.mxu0 %v9196_v44  ;;  %1920 = vmatprep.subr.bf16.mxu1 %v9199_v45  ;;  %v9250_v45 = vld [vmem:[#allocation5 + $0x644] ss:$16 sps:$4 sm:$0xff]  }
  0xdd   :  { %1839 = vmatpush1.bf16.msra.mxu0 %v9194_v46  ;;  %1921 = vmatpush1.bf16.msra.mxu1 %v9197_v47  ;;  %v9253_v46 = vld [vmem:[#allocation5 + $0x64c] ss:$16 sps:$4 sm:$0xff]   ;;  %v9248_v47 = vld [vmem:[#allocation5 + $0x640] ss:$16 sps:$4 sm:$0xff]  }
  0xde   :  { %1840 = vmatprep.subr.bf16.mxu0 %v9202_v48  ;;  %1922 = vmatprep.subr.bf16.mxu1 %v9205_v49  ;;  %v9251_v48 = vld [vmem:[#allocation5 + $0x648] ss:$16 sps:$4 sm:$0xff]   ;;  %v9256_v49 = vld [vmem:[#allocation5 + $0x664] ss:$16 sps:$4 sm:$0xff]  }
  0xe1   :  { %1841 = vmatpush1.bf16.msra.mxu0 %v9200_v50  ;;  %1923 = vmatpush1.bf16.msra.mxu1 %v9203_v51  ;;  %v9259_v50 = vld [vmem:[#allocation5 + $0x66c] ss:$16 sps:$4 sm:$0xff]   ;;  %v9254_v51 = vld [vmem:[#allocation5 + $0x660] ss:$16 sps:$4 sm:$0xff]  }
  0xe2   :  { %1842 = vmatprep.subr.bf16.mxu0 %v9208_v52  ;;  %1924 = vmatprep.subr.bf16.mxu1 %v9211_v53  ;;  %v9257_v52 = vld [vmem:[#allocation5 + $0x668] ss:$16 sps:$4 sm:$0xff]   ;;  %v9262_v53 = vld [vmem:[#allocation5 + $0x684] ss:$16 sps:$4 sm:$0xff]  }
  0xe5   :  { %1843 = vmatpush1.bf16.msra.mxu0 %v9206_v54  ;;  %1925 = vmatpush1.bf16.msra.mxu1 %v9209_v55  ;;  %v9265_v54 = vld [vmem:[#allocation5 + $0x68c] ss:$16 sps:$4 sm:$0xff]   ;;  %v9260_v55 = vld [vmem:[#allocation5 + $0x680] ss:$16 sps:$4 sm:$0xff]  }
  0xe6   :  { %1844 = vmatprep.subr.bf16.mxu0 %v9214_v56  ;;  %1926 = vmatprep.subr.bf16.mxu1 %v9217_v57  ;;  %v9263_v56 = vld [vmem:[#allocation5 + $0x688] ss:$16 sps:$4 sm:$0xff]   ;;  %v9268_v57 = vld [vmem:[#allocation5 + $0x6a4] ss:$16 sps:$4 sm:$0xff]  }
  0xe9   :  { %1845 = vmatpush1.bf16.msra.mxu0 %v9212_v58  ;;  %1927 = vmatpush1.bf16.msra.mxu1 %v9215_v59  ;;  %v9271_v58 = vld [vmem:[#allocation5 + $0x6ac] ss:$16 sps:$4 sm:$0xff]   ;;  %v9266_v59 = vld [vmem:[#allocation5 + $0x6a0] ss:$16 sps:$4 sm:$0xff]  }
  0xea   :  { %1846 = vmatprep.subr.bf16.mxu0 %v9220_v60  ;;  %1928 = vmatprep.subr.bf16.mxu1 %v9223_v61  ;;  %v9269_v60 = vld [vmem:[#allocation5 + $0x6a8] ss:$16 sps:$4 sm:$0xff]   ;;  %v9274_v61 = vld [vmem:[#allocation5 + $0x6c4] ss:$16 sps:$4 sm:$0xff]  }
  0xed   :  { %1847 = vmatpush1.bf16.msra.mxu0 %v9218_v62  ;;  %1929 = vmatpush1.bf16.msra.mxu1 %v9221_v63  ;;  %v9277_v62 = vld [vmem:[#allocation5 + $0x6cc] ss:$16 sps:$4 sm:$0xff]   ;;  %v9272_v63 = vld [vmem:[#allocation5 + $0x6c0] ss:$16 sps:$4 sm:$0xff]  }
  0xee   :  { %1848 = vmatprep.subr.bf16.mxu0 %v9226_v0  ;;  %1930 = vmatprep.subr.bf16.mxu1 %v9229_v1  ;;  %v9275_v0 = vld [vmem:[#allocation5 + $0x6c8] ss:$16 sps:$4 sm:$0xff]   ;;  %v9280_v1 = vld [vmem:[#allocation5 + $0x6e4] ss:$16 sps:$4 sm:$0xff]  }
  0xf1   :  { %1849 = vmatpush1.bf16.msra.mxu0 %v9224_v2  ;;  %1931 = vmatpush1.bf16.msra.mxu1 %v9227_v3  ;;  %v9283_v2 = vld [vmem:[#allocation5 + $0x6ec] ss:$16 sps:$4 sm:$0xff]   ;;  %v9278_v3 = vld [vmem:[#allocation5 + $0x6e0] ss:$16 sps:$4 sm:$0xff]  }
  0xf2   :  { %1850 = vmatprep.subr.bf16.mxu0 %v9232_v4  ;;  %1932 = vmatprep.subr.bf16.mxu1 %v9235_v5  ;;  %v9281_v4 = vld [vmem:[#allocation5 + $0x6e8] ss:$16 sps:$4 sm:$0xff]   ;;  %v9286_v5 = vld [vmem:[#allocation5 + $0x704] ss:$16 sps:$4 sm:$0xff]  }
  0xf5   :  { %1851 = vmatpush1.bf16.msra.mxu0 %v9230_v6  ;;  %1933 = vmatpush1.bf16.msra.mxu1 %v9233_v7  ;;  %v9289_v6 = vld [vmem:[#allocation5 + $0x70c] ss:$16 sps:$4 sm:$0xff]   ;;  %v9284_v7 = vld [vmem:[#allocation5 + $0x700] ss:$16 sps:$4 sm:$0xff]  }
  0xf6   :  { %1861 = vmatprep.subr.bf16.mxu0 %v9238_v8  ;;  %1943 = vmatprep.subr.bf16.mxu1 %v9241_v9  ;;  %v9287_v8 = vld [vmem:[#allocation5 + $0x708] ss:$16 sps:$4 sm:$0xff]   ;;  %v9292_v9 = vld [vmem:[#allocation5 + $0x724] ss:$16 sps:$4 sm:$0xff]  }
 0x18b   :  { %v927_v19 = vpop.f32.mrb[0].mxu0  ;;  %v10661_v20 = vpop.f32.mrb[0].mxu1 }
 0x18c   :  { %v8844_v21 = vadd.f32 %v927_v19, %v195_v16  ;;  %v929_v22 = vpop.f32.mrb[1].mxu0  ;;  %v1011_v23 = vpop.f32.mrb[1].mxu1  ;;  %v9290_v16 = vld [vmem:[#allocation5 + $0x720] ss:$16 sps:$4 sm:$0xff]   ;;  %v9301_v19 = vld [vmem:[#allocation5 + $0x74c] ss:$16 sps:$4 sm:$0xff]  }
 0x18d   :  { %v8845_v24 = vadd.f32 %v929_v22, %v199_v17  ;;  %v8847_v25 = vadd.f32 %v1011_v23, %v207_v18  ;;  %v931_v26 = vpop.f32.mrb[2].mxu0  ;;  %v1013_v27 = vpop.f32.mrb[2].mxu1  ;;  %v9293_v17 = vld [vmem:[#allocation5 + $0x728] ss:$16 sps:$4 sm:$0xff]   ;;  %v9298_v18 = vld [vmem:[#allocation5 + $0x744] ss:$16 sps:$4 sm:$0xff]  }
 0x18e   :  { %v1016_v28 = vmul.f32 0.2, %v8844_v21  ;;  %v932_v29 = vpop.f32.mrb[3].mxu0  ;;  %v1014_v30 = vpop.f32.mrb[3].mxu1  ;;  %v9299_v22 = vld [vmem:[#allocation5 + $0x748] ss:$16 sps:$4 sm:$0xff]  }
 0x18f   :  { %v1017_v31 = vmul.f32 0.2, %v8845_v24  ;;  %v1019_v32 = vmul.f32 0.2, %v8847_v25  ;;  %v9304_v23 = vld [vmem:[#allocation5 + $0x764] ss:$16 sps:$4 sm:$0xff]  }
 0x190   :  { %v1020_v33 = vmax.f32 %v8844_v21, %v1016_v28  ;;  %v9296_v21 = vld [vmem:[#allocation5 + $0x740] ss:$16 sps:$4 sm:$0xff]   ;;  %v9305_v26 = vld [vmem:[#allocation5 + $0x768] ss:$16 sps:$4 sm:$0xff]   ;;  %v9310_v27 = vld [vmem:[#allocation5 + $0x784] ss:$16 sps:$4 sm:$0xff]  }
 0x191   :  { %v1021_v34 = vmax.f32 %v8845_v24, %v1017_v31  ;;  %v1023_v37 = vmax.f32 %v8847_v25, %v1019_v32  ;;  %v9307_v24 = vld [vmem:[#allocation5 + $0x76c] ss:$16 sps:$4 sm:$0xff]   ;;  %v9302_v25 = vld [vmem:[#allocation5 + $0x760] ss:$16 sps:$4 sm:$0xff]   ;;  %v10664_v29 = vsub.s32 2, %v10642_v11 }
 0x192   :  { %v1024_v41 = vpack.c.bf16 %v1020_v33, %v1020_v33  ;;  %v9313_v28 = vld [vmem:[#allocation5 + $0x78c] ss:$16 sps:$4 sm:$0xff]   ;;  %v9308_v30 = vld [vmem:[#allocation5 + $0x780] ss:$16 sps:$4 sm:$0xff]   ;;  %v9311_v31 = vld [vmem:[#allocation5 + $0x788] ss:$16 sps:$4 sm:$0xff]  }
 0x193   :  { %v1025_v38 = vpack.c.bf16 %v1021_v34, %v1021_v34  ;;  %v1027_v44 = vpack.c.bf16 %v1023_v37, %v1023_v37  ;;  %v9316_v32 = vld [vmem:[#allocation5 + $0x7a4] ss:$16 sps:$4 sm:$0xff]   ;;  %v9319_v33 = vld [vmem:[#allocation5 + $0x7ac] ss:$16 sps:$4 sm:$0xff]   ;;  %v203_v34 = vrot.slane %v10644_v12, %v10664_v29  ;;  %v9326_v12 = vld [vmem:[#allocation5 + $0x7e0] ss:$16 sps:$4 sm:$0xff]  }
 0x194   :  { %v9322_v37 = vld [vmem:[#allocation5 + $0x7c4] ss:$16 sps:$4 sm:$0xff]  }
 0x195   :  { %1852 = vmatprep.mubr.bf16.mxu0 %v1025_v38  ;;  %1934 = vmatprep.mubr.bf16.mxu1 %v1025_v38  ;;  %v9325_v38 = vld [vmem:[#allocation5 + $0x7cc] ss:$16 sps:$4 sm:$0xff]   ;;  %v8846_v11 = vadd.f32 %v10661_v20, %v203_v34  ;;  %v9332_v20 = vld [vmem:[#allocation5 + $0x800] ss:$16 sps:$4 sm:$0xff]  }
 0x196   :  { %1853 = vmatmul.mubr.bf16.vlgmr.msra.gmra.mrb[4].mxu0 %v1024_v41  ;;  %1935 = vmatmul.mubr.bf16.vlgmr.msra.gmra.mrb[4].mxu1 %v1024_v41  ;;  %v9328_v41 = vld [vmem:[#allocation5 + $0x7e4] ss:$16 sps:$4 sm:$0xff]   ;;  %v9403_v34 = vld [vmem:[#allocation5 + $0x96c] ss:$16 sps:$4 sm:$0xff]  }
 0x197   :  { %1862 = vmatpush1.bf16.msra.mxu0 %v9236_v35  ;;  %1944 = vmatpush1.bf16.msra.mxu1 %v9239_v36  ;;  %v9314_v35 = vld [vmem:[#allocation5 + $0x7a0] ss:$16 sps:$4 sm:$0xff]   ;;  %v9317_v36 = vld [vmem:[#allocation5 + $0x7a8] ss:$16 sps:$4 sm:$0xff]  }
 0x198   :  { %1893 = vmatprep.mubr.bf16.mxu0 %v1027_v44  ;;  %1975 = vmatprep.mubr.bf16.mxu1 %v1027_v44  ;;  %v9329_v44 = vld [vmem:[#allocation5 + $0x7e8] ss:$16 sps:$4 sm:$0xff]  }
 0x199   :  { %1863 = vmatprep.subr.bf16.mxu0 %v9244_v39  ;;  %1945 = vmatprep.subr.bf16.mxu1 %v9247_v40  ;;  %v9320_v39 = vld [vmem:[#allocation5 + $0x7c0] ss:$16 sps:$4 sm:$0xff]   ;;  %v9323_v40 = vld [vmem:[#allocation5 + $0x7c8] ss:$16 sps:$4 sm:$0xff]  }
 0x19b   :  { %1864 = vmatpush1.bf16.msra.mxu0 %v9242_v42  ;;  %1946 = vmatpush1.bf16.msra.mxu1 %v9245_v43  ;;  %v9331_v42 = vld [vmem:[#allocation5 + $0x7ec] ss:$16 sps:$4 sm:$0xff]   ;;  %v1018_v43 = vmul.f32 0.2, %v8846_v11 }
 0x19c   :  { %1865 = vmatprep.subr.bf16.mxu0 %v9250_v45  ;;  %1947 = vmatprep.subr.bf16.mxu1 %v9253_v46  ;;  %v9334_v45 = vld [vmem:[#allocation5 + $0x804] ss:$16 sps:$4 sm:$0xff]   ;;  %v9337_v46 = vld [vmem:[#allocation5 + $0x80c] ss:$16 sps:$4 sm:$0xff]  }
 0x19f   :  { %1866 = vmatpush1.bf16.msra.mxu0 %v9248_v47  ;;  %1948 = vmatpush1.bf16.msra.mxu1 %v9251_v48  ;;  %v1022_v47 = vmax.f32 %v8846_v11, %v1018_v43  ;;  %v9335_v48 = vld [vmem:[#allocation5 + $0x808] ss:$16 sps:$4 sm:$0xff]   ;;  %v9404_v11 = vld [vmem:[#allocation5 + $0x980] ss:$16 sps:$4 sm:$0xff]  }
 0x1a0   :  { %1867 = vmatprep.subr.bf16.mxu0 %v9256_v49  ;;  %1949 = vmatprep.subr.bf16.mxu1 %v9259_v50  ;;  %v9340_v49 = vld [vmem:[#allocation5 + $0x824] ss:$16 sps:$4 sm:$0xff]   ;;  %v9343_v50 = vld [vmem:[#allocation5 + $0x82c] ss:$16 sps:$4 sm:$0xff]   ;;  %v9413_v43 = vld [vmem:[#allocation5 + $0x9a8] ss:$16 sps:$4 sm:$0xff]  }
 0x1a3   :  { %1868 = vmatpush1.bf16.msra.mxu0 %v9254_v51  ;;  %1950 = vmatpush1.bf16.msra.mxu1 %v9257_v52  ;;  %v1026_v51 = vpack.c.bf16 %v1022_v47, %v1022_v47  ;;  %v9338_v52 = vld [vmem:[#allocation5 + $0x820] ss:$16 sps:$4 sm:$0xff]   ;;  %v9424_v47 = vld [vmem:[#allocation5 + $0x9e4] ss:$16 sps:$4 sm:$0xff]  }
 0x1a4   :  { %1869 = vmatprep.subr.bf16.mxu0 %v9262_v53  ;;  %1951 = vmatprep.subr.bf16.mxu1 %v9265_v54  ;;  %v9341_v53 = vld [vmem:[#allocation5 + $0x828] ss:$16 sps:$4 sm:$0xff]   ;;  %v9346_v54 = vld [vmem:[#allocation5 + $0x844] ss:$16 sps:$4 sm:$0xff]  }
 0x1a7   :  { %1870 = vmatpush1.bf16.msra.mxu0 %v9260_v55  ;;  %1952 = vmatpush1.bf16.msra.mxu1 %v9263_v56  ;;  %v9349_v55 = vld [vmem:[#allocation5 + $0x84c] ss:$16 sps:$4 sm:$0xff]   ;;  %v9344_v56 = vld [vmem:[#allocation5 + $0x840] ss:$16 sps:$4 sm:$0xff]  }
 0x1a8   :  { %1871 = vmatprep.subr.bf16.mxu0 %v9268_v57  ;;  %1953 = vmatprep.subr.bf16.mxu1 %v9271_v58  ;;  %v9347_v57 = vld [vmem:[#allocation5 + $0x848] ss:$16 sps:$4 sm:$0xff]   ;;  %v9352_v58 = vld [vmem:[#allocation5 + $0x864] ss:$16 sps:$4 sm:$0xff]  }
 0x1ab   :  { %1872 = vmatpush1.bf16.msra.mxu0 %v9266_v59  ;;  %1954 = vmatpush1.bf16.msra.mxu1 %v9269_v60  ;;  %v9355_v59 = vld [vmem:[#allocation5 + $0x86c] ss:$16 sps:$4 sm:$0xff]   ;;  %v9350_v60 = vld [vmem:[#allocation5 + $0x860] ss:$16 sps:$4 sm:$0xff]  }
 0x1ac   :  { %1873 = vmatprep.subr.bf16.mxu0 %v9274_v61  ;;  %1955 = vmatprep.subr.bf16.mxu1 %v9277_v62  ;;  %v9353_v61 = vld [vmem:[#allocation5 + $0x868] ss:$16 sps:$4 sm:$0xff]   ;;  %v9358_v62 = vld [vmem:[#allocation5 + $0x884] ss:$16 sps:$4 sm:$0xff]  }
 0x1af   :  { %1874 = vmatpush1.bf16.msra.mxu0 %v9272_v63  ;;  %1956 = vmatpush1.bf16.msra.mxu1 %v9275_v0  ;;  %v9361_v63 = vld [vmem:[#allocation5 + $0x88c] ss:$16 sps:$4 sm:$0xff]   ;;  %v9356_v0 = vld [vmem:[#allocation5 + $0x880] ss:$16 sps:$4 sm:$0xff]  }
 0x1b0   :  { %1875 = vmatprep.subr.bf16.mxu0 %v9280_v1  ;;  %1957 = vmatprep.subr.bf16.mxu1 %v9283_v2  ;;  %v9359_v1 = vld [vmem:[#allocation5 + $0x888] ss:$16 sps:$4 sm:$0xff]   ;;  %v9364_v2 = vld [vmem:[#allocation5 + $0x8a4] ss:$16 sps:$4 sm:$0xff]  }
 0x1b3   :  { %1876 = vmatpush1.bf16.msra.mxu0 %v9278_v3  ;;  %1958 = vmatpush1.bf16.msra.mxu1 %v9281_v4  ;;  %v9367_v3 = vld [vmem:[#allocation5 + $0x8ac] ss:$16 sps:$4 sm:$0xff]   ;;  %v9362_v4 = vld [vmem:[#allocation5 + $0x8a0] ss:$16 sps:$4 sm:$0xff]  }
 0x1b4   :  { %1877 = vmatprep.subr.bf16.mxu0 %v9286_v5  ;;  %1959 = vmatprep.subr.bf16.mxu1 %v9289_v6  ;;  %v9365_v5 = vld [vmem:[#allocation5 + $0x8a8] ss:$16 sps:$4 sm:$0xff]   ;;  %v9370_v6 = vld [vmem:[#allocation5 + $0x8c4] ss:$16 sps:$4 sm:$0xff]  }
 0x1b7   :  { %1878 = vmatpush1.bf16.msra.mxu0 %v9284_v7  ;;  %1960 = vmatpush1.bf16.msra.mxu1 %v9287_v8  ;;  %v9373_v7 = vld [vmem:[#allocation5 + $0x8cc] ss:$16 sps:$4 sm:$0xff]   ;;  %v9368_v8 = vld [vmem:[#allocation5 + $0x8c0] ss:$16 sps:$4 sm:$0xff]  }
 0x1b8   :  { %1879 = vmatprep.subr.bf16.mxu0 %v9292_v9  ;;  %1961 = vmatprep.subr.bf16.mxu1 %v9295_v10  ;;  %v9371_v9 = vld [vmem:[#allocation5 + $0x8c8] ss:$16 sps:$4 sm:$0xff]   ;;  %v9376_v10 = vld [vmem:[#allocation5 + $0x8e4] ss:$16 sps:$4 sm:$0xff]  }
 0x1bb   :  { %1880 = vmatpush1.bf16.msra.mxu0 %v9290_v16  ;;  %1962 = vmatpush1.bf16.msra.mxu1 %v9293_v17  ;;  %v9379_v16 = vld [vmem:[#allocation5 + $0x8ec] ss:$16 sps:$4 sm:$0xff]   ;;  %v9374_v17 = vld [vmem:[#allocation5 + $0x8e0] ss:$16 sps:$4 sm:$0xff]  }
 0x1bc   :  { %1881 = vmatprep.subr.bf16.mxu0 %v9298_v18  ;;  %1963 = vmatprep.subr.bf16.mxu1 %v9301_v19  ;;  %v9377_v18 = vld [vmem:[#allocation5 + $0x8e8] ss:$16 sps:$4 sm:$0xff]   ;;  %v9382_v19 = vld [vmem:[#allocation5 + $0x904] ss:$16 sps:$4 sm:$0xff]  }
 0x1bf   :  { %1882 = vmatpush1.bf16.msra.mxu0 %v9296_v21  ;;  %1964 = vmatpush1.bf16.msra.mxu1 %v9299_v22  ;;  %v9385_v21 = vld [vmem:[#allocation5 + $0x90c] ss:$16 sps:$4 sm:$0xff]   ;;  %v9380_v22 = vld [vmem:[#allocation5 + $0x900] ss:$16 sps:$4 sm:$0xff]  }
 0x1c0   :  { %1883 = vmatprep.subr.bf16.mxu0 %v9304_v23  ;;  %1965 = vmatprep.subr.bf16.mxu1 %v9307_v24  ;;  %v9383_v23 = vld [vmem:[#allocation5 + $0x908] ss:$16 sps:$4 sm:$0xff]   ;;  %v9388_v24 = vld [vmem:[#allocation5 + $0x924] ss:$16 sps:$4 sm:$0xff]  }
 0x1c3   :  { %1884 = vmatpush1.bf16.msra.mxu0 %v9302_v25  ;;  %1966 = vmatpush1.bf16.msra.mxu1 %v9305_v26  ;;  %v9391_v25 = vld [vmem:[#allocation5 + $0x92c] ss:$16 sps:$4 sm:$0xff]   ;;  %v9386_v26 = vld [vmem:[#allocation5 + $0x920] ss:$16 sps:$4 sm:$0xff]  }
 0x1c4   :  { %1885 = vmatprep.subr.bf16.mxu0 %v9310_v27  ;;  %1967 = vmatprep.subr.bf16.mxu1 %v9313_v28  ;;  %v9389_v27 = vld [vmem:[#allocation5 + $0x928] ss:$16 sps:$4 sm:$0xff]   ;;  %v9394_v28 = vld [vmem:[#allocation5 + $0x944] ss:$16 sps:$4 sm:$0xff]  }
 0x1c7   :  { %1886 = vmatpush1.bf16.msra.mxu0 %v9308_v30  ;;  %1968 = vmatpush1.bf16.msra.mxu1 %v9311_v31  ;;  %v9397_v30 = vld [vmem:[#allocation5 + $0x94c] ss:$16 sps:$4 sm:$0xff]   ;;  %v9392_v31 = vld [vmem:[#allocation5 + $0x940] ss:$16 sps:$4 sm:$0xff]  }
 0x1c8   :  { %1887 = vmatprep.subr.bf16.mxu0 %v9316_v32  ;;  %1969 = vmatprep.subr.bf16.mxu1 %v9319_v33  ;;  %v9395_v32 = vld [vmem:[#allocation5 + $0x948] ss:$16 sps:$4 sm:$0xff]   ;;  %v9400_v33 = vld [vmem:[#allocation5 + $0x964] ss:$16 sps:$4 sm:$0xff]  }
 0x1cb   :  { %1888 = vmatpush1.bf16.msra.mxu0 %v9314_v35  ;;  %1970 = vmatpush1.bf16.msra.mxu1 %v9317_v36  ;;  %v9398_v35 = vld [vmem:[#allocation5 + $0x960] ss:$16 sps:$4 sm:$0xff]   ;;  %v9401_v36 = vld [vmem:[#allocation5 + $0x968] ss:$16 sps:$4 sm:$0xff]  }
 0x1cc   :  { %1889 = vmatprep.subr.bf16.mxu0 %v9322_v37  ;;  %1971 = vmatprep.subr.bf16.mxu1 %v9325_v38  ;;  %v9406_v37 = vld [vmem:[#allocation5 + $0x984] ss:$16 sps:$4 sm:$0xff]   ;;  %v9409_v38 = vld [vmem:[#allocation5 + $0x98c] ss:$16 sps:$4 sm:$0xff]  }
 0x1cf   :  { %1890 = vmatpush1.bf16.msra.mxu0 %v9320_v39  ;;  %1972 = vmatpush1.bf16.msra.mxu1 %v9323_v40  ;;  %v9407_v39 = vld [vmem:[#allocation5 + $0x988] ss:$16 sps:$4 sm:$0xff]   ;;  %v9412_v40 = vld [vmem:[#allocation5 + $0x9a4] ss:$16 sps:$4 sm:$0xff]  }
 0x1d0   :  { %1891 = vmatprep.subr.bf16.mxu0 %v9328_v41  ;;  %1973 = vmatprep.subr.bf16.mxu1 %v9331_v42  ;;  %v9415_v41 = vld [vmem:[#allocation5 + $0x9ac] ss:$16 sps:$4 sm:$0xff]   ;;  %v9410_v42 = vld [vmem:[#allocation5 + $0x9a0] ss:$16 sps:$4 sm:$0xff]  }
 0x1d3   :  { %1892 = vmatpush1.bf16.msra.mxu0 %v9326_v12  ;;  %1974 = vmatpush1.bf16.msra.mxu1 %v9329_v44  ;;  %v9418_v12 = vld [vmem:[#allocation5 + $0x9c4] ss:$16 sps:$4 sm:$0xff]   ;;  %v9421_v44 = vld [vmem:[#allocation5 + $0x9cc] ss:$16 sps:$4 sm:$0xff]  }
 0x1d4   :  { %2788 = vmatprep.subr.bf16.mxu0 %v9334_v45  ;;  %2870 = vmatprep.subr.bf16.mxu1 %v9337_v46  ;;  %v9416_v45 = vld [vmem:[#allocation5 + $0x9c0] ss:$16 sps:$4 sm:$0xff]   ;;  %v9419_v46 = vld [vmem:[#allocation5 + $0x9c8] ss:$16 sps:$4 sm:$0xff]  }
 0x1d6   :  { %1894 = vmatmul.mubr.bf16.vlgmr.msra.gmra.mrb[4].mxu0 %v1026_v51  ;;  %1976 = vmatmul.mubr.bf16.vlgmr.msra.gmra.mrb[4].mxu1 %v1026_v51  ;;  %v9433_v51 = vld [vmem:[#allocation5 + $0xa0c] ss:$16 sps:$4 sm:$0xff]  }
 0x1d7   :  { %2789 = vmatpush1.bf16.msra.mxu0 %v9332_v20  ;;  %2871 = vmatpush1.bf16.msra.mxu1 %v9335_v48  ;;  %v9427_v20 = vld [vmem:[#allocation5 + $0x9ec] ss:$16 sps:$4 sm:$0xff]   ;;  %v9422_v48 = vld [vmem:[#allocation5 + $0x9e0] ss:$16 sps:$4 sm:$0xff]  }
 0x1d8   :  { %2790 = vmatprep.subr.bf16.mxu0 %v9340_v49  ;;  %2872 = vmatprep.subr.bf16.mxu1 %v9343_v50  ;;  %v9425_v49 = vld [vmem:[#allocation5 + $0x9e8] ss:$16 sps:$4 sm:$0xff]   ;;  %v9430_v50 = vld [vmem:[#allocation5 + $0xa04] ss:$16 sps:$4 sm:$0xff]  }
 0x1db   :  { %2791 = vmatpush1.bf16.msra.mxu0 %v9338_v52  ;;  %2873 = vmatpush1.bf16.msra.mxu1 %v9341_v53  ;;  %v10669_v52 = vld [vmem:[#allocation7 + $0x4] sm:$0xf] }
 0x1dc   :  { %2792 = vmatprep.subr.bf16.mxu0 %v9346_v54  ;;  %2874 = vmatprep.subr.bf16.mxu1 %v9349_v55  ;;  %v1163_v53 = vrot.slane %v10669_v52, %v10647_v13  ;;  %v1167_v54 = vrot.slane %v10669_v52, %v10650_v14  ;;  %v1175_v55 = vrot.slane %v10669_v52, %v10653_v15 }
 0x1df   :  { %2793 = vmatpush1.bf16.msra.mxu0 %v9344_v56  ;;  %2875 = vmatpush1.bf16.msra.mxu1 %v9347_v57 }
 0x1e0   :  { %2794 = vmatprep.subr.bf16.mxu0 %v9352_v58  ;;  %2876 = vmatprep.subr.bf16.mxu1 %v9355_v59 }
 0x1e3   :  { %2795 = vmatpush1.bf16.msra.mxu0 %v9350_v60  ;;  %2877 = vmatpush1.bf16.msra.mxu1 %v9353_v61 }
 0x1e4   :  { %2796 = vmatprep.subr.bf16.mxu0 %v9358_v62  ;;  %2878 = vmatprep.subr.bf16.mxu1 %v9361_v63 }
 0x1e7   :  { %2797 = vmatpush1.bf16.msra.mxu0 %v9356_v0  ;;  %2879 = vmatpush1.bf16.msra.mxu1 %v9359_v1 }
 0x1e8   :  { %2798 = vmatprep.subr.bf16.mxu0 %v9364_v2  ;;  %2880 = vmatprep.subr.bf16.mxu1 %v9367_v3 }
 0x1eb   :  { %2799 = vmatpush1.bf16.msra.mxu0 %v9362_v4  ;;  %2881 = vmatpush1.bf16.msra.mxu1 %v9365_v5 }
 0x1ec   :  { %2800 = vmatprep.subr.bf16.mxu0 %v9370_v6  ;;  %2882 = vmatprep.subr.bf16.mxu1 %v9373_v7 }
 0x1ef   :  { %2801 = vmatpush1.bf16.msra.mxu0 %v9368_v8  ;;  %2883 = vmatpush1.bf16.msra.mxu1 %v9371_v9 }
 0x1f0   :  { %2802 = vmatprep.subr.bf16.mxu0 %v9376_v10  ;;  %2884 = vmatprep.subr.bf16.mxu1 %v9379_v16  ;;  %v9428_v10 = vld [vmem:[#allocation5 + $0xa00] ss:$16 sps:$4 sm:$0xff]   ;;  %v9431_v16 = vld [vmem:[#allocation5 + $0xa08] ss:$16 sps:$4 sm:$0xff]  }
 0x1f3   :  { %2803 = vmatpush1.bf16.msra.mxu0 %v9374_v17  ;;  %2885 = vmatpush1.bf16.msra.mxu1 %v9377_v18  ;;  %v9436_v18 = vld [vmem:[#allocation5 + $0xa24] ss:$16 sps:$4 sm:$0xff]  }
 0x1f4   :  { %2804 = vmatprep.subr.bf16.mxu0 %v9382_v19  ;;  %2886 = vmatprep.subr.bf16.mxu1 %v9385_v21  ;;  %v9439_v19 = vld [vmem:[#allocation5 + $0xa2c] ss:$16 sps:$4 sm:$0xff]  }
 0x1f7   :  { %2805 = vmatpush1.bf16.msra.mxu0 %v9380_v22  ;;  %2887 = vmatpush1.bf16.msra.mxu1 %v9383_v23  ;;  %v9434_v22 = vld [vmem:[#allocation5 + $0xa20] ss:$16 sps:$4 sm:$0xff]   ;;  %v9437_v23 = vld [vmem:[#allocation5 + $0xa28] ss:$16 sps:$4 sm:$0xff]  }
 0x1f8   :  { %2806 = vmatprep.subr.bf16.mxu0 %v9388_v24  ;;  %2888 = vmatprep.subr.bf16.mxu1 %v9391_v25  ;;  %v9442_v24 = vld [vmem:[#allocation5 + $0xa44] ss:$16 sps:$4 sm:$0xff]   ;;  %v9445_v25 = vld [vmem:[#allocation5 + $0xa4c] ss:$16 sps:$4 sm:$0xff]  }
 0x1fb   :  { %2807 = vmatpush1.bf16.msra.mxu0 %v9386_v26  ;;  %2889 = vmatpush1.bf16.msra.mxu1 %v9389_v27  ;;  %v9440_v26 = vld [vmem:[#allocation5 + $0xa40] ss:$16 sps:$4 sm:$0xff]   ;;  %v9443_v27 = vld [vmem:[#allocation5 + $0xa48] ss:$16 sps:$4 sm:$0xff]  }
 0x1fc   :  { %2808 = vmatprep.subr.bf16.mxu0 %v9394_v28  ;;  %2890 = vmatprep.subr.bf16.mxu1 %v9397_v30  ;;  %v9448_v28 = vld [vmem:[#allocation5 + $0xa64] ss:$16 sps:$4 sm:$0xff]   ;;  %v9451_v30 = vld [vmem:[#allocation5 + $0xa6c] ss:$16 sps:$4 sm:$0xff]  }
 0x1ff   :  { %2809 = vmatpush1.bf16.msra.mxu0 %v9392_v31  ;;  %2891 = vmatpush1.bf16.msra.mxu1 %v9395_v32  ;;  %v9446_v31 = vld [vmem:[#allocation5 + $0xa60] ss:$16 sps:$4 sm:$0xff]   ;;  %v9449_v32 = vld [vmem:[#allocation5 + $0xa68] ss:$16 sps:$4 sm:$0xff]  }
 0x200   :  { %2810 = vmatprep.subr.bf16.mxu0 %v9400_v33  ;;  %2892 = vmatprep.subr.bf16.mxu1 %v9403_v34  ;;  %v9454_v33 = vld [vmem:[#allocation5 + $0xa84] ss:$16 sps:$4 sm:$0xff]   ;;  %v9457_v34 = vld [vmem:[#allocation5 + $0xa8c] ss:$16 sps:$4 sm:$0xff]  }
 0x203   :  { %2811 = vmatpush1.bf16.msra.mxu0 %v9398_v35  ;;  %2893 = vmatpush1.bf16.msra.mxu1 %v9401_v36  ;;  %v9452_v35 = vld [vmem:[#allocation5 + $0xa80] ss:$16 sps:$4 sm:$0xff]   ;;  %v9455_v36 = vld [vmem:[#allocation5 + $0xa88] ss:$16 sps:$4 sm:$0xff]  }
 0x204   :  { %2812 = vmatprep.subr.bf16.mxu0 %v9406_v37  ;;  %2894 = vmatprep.subr.bf16.mxu1 %v9409_v38  ;;  %v9460_v37 = vld [vmem:[#allocation5 + $0xaa4] ss:$16 sps:$4 sm:$0xff]   ;;  %v9463_v38 = vld [vmem:[#allocation5 + $0xaac] ss:$16 sps:$4 sm:$0xff]  }
 0x207   :  { %2813 = vmatpush1.bf16.msra.mxu0 %v9404_v11  ;;  %2895 = vmatpush1.bf16.msra.mxu1 %v9407_v39  ;;  %v9458_v11 = vld [vmem:[#allocation5 + $0xaa0] ss:$16 sps:$4 sm:$0xff]   ;;  %v9461_v39 = vld [vmem:[#allocation5 + $0xaa8] ss:$16 sps:$4 sm:$0xff]  }
 0x208   :  { %2814 = vmatprep.subr.bf16.mxu0 %v9412_v40  ;;  %2896 = vmatprep.subr.bf16.mxu1 %v9415_v41  ;;  %v9466_v40 = vld [vmem:[#allocation5 + $0xac4] ss:$16 sps:$4 sm:$0xff]   ;;  %v9469_v41 = vld [vmem:[#allocation5 + $0xacc] ss:$16 sps:$4 sm:$0xff]  }
 0x20b   :  { %2815 = vmatpush1.bf16.msra.mxu0 %v9410_v42  ;;  %2897 = vmatpush1.bf16.msra.mxu1 %v9413_v43  ;;  %v9464_v42 = vld [vmem:[#allocation5 + $0xac0] ss:$16 sps:$4 sm:$0xff]   ;;  %v9467_v43 = vld [vmem:[#allocation5 + $0xac8] ss:$16 sps:$4 sm:$0xff]  }
 0x20c   :  { %2816 = vmatprep.subr.bf16.mxu0 %v9418_v12  ;;  %2898 = vmatprep.subr.bf16.mxu1 %v9421_v44  ;;  %v9472_v12 = vld [vmem:[#allocation5 + $0xae4] ss:$16 sps:$4 sm:$0xff]   ;;  %v9475_v44 = vld [vmem:[#allocation5 + $0xaec] ss:$16 sps:$4 sm:$0xff]  }
 0x20f   :  { %2817 = vmatpush1.bf16.msra.mxu0 %v9416_v45  ;;  %2899 = vmatpush1.bf16.msra.mxu1 %v9419_v46  ;;  %v9470_v45 = vld [vmem:[#allocation5 + $0xae0] ss:$16 sps:$4 sm:$0xff]   ;;  %v9473_v46 = vld [vmem:[#allocation5 + $0xae8] ss:$16 sps:$4 sm:$0xff]  }
 0x210   :  { %2818 = vmatprep.subr.bf16.mxu0 %v9424_v47  ;;  %2900 = vmatprep.subr.bf16.mxu1 %v9427_v20  ;;  %v9478_v47 = vld [vmem:[#allocation5 + $0xb04] ss:$16 sps:$4 sm:$0xff]   ;;  %v9481_v20 = vld [vmem:[#allocation5 + $0xb0c] ss:$16 sps:$4 sm:$0xff]  }
 0x213   :  { %2819 = vmatpush1.bf16.msra.mxu0 %v9422_v48  ;;  %2901 = vmatpush1.bf16.msra.mxu1 %v9425_v49  ;;  %v9476_v48 = vld [vmem:[#allocation5 + $0xb00] ss:$16 sps:$4 sm:$0xff]   ;;  %v9479_v49 = vld [vmem:[#allocation5 + $0xb08] ss:$16 sps:$4 sm:$0xff]  }
 0x214   :  { %2829 = vmatprep.subr.bf16.mxu0 %v9430_v50  ;;  %2911 = vmatprep.subr.bf16.mxu1 %v9433_v51  ;;  %v9484_v50 = vld [vmem:[#allocation5 + $0xb24] ss:$16 sps:$4 sm:$0xff]   ;;  %v9487_v51 = vld [vmem:[#allocation5 + $0xb2c] ss:$16 sps:$4 sm:$0xff]  }
 0x2a9   :  { %v1895_v56 = vpop.f32.mrb[4].mxu0  ;;  %v10677_v57 = vpop.f32.mrb[4].mxu1 }
 0x2aa   :  { %v8848_v58 = vadd.f32 %v1895_v56, %v1163_v53  ;;  %v1897_v59 = vpop.f32.mrb[5].mxu0  ;;  %v1979_v60 = vpop.f32.mrb[5].mxu1  ;;  %v9482_v53 = vld [vmem:[#allocation5 + $0xb20] ss:$16 sps:$4 sm:$0xff]   ;;  %v9493_v56 = vld [vmem:[#allocation5 + $0xb4c] ss:$16 sps:$4 sm:$0xff]  }
 0x2ab   :  { %v8849_v61 = vadd.f32 %v1897_v59, %v1167_v54  ;;  %v8851_v62 = vadd.f32 %v1979_v60, %v1175_v55  ;;  %v1899_v63 = vpop.f32.mrb[6].mxu0  ;;  %v1981_v0 = vpop.f32.mrb[6].mxu1  ;;  %v9485_v54 = vld [vmem:[#allocation5 + $0xb28] ss:$16 sps:$4 sm:$0xff]   ;;  %v9490_v55 = vld [vmem:[#allocation5 + $0xb44] ss:$16 sps:$4 sm:$0xff]  }
 0x2ac   :  { %v1984_v1 = vmul.f32 0.2, %v8848_v58  ;;  %v1900_v2 = vpop.f32.mrb[7].mxu0  ;;  %v1982_v3 = vpop.f32.mrb[7].mxu1  ;;  %v9491_v59 = vld [vmem:[#allocation5 + $0xb48] ss:$16 sps:$4 sm:$0xff]  }
 0x2ad   :  { %v1985_v4 = vmul.f32 0.2, %v8849_v61  ;;  %v1987_v5 = vmul.f32 0.2, %v8851_v62  ;;  %v9496_v60 = vld [vmem:[#allocation5 + $0xb64] ss:$16 sps:$4 sm:$0xff]  }
 0x2ae   :  { %v1988_v6 = vmax.f32 %v8848_v58, %v1984_v1  ;;  %v9488_v58 = vld [vmem:[#allocation5 + $0xb40] ss:$16 sps:$4 sm:$0xff]   ;;  %v9497_v63 = vld [vmem:[#allocation5 + $0xb68] ss:$16 sps:$4 sm:$0xff]   ;;  %v9502_v0 = vld [vmem:[#allocation5 + $0xb84] ss:$16 sps:$4 sm:$0xff]  }
 0x2af   :  { %v1989_v7 = vmax.f32 %v8849_v61, %v1985_v4  ;;  %v1991_v8 = vmax.f32 %v8851_v62, %v1987_v5  ;;  %v9499_v61 = vld [vmem:[#allocation5 + $0xb6c] ss:$16 sps:$4 sm:$0xff]   ;;  %v9494_v62 = vld [vmem:[#allocation5 + $0xb60] ss:$16 sps:$4 sm:$0xff]   ;;  %v9503_v3 = vld [vmem:[#allocation5 + $0xb88] ss:$16 sps:$4 sm:$0xff]   ;;  %v1171_v4 = vrot.slane %v10669_v52, %v10664_v29 }
 0x2b0   :  { %v1992_v17 = vpack.c.bf16 %v1988_v6, %v1988_v6  ;;  %v9505_v1 = vld [vmem:[#allocation5 + $0xb8c] ss:$16 sps:$4 sm:$0xff]   ;;  %v9500_v2 = vld [vmem:[#allocation5 + $0xb80] ss:$16 sps:$4 sm:$0xff]   ;;  %v9508_v5 = vld [vmem:[#allocation5 + $0xba4] ss:$16 sps:$4 sm:$0xff]  }
 0x2b1   :  { %v1993_v9 = vpack.c.bf16 %v1989_v7, %v1989_v7  ;;  %v1995_v21 = vpack.c.bf16 %v1991_v8, %v1991_v8  ;;  %v9511_v6 = vld [vmem:[#allocation5 + $0xbac] ss:$16 sps:$4 sm:$0xff]   ;;  %v9506_v7 = vld [vmem:[#allocation5 + $0xba0] ss:$16 sps:$4 sm:$0xff]   ;;  %v9509_v8 = vld [vmem:[#allocation5 + $0xba8] ss:$16 sps:$4 sm:$0xff]  }
 0x2b2   :  { %v9520_v52 = vld [vmem:[#allocation5 + $0xbe4] ss:$16 sps:$4 sm:$0xff]  }
 0x2b3   :  { %2820 = vmatprep.mubr.bf16.mxu0 %v1993_v9  ;;  %2902 = vmatprep.mubr.bf16.mxu1 %v1993_v9  ;;  %v8850_v9 = vadd.f32 %v10677_v57, %v1171_v4  ;;  %v9526_v57 = vld [vmem:[#allocation5 + $0xc04] ss:$16 sps:$4 sm:$0xff]   ;;  %v9587_v4 = vld [vmem:[#allocation5 + $0xd48] ss:$16 sps:$4 sm:$0xff]  }
 0x2b4   :  { %2821 = vmatmul.mubr.bf16.vlgmr.msra.gmra.mrb[8].mxu0 %v1992_v17  ;;  %2903 = vmatmul.mubr.bf16.vlgmr.msra.gmra.mrb[8].mxu1 %v1992_v17  ;;  %v9512_v17 = vld [vmem:[#allocation5 + $0xbc0] ss:$16 sps:$4 sm:$0xff]  }
 0x2b5   :  { %2830 = vmatpush1.bf16.msra.mxu0 %v9428_v10  ;;  %2912 = vmatpush1.bf16.msra.mxu1 %v9431_v16  ;;  %v9514_v10 = vld [vmem:[#allocation5 + $0xbc4] ss:$16 sps:$4 sm:$0xff]   ;;  %v9517_v16 = vld [vmem:[#allocation5 + $0xbcc] ss:$16 sps:$4 sm:$0xff]  }
 0x2b6   :  { %2861 = vmatprep.mubr.bf16.mxu0 %v1995_v21  ;;  %2943 = vmatprep.mubr.bf16.mxu1 %v1995_v21  ;;  %v9523_v21 = vld [vmem:[#allocation5 + $0xbec] ss:$16 sps:$4 sm:$0xff]  }
 0x2b7   :  { %2831 = vmatprep.subr.bf16.mxu0 %v9436_v18  ;;  %2913 = vmatprep.subr.bf16.mxu1 %v9439_v19  ;;  %v9515_v18 = vld [vmem:[#allocation5 + $0xbc8] ss:$16 sps:$4 sm:$0xff]   ;;  %v1986_v19 = vmul.f32 0.2, %v8850_v9 }
 0x2b9   :  { %2832 = vmatpush1.bf16.msra.mxu0 %v9434_v22  ;;  %2914 = vmatpush1.bf16.msra.mxu1 %v9437_v23  ;;  %v9518_v22 = vld [vmem:[#allocation5 + $0xbe0] ss:$16 sps:$4 sm:$0xff]   ;;  %v9521_v23 = vld [vmem:[#allocation5 + $0xbe8] ss:$16 sps:$4 sm:$0xff]  }
 0x2ba   :  { %2833 = vmatprep.subr.bf16.mxu0 %v9442_v24  ;;  %2915 = vmatprep.subr.bf16.mxu1 %v9445_v25  ;;  %v1990_v24 = vmax.f32 %v8850_v9, %v1986_v19  ;;  %v9529_v25 = vld [vmem:[#allocation5 + $0xc0c] ss:$16 sps:$4 sm:$0xff]   ;;  %v9598_v9 = vld [vmem:[#allocation5 + $0xd84] ss:$16 sps:$4 sm:$0xff]  }
 0x2bb   :  { %v9607_v19 = vld [vmem:[#allocation5 + $0xdac] ss:$16 sps:$4 sm:$0xff]  }
 0x2bd   :  { %2834 = vmatpush1.bf16.msra.mxu0 %v9440_v26  ;;  %2916 = vmatpush1.bf16.msra.mxu1 %v9443_v27  ;;  %v9524_v26 = vld [vmem:[#allocation5 + $0xc00] ss:$16 sps:$4 sm:$0xff]   ;;  %v9527_v27 = vld [vmem:[#allocation5 + $0xc08] ss:$16 sps:$4 sm:$0xff]  }
 0x2be   :  { %2835 = vmatprep.subr.bf16.mxu0 %v9448_v28  ;;  %2917 = vmatprep.subr.bf16.mxu1 %v9451_v30  ;;  %v1994_v28 = vpack.c.bf16 %v1990_v24, %v1990_v24  ;;  %v9532_v30 = vld [vmem:[#allocation5 + $0xc24] ss:$16 sps:$4 sm:$0xff]   ;;  %v9608_v24 = vld [vmem:[#allocation5 + $0xdc0] ss:$16 sps:$4 sm:$0xff]  }
 0x2c1   :  { %2836 = vmatpush1.bf16.msra.mxu0 %v9446_v31  ;;  %2918 = vmatpush1.bf16.msra.mxu1 %v9449_v32  ;;  %v9535_v31 = vld [vmem:[#allocation5 + $0xc2c] ss:$16 sps:$4 sm:$0xff]   ;;  %v9530_v32 = vld [vmem:[#allocation5 + $0xc20] ss:$16 sps:$4 sm:$0xff]  }
 0x2c2   :  { %2837 = vmatprep.subr.bf16.mxu0 %v9454_v33  ;;  %2919 = vmatprep.subr.bf16.mxu1 %v9457_v34  ;;  %v9533_v33 = vld [vmem:[#allocation5 + $0xc28] ss:$16 sps:$4 sm:$0xff]   ;;  %v9538_v34 = vld [vmem:[#allocation5 + $0xc44] ss:$16 sps:$4 sm:$0xff]  }
 0x2c5   :  { %2838 = vmatpush1.bf16.msra.mxu0 %v9452_v35  ;;  %2920 = vmatpush1.bf16.msra.mxu1 %v9455_v36  ;;  %v9541_v35 = vld [vmem:[#allocation5 + $0xc4c] ss:$16 sps:$4 sm:$0xff]   ;;  %v9536_v36 = vld [vmem:[#allocation5 + $0xc40] ss:$16 sps:$4 sm:$0xff]  }
 0x2c6   :  { %2839 = vmatprep.subr.bf16.mxu0 %v9460_v37  ;;  %2921 = vmatprep.subr.bf16.mxu1 %v9463_v38  ;;  %v9539_v37 = vld [vmem:[#allocation5 + $0xc48] ss:$16 sps:$4 sm:$0xff]   ;;  %v9544_v38 = vld [vmem:[#allocation5 + $0xc64] ss:$16 sps:$4 sm:$0xff]  }
 0x2c9   :  { %2840 = vmatpush1.bf16.msra.mxu0 %v9458_v11  ;;  %2922 = vmatpush1.bf16.msra.mxu1 %v9461_v39  ;;  %v9547_v11 = vld [vmem:[#allocation5 + $0xc6c] ss:$16 sps:$4 sm:$0xff]   ;;  %v9542_v39 = vld [vmem:[#allocation5 + $0xc60] ss:$16 sps:$4 sm:$0xff]  }
 0x2ca   :  { %2841 = vmatprep.subr.bf16.mxu0 %v9466_v40  ;;  %2923 = vmatprep.subr.bf16.mxu1 %v9469_v41  ;;  %v9545_v40 = vld [vmem:[#allocation5 + $0xc68] ss:$16 sps:$4 sm:$0xff]   ;;  %v9550_v41 = vld [vmem:[#allocation5 + $0xc84] ss:$16 sps:$4 sm:$0xff]  }
 0x2cd   :  { %2842 = vmatpush1.bf16.msra.mxu0 %v9464_v42  ;;  %2924 = vmatpush1.bf16.msra.mxu1 %v9467_v43  ;;  %v9553_v42 = vld [vmem:[#allocation5 + $0xc8c] ss:$16 sps:$4 sm:$0xff]   ;;  %v9548_v43 = vld [vmem:[#allocation5 + $0xc80] ss:$16 sps:$4 sm:$0xff]  }
 0x2ce   :  { %2843 = vmatprep.subr.bf16.mxu0 %v9472_v12  ;;  %2925 = vmatprep.subr.bf16.mxu1 %v9475_v44  ;;  %v9551_v12 = vld [vmem:[#allocation5 + $0xc88] ss:$16 sps:$4 sm:$0xff]   ;;  %v9556_v44 = vld [vmem:[#allocation5 + $0xca4] ss:$16 sps:$4 sm:$0xff]  }
 0x2d1   :  { %2844 = vmatpush1.bf16.msra.mxu0 %v9470_v45  ;;  %2926 = vmatpush1.bf16.msra.mxu1 %v9473_v46  ;;  %v9559_v45 = vld [vmem:[#allocation5 + $0xcac] ss:$16 sps:$4 sm:$0xff]   ;;  %v9554_v46 = vld [vmem:[#allocation5 + $0xca0] ss:$16 sps:$4 sm:$0xff]  }
 0x2d2   :  { %2845 = vmatprep.subr.bf16.mxu0 %v9478_v47  ;;  %2927 = vmatprep.subr.bf16.mxu1 %v9481_v20  ;;  %v9557_v47 = vld [vmem:[#allocation5 + $0xca8] ss:$16 sps:$4 sm:$0xff]   ;;  %v9562_v20 = vld [vmem:[#allocation5 + $0xcc4] ss:$16 sps:$4 sm:$0xff]  }
 0x2d5   :  { %2846 = vmatpush1.bf16.msra.mxu0 %v9476_v48  ;;  %2928 = vmatpush1.bf16.msra.mxu1 %v9479_v49  ;;  %v9565_v48 = vld [vmem:[#allocation5 + $0xccc] ss:$16 sps:$4 sm:$0xff]   ;;  %v9560_v49 = vld [vmem:[#allocation5 + $0xcc0] ss:$16 sps:$4 sm:$0xff]  }
 0x2d6   :  { %2847 = vmatprep.subr.bf16.mxu0 %v9484_v50  ;;  %2929 = vmatprep.subr.bf16.mxu1 %v9487_v51  ;;  %v9563_v50 = vld [vmem:[#allocation5 + $0xcc8] ss:$16 sps:$4 sm:$0xff]   ;;  %v9568_v51 = vld [vmem:[#allocation5 + $0xce4] ss:$16 sps:$4 sm:$0xff]  }
 0x2d9   :  { %2848 = vmatpush1.bf16.msra.mxu0 %v9482_v53  ;;  %2930 = vmatpush1.bf16.msra.mxu1 %v9485_v54  ;;  %v9571_v53 = vld [vmem:[#allocation5 + $0xcec] ss:$16 sps:$4 sm:$0xff]   ;;  %v9566_v54 = vld [vmem:[#allocation5 + $0xce0] ss:$16 sps:$4 sm:$0xff]  }
 0x2da   :  { %2849 = vmatprep.subr.bf16.mxu0 %v9490_v55  ;;  %2931 = vmatprep.subr.bf16.mxu1 %v9493_v56  ;;  %v9569_v55 = vld [vmem:[#allocation5 + $0xce8] ss:$16 sps:$4 sm:$0xff]   ;;  %v9574_v56 = vld [vmem:[#allocation5 + $0xd04] ss:$16 sps:$4 sm:$0xff]  }
 0x2dd   :  { %2850 = vmatpush1.bf16.msra.mxu0 %v9488_v58  ;;  %2932 = vmatpush1.bf16.msra.mxu1 %v9491_v59  ;;  %v9577_v58 = vld [vmem:[#allocation5 + $0xd0c] ss:$16 sps:$4 sm:$0xff]   ;;  %v9572_v59 = vld [vmem:[#allocation5 + $0xd00] ss:$16 sps:$4 sm:$0xff]  }
 0x2de   :  { %2851 = vmatprep.subr.bf16.mxu0 %v9496_v60  ;;  %2933 = vmatprep.subr.bf16.mxu1 %v9499_v61  ;;  %v9575_v60 = vld [vmem:[#allocation5 + $0xd08] ss:$16 sps:$4 sm:$0xff]   ;;  %v9580_v61 = vld [vmem:[#allocation5 + $0xd24] ss:$16 sps:$4 sm:$0xff]  }
 0x2e1   :  { %2852 = vmatpush1.bf16.msra.mxu0 %v9494_v62  ;;  %2934 = vmatpush1.bf16.msra.mxu1 %v9497_v63  ;;  %v9583_v62 = vld [vmem:[#allocation5 + $0xd2c] ss:$16 sps:$4 sm:$0xff]   ;;  %v9578_v63 = vld [vmem:[#allocation5 + $0xd20] ss:$16 sps:$4 sm:$0xff]  }
 0x2e2   :  { %2853 = vmatprep.subr.bf16.mxu0 %v9502_v0  ;;  %2935 = vmatprep.subr.bf16.mxu1 %v9505_v1  ;;  %v9581_v0 = vld [vmem:[#allocation5 + $0xd28] ss:$16 sps:$4 sm:$0xff]   ;;  %v9586_v1 = vld [vmem:[#allocation5 + $0xd44] ss:$16 sps:$4 sm:$0xff]  }
 0x2e5   :  { %2854 = vmatpush1.bf16.msra.mxu0 %v9500_v2  ;;  %2936 = vmatpush1.bf16.msra.mxu1 %v9503_v3  ;;  %v9589_v2 = vld [vmem:[#allocation5 + $0xd4c] ss:$16 sps:$4 sm:$0xff]   ;;  %v9584_v3 = vld [vmem:[#allocation5 + $0xd40] ss:$16 sps:$4 sm:$0xff]  }
 0x2e6   :  { %2855 = vmatprep.subr.bf16.mxu0 %v9508_v5  ;;  %2937 = vmatprep.subr.bf16.mxu1 %v9511_v6  ;;  %v9592_v5 = vld [vmem:[#allocation5 + $0xd64] ss:$16 sps:$4 sm:$0xff]   ;;  %v9595_v6 = vld [vmem:[#allocation5 + $0xd6c] ss:$16 sps:$4 sm:$0xff]  }
 0x2e9   :  { %2856 = vmatpush1.bf16.msra.mxu0 %v9506_v7  ;;  %2938 = vmatpush1.bf16.msra.mxu1 %v9509_v8  ;;  %v9590_v7 = vld [vmem:[#allocation5 + $0xd60] ss:$16 sps:$4 sm:$0xff]   ;;  %v9593_v8 = vld [vmem:[#allocation5 + $0xd68] ss:$16 sps:$4 sm:$0xff]  }
 0x2ea   :  { %2857 = vmatprep.subr.bf16.mxu0 %v9514_v10  ;;  %2939 = vmatprep.subr.bf16.mxu1 %v9517_v16  ;;  %v9601_v10 = vld [vmem:[#allocation5 + $0xd8c] ss:$16 sps:$4 sm:$0xff]   ;;  %v9596_v16 = vld [vmem:[#allocation5 + $0xd80] ss:$16 sps:$4 sm:$0xff]  }
 0x2ed   :  { %2858 = vmatpush1.bf16.msra.mxu0 %v9512_v17  ;;  %2940 = vmatpush1.bf16.msra.mxu1 %v9515_v18  ;;  %v9599_v17 = vld [vmem:[#allocation5 + $0xd88] ss:$16 sps:$4 sm:$0xff]   ;;  %v9604_v18 = vld [vmem:[#allocation5 + $0xda4] ss:$16 sps:$4 sm:$0xff]  }
 0x2ee   :  { %2859 = vmatprep.subr.bf16.mxu0 %v9520_v52  ;;  %2941 = vmatprep.subr.bf16.mxu1 %v9523_v21  ;;  %v9602_v52 = vld [vmem:[#allocation5 + $0xda0] ss:$16 sps:$4 sm:$0xff]   ;;  %v9605_v21 = vld [vmem:[#allocation5 + $0xda8] ss:$16 sps:$4 sm:$0xff]  }
 0x2f1   :  { %2860 = vmatpush1.bf16.msra.mxu0 %v9518_v22  ;;  %2942 = vmatpush1.bf16.msra.mxu1 %v9521_v23  ;;  %v9610_v22 = vld [vmem:[#allocation5 + $0xdc4] ss:$16 sps:$4 sm:$0xff]   ;;  %v9613_v23 = vld [vmem:[#allocation5 + $0xdcc] ss:$16 sps:$4 sm:$0xff]  }
 0x2f2   :  { %3756 = vmatprep.subr.bf16.mxu0 %v9526_v57  ;;  %3838 = vmatprep.subr.bf16.mxu1 %v9529_v25  ;;  %v9611_v57 = vld [vmem:[#allocation5 + $0xdc8] ss:$16 sps:$4 sm:$0xff]   ;;  %v9616_v25 = vld [vmem:[#allocation5 + $0xde4] ss:$16 sps:$4 sm:$0xff]  }
 0x2f4   :  { %2862 = vmatmul.mubr.bf16.vlgmr.msra.gmra.mrb[8].mxu0 %v1994_v28  ;;  %2944 = vmatmul.mubr.bf16.vlgmr.msra.gmra.mrb[8].mxu1 %v1994_v28  ;;  %v9617_v28 = vld [vmem:[#allocation5 + $0xde8] ss:$16 sps:$4 sm:$0xff]  }
 0x2f5   :  { %3757 = vmatpush1.bf16.msra.mxu0 %v9524_v26  ;;  %3839 = vmatpush1.bf16.msra.mxu1 %v9527_v27  ;;  %v9619_v26 = vld [vmem:[#allocation5 + $0xdec] ss:$16 sps:$4 sm:$0xff]   ;;  %v9614_v27 = vld [vmem:[#allocation5 + $0xde0] ss:$16 sps:$4 sm:$0xff]  }
 0x2f6   :  { %3758 = vmatprep.subr.bf16.mxu0 %v9532_v30  ;;  %3840 = vmatprep.subr.bf16.mxu1 %v9535_v31  ;;  %v9622_v30 = vld [vmem:[#allocation5 + $0xe04] ss:$16 sps:$4 sm:$0xff]   ;;  %v9625_v31 = vld [vmem:[#allocation5 + $0xe0c] ss:$16 sps:$4 sm:$0xff]  }
 0x2f9   :  { %3759 = vmatpush1.bf16.msra.mxu0 %v9530_v32  ;;  %3841 = vmatpush1.bf16.msra.mxu1 %v9533_v33  ;;  %v10682_v32 = vld [vmem:[#allocation7 + $0x8] sm:$0xf] }
 0x2fa   :  { %3760 = vmatprep.subr.bf16.mxu0 %v9538_v34  ;;  %3842 = vmatprep.subr.bf16.mxu1 %v9541_v35  ;;  %v2131_v33 = vrot.slane %v10682_v32, %v10647_v13  ;;  %v2135_v34 = vrot.slane %v10682_v32, %v10650_v14  ;;  %v2143_v35 = vrot.slane %v10682_v32, %v10653_v15 }
 0x2fd   :  { %3761 = vmatpush1.bf16.msra.mxu0 %v9536_v36  ;;  %3843 = vmatpush1.bf16.msra.mxu1 %v9539_v37 }
 0x2fe   :  { %3762 = vmatprep.subr.bf16.mxu0 %v9544_v38  ;;  %3844 = vmatprep.subr.bf16.mxu1 %v9547_v11 }
 0x301   :  { %3763 = vmatpush1.bf16.msra.mxu0 %v9542_v39  ;;  %3845 = vmatpush1.bf16.msra.mxu1 %v9545_v40 }
 0x302   :  { %3764 = vmatprep.subr.bf16.mxu0 %v9550_v41  ;;  %3846 = vmatprep.subr.bf16.mxu1 %v9553_v42 }
 0x305   :  { %3765 = vmatpush1.bf16.msra.mxu0 %v9548_v43  ;;  %3847 = vmatpush1.bf16.msra.mxu1 %v9551_v12 }
 0x306   :  { %3766 = vmatprep.subr.bf16.mxu0 %v9556_v44  ;;  %3848 = vmatprep.subr.bf16.mxu1 %v9559_v45 }
 0x309   :  { %3767 = vmatpush1.bf16.msra.mxu0 %v9554_v46  ;;  %3849 = vmatpush1.bf16.msra.mxu1 %v9557_v47 }
 0x30a   :  { %3768 = vmatprep.subr.bf16.mxu0 %v9562_v20  ;;  %3850 = vmatprep.subr.bf16.mxu1 %v9565_v48 }
 0x30d   :  { %3769 = vmatpush1.bf16.msra.mxu0 %v9560_v49  ;;  %3851 = vmatpush1.bf16.msra.mxu1 %v9563_v50 }
 0x30e   :  { %3770 = vmatprep.subr.bf16.mxu0 %v9568_v51  ;;  %3852 = vmatprep.subr.bf16.mxu1 %v9571_v53  ;;  %v9620_v51 = vld [vmem:[#allocation5 + $0xe00] ss:$16 sps:$4 sm:$0xff]   ;;  %v9623_v53 = vld [vmem:[#allocation5 + $0xe08] ss:$16 sps:$4 sm:$0xff]  }
 0x311   :  { %3771 = vmatpush1.bf16.msra.mxu0 %v9566_v54  ;;  %3853 = vmatpush1.bf16.msra.mxu1 %v9569_v55  ;;  %v9628_v55 = vld [vmem:[#allocation5 + $0xe24] ss:$16 sps:$4 sm:$0xff]  }
 0x312   :  { %3772 = vmatprep.subr.bf16.mxu0 %v9574_v56  ;;  %3854 = vmatprep.subr.bf16.mxu1 %v9577_v58  ;;  %v9631_v56 = vld [vmem:[#allocation5 + $0xe2c] ss:$16 sps:$4 sm:$0xff]  }
 0x315   :  { %3773 = vmatpush1.bf16.msra.mxu0 %v9572_v59  ;;  %3855 = vmatpush1.bf16.msra.mxu1 %v9575_v60  ;;  %v9626_v59 = vld [vmem:[#allocation5 + $0xe20] ss:$16 sps:$4 sm:$0xff]   ;;  %v9629_v60 = vld [vmem:[#allocation5 + $0xe28] ss:$16 sps:$4 sm:$0xff]  }
 0x316   :  { %3774 = vmatprep.subr.bf16.mxu0 %v9580_v61  ;;  %3856 = vmatprep.subr.bf16.mxu1 %v9583_v62  ;;  %v9634_v61 = vld [vmem:[#allocation5 + $0xe44] ss:$16 sps:$4 sm:$0xff]   ;;  %v9637_v62 = vld [vmem:[#allocation5 + $0xe4c] ss:$16 sps:$4 sm:$0xff]  }
 0x319   :  { %3775 = vmatpush1.bf16.msra.mxu0 %v9578_v63  ;;  %3857 = vmatpush1.bf16.msra.mxu1 %v9581_v0  ;;  %v9632_v63 = vld [vmem:[#allocation5 + $0xe40] ss:$16 sps:$4 sm:$0xff]   ;;  %v9635_v0 = vld [vmem:[#allocation5 + $0xe48] ss:$16 sps:$4 sm:$0xff]  }
 0x31a   :  { %3776 = vmatprep.subr.bf16.mxu0 %v9586_v1  ;;  %3858 = vmatprep.subr.bf16.mxu1 %v9589_v2  ;;  %v9640_v1 = vld [vmem:[#allocation5 + $0xe64] ss:$16 sps:$4 sm:$0xff]   ;;  %v9643_v2 = vld [vmem:[#allocation5 + $0xe6c] ss:$16 sps:$4 sm:$0xff]  }
 0x31d   :  { %3777 = vmatpush1.bf16.msra.mxu0 %v9584_v3  ;;  %3859 = vmatpush1.bf16.msra.mxu1 %v9587_v4  ;;  %v9638_v3 = vld [vmem:[#allocation5 + $0xe60] ss:$16 sps:$4 sm:$0xff]   ;;  %v9641_v4 = vld [vmem:[#allocation5 + $0xe68] ss:$16 sps:$4 sm:$0xff]  }
 0x31e   :  { %3778 = vmatprep.subr.bf16.mxu0 %v9592_v5  ;;  %3860 = vmatprep.subr.bf16.mxu1 %v9595_v6  ;;  %v9646_v5 = vld [vmem:[#allocation5 + $0xe84] ss:$16 sps:$4 sm:$0xff]   ;;  %v9649_v6 = vld [vmem:[#allocation5 + $0xe8c] ss:$16 sps:$4 sm:$0xff]  }
 0x321   :  { %3779 = vmatpush1.bf16.msra.mxu0 %v9590_v7  ;;  %3861 = vmatpush1.bf16.msra.mxu1 %v9593_v8  ;;  %v9644_v7 = vld [vmem:[#allocation5 + $0xe80] ss:$16 sps:$4 sm:$0xff]   ;;  %v9647_v8 = vld [vmem:[#allocation5 + $0xe88] ss:$16 sps:$4 sm:$0xff]  }
 0x322   :  { %3780 = vmatprep.subr.bf16.mxu0 %v9598_v9  ;;  %3862 = vmatprep.subr.bf16.mxu1 %v9601_v10  ;;  %v9652_v9 = vld [vmem:[#allocation5 + $0xea4] ss:$16 sps:$4 sm:$0xff]   ;;  %v9655_v10 = vld [vmem:[#allocation5 + $0xeac] ss:$16 sps:$4 sm:$0xff]  }
 0x325   :  { %3781 = vmatpush1.bf16.msra.mxu0 %v9596_v16  ;;  %3863 = vmatpush1.bf16.msra.mxu1 %v9599_v17  ;;  %v9650_v16 = vld [vmem:[#allocation5 + $0xea0] ss:$16 sps:$4 sm:$0xff]   ;;  %v9653_v17 = vld [vmem:[#allocation5 + $0xea8] ss:$16 sps:$4 sm:$0xff]  }
 0x326   :  { %3782 = vmatprep.subr.bf16.mxu0 %v9604_v18  ;;  %3864 = vmatprep.subr.bf16.mxu1 %v9607_v19  ;;  %v9658_v18 = vld [vmem:[#allocation5 + $0xec4] ss:$16 sps:$4 sm:$0xff]   ;;  %v9661_v19 = vld [vmem:[#allocation5 + $0xecc] ss:$16 sps:$4 sm:$0xff]  }
 0x329   :  { %3783 = vmatpush1.bf16.msra.mxu0 %v9602_v52  ;;  %3865 = vmatpush1.bf16.msra.mxu1 %v9605_v21  ;;  %v9656_v52 = vld [vmem:[#allocation5 + $0xec0] ss:$16 sps:$4 sm:$0xff]   ;;  %v9659_v21 = vld [vmem:[#allocation5 + $0xec8] ss:$16 sps:$4 sm:$0xff]  }
 0x32a   :  { %3784 = vmatprep.subr.bf16.mxu0 %v9610_v22  ;;  %3866 = vmatprep.subr.bf16.mxu1 %v9613_v23  ;;  %v9664_v22 = vld [vmem:[#allocation5 + $0xee4] ss:$16 sps:$4 sm:$0xff]   ;;  %v9667_v23 = vld [vmem:[#allocation5 + $0xeec] ss:$16 sps:$4 sm:$0xff]  }
 0x32d   :  { %3785 = vmatpush1.bf16.msra.mxu0 %v9608_v24  ;;  %3867 = vmatpush1.bf16.msra.mxu1 %v9611_v57  ;;  %v9662_v24 = vld [vmem:[#allocation5 + $0xee0] ss:$16 sps:$4 sm:$0xff]   ;;  %v9665_v57 = vld [vmem:[#allocation5 + $0xee8] ss:$16 sps:$4 sm:$0xff]  }
 0x32e   :  { %3786 = vmatprep.subr.bf16.mxu0 %v9616_v25  ;;  %3868 = vmatprep.subr.bf16.mxu1 %v9619_v26  ;;  %v9670_v25 = vld [vmem:[#allocation5 + $0xf04] ss:$16 sps:$4 sm:$0xff]   ;;  %v9673_v26 = vld [vmem:[#allocation5 + $0xf0c] ss:$16 sps:$4 sm:$0xff]  }
 0x331   :  { %3787 = vmatpush1.bf16.msra.mxu0 %v9614_v27  ;;  %3869 = vmatpush1.bf16.msra.mxu1 %v9617_v28  ;;  %v9668_v27 = vld [vmem:[#allocation5 + $0xf00] ss:$16 sps:$4 sm:$0xff]   ;;  %v9671_v28 = vld [vmem:[#allocation5 + $0xf08] ss:$16 sps:$4 sm:$0xff]  }
 0x332   :  { %3797 = vmatprep.subr.bf16.mxu0 %v9622_v30  ;;  %3879 = vmatprep.subr.bf16.mxu1 %v9625_v31  ;;  %v9676_v30 = vld [vmem:[#allocation5 + $0xf24] ss:$16 sps:$4 sm:$0xff]   ;;  %v9679_v31 = vld [vmem:[#allocation5 + $0xf2c] ss:$16 sps:$4 sm:$0xff]  }
 0x3c7   :  { %v2863_v36 = vpop.f32.mrb[8].mxu0  ;;  %v10690_v37 = vpop.f32.mrb[8].mxu1 }
 0x3c8   :  { %v8852_v38 = vadd.f32 %v2863_v36, %v2131_v33  ;;  %v2865_v11 = vpop.f32.mrb[9].mxu0  ;;  %v2947_v39 = vpop.f32.mrb[9].mxu1  ;;  %v9674_v33 = vld [vmem:[#allocation5 + $0xf20] ss:$16 sps:$4 sm:$0xff]   ;;  %v9685_v36 = vld [vmem:[#allocation5 + $0xf4c] ss:$16 sps:$4 sm:$0xff]  }
 0x3c9   :  { %v8853_v40 = vadd.f32 %v2865_v11, %v2135_v34  ;;  %v8855_v41 = vadd.f32 %v2947_v39, %v2143_v35  ;;  %v2867_v42 = vpop.f32.mrb[10].mxu0  ;;  %v2949_v43 = vpop.f32.mrb[10].mxu1  ;;  %v9677_v34 = vld [vmem:[#allocation5 + $0xf28] ss:$16 sps:$4 sm:$0xff]   ;;  %v9682_v35 = vld [vmem:[#allocation5 + $0xf44] ss:$16 sps:$4 sm:$0xff]  }
 0x3ca   :  { %v2952_v12 = vmul.f32 0.2, %v8852_v38  ;;  %v2868_v44 = vpop.f32.mrb[11].mxu0  ;;  %v2950_v45 = vpop.f32.mrb[11].mxu1  ;;  %v9683_v11 = vld [vmem:[#allocation5 + $0xf48] ss:$16 sps:$4 sm:$0xff]  }
 0x3cb   :  { %v2953_v46 = vmul.f32 0.2, %v8853_v40  ;;  %v2955_v47 = vmul.f32 0.2, %v8855_v41  ;;  %v9688_v39 = vld [vmem:[#allocation5 + $0xf64] ss:$16 sps:$4 sm:$0xff]  }
 0x3cc   :  { %v2956_v20 = vmax.f32 %v8852_v38, %v2952_v12  ;;  %v9680_v38 = vld [vmem:[#allocation5 + $0xf40] ss:$16 sps:$4 sm:$0xff]   ;;  %v9689_v42 = vld [vmem:[#allocation5 + $0xf68] ss:$16 sps:$4 sm:$0xff]   ;;  %v9694_v43 = vld [vmem:[#allocation5 + $0xf84] ss:$16 sps:$4 sm:$0xff]  }
 0x3cd   :  { %v2957_v48 = vmax.f32 %v8853_v40, %v2953_v46  ;;  %v2959_v49 = vmax.f32 %v8855_v41, %v2955_v47  ;;  %v9691_v40 = vld [vmem:[#allocation5 + $0xf6c] ss:$16 sps:$4 sm:$0xff]   ;;  %v9686_v41 = vld [vmem:[#allocation5 + $0xf60] ss:$16 sps:$4 sm:$0xff]   ;;  %v9695_v45 = vld [vmem:[#allocation5 + $0xf88] ss:$16 sps:$4 sm:$0xff]   ;;  %v2139_v46 = vrot.slane %v10682_v32, %v10664_v29 }
 0x3ce   :  { %v2960_v54 = vpack.c.bf16 %v2956_v20, %v2956_v20  ;;  %v9697_v12 = vld [vmem:[#allocation5 + $0xf8c] ss:$16 sps:$4 sm:$0xff]   ;;  %v9692_v44 = vld [vmem:[#allocation5 + $0xf80] ss:$16 sps:$4 sm:$0xff]   ;;  %v9700_v47 = vld [vmem:[#allocation5 + $0xfa4] ss:$16 sps:$4 sm:$0xff]  }
 0x3cf   :  { %v2961_v50 = vpack.c.bf16 %v2957_v48, %v2957_v48  ;;  %v2963_v58 = vpack.c.bf16 %v2959_v49, %v2959_v49  ;;  %v9703_v20 = vld [vmem:[#allocation5 + $0xfac] ss:$16 sps:$4 sm:$0xff]   ;;  %v9698_v48 = vld [vmem:[#allocation5 + $0xfa0] ss:$16 sps:$4 sm:$0xff]   ;;  %v9701_v49 = vld [vmem:[#allocation5 + $0xfa8] ss:$16 sps:$4 sm:$0xff]  }
 0x3d0   :  { %v9712_v32 = vld [vmem:[#allocation5 + $0xfe4] ss:$16 sps:$4 sm:$0xff]  }
 0x3d1   :  { %3788 = vmatprep.mubr.bf16.mxu0 %v2961_v50  ;;  %3870 = vmatprep.mubr.bf16.mxu1 %v2961_v50  ;;  %v8854_v50 = vadd.f32 %v10690_v37, %v2139_v46  ;;  %v9718_v37 = vld [vmem:[#allocation5 + $0x1004] ss:$16 sps:$4 sm:$0xff]   ;;  %v9779_v46 = vld [vmem:[#allocation5 + $0x1148] ss:$16 sps:$4 sm:$0xff]  }
 0x3d2   :  { %3789 = vmatmul.mubr.bf16.vlgmr.msra.gmra.mrb[12].mxu0 %v2960_v54  ;;  %3871 = vmatmul.mubr.bf16.vlgmr.msra.gmra.mrb[12].mxu1 %v2960_v54  ;;  %v9704_v54 = vld [vmem:[#allocation5 + $0xfc0] ss:$16 sps:$4 sm:$0xff]  }
 0x3d3   :  { %3798 = vmatpush1.bf16.msra.mxu0 %v9620_v51  ;;  %3880 = vmatpush1.bf16.msra.mxu1 %v9623_v53  ;;  %v9706_v51 = vld [vmem:[#allocation5 + $0xfc4] ss:$16 sps:$4 sm:$0xff]   ;;  %v9709_v53 = vld [vmem:[#allocation5 + $0xfcc] ss:$16 sps:$4 sm:$0xff]  }
 0x3d4   :  { %3829 = vmatprep.mubr.bf16.mxu0 %v2963_v58  ;;  %3911 = vmatprep.mubr.bf16.mxu1 %v2963_v58  ;;  %v9715_v58 = vld [vmem:[#allocation5 + $0xfec] ss:$16 sps:$4 sm:$0xff]  }
 0x3d5   :  { %3799 = vmatprep.subr.bf16.mxu0 %v9628_v55  ;;  %3881 = vmatprep.subr.bf16.mxu1 %v9631_v56  ;;  %v9707_v55 = vld [vmem:[#allocation5 + $0xfc8] ss:$16 sps:$4 sm:$0xff]   ;;  %v2954_v56 = vmul.f32 0.2, %v8854_v50 }
 0x3d7   :  { %3800 = vmatpush1.bf16.msra.mxu0 %v9626_v59  ;;  %3882 = vmatpush1.bf16.msra.mxu1 %v9629_v60  ;;  %v9710_v59 = vld [vmem:[#allocation5 + $0xfe0] ss:$16 sps:$4 sm:$0xff]   ;;  %v9713_v60 = vld [vmem:[#allocation5 + $0xfe8] ss:$16 sps:$4 sm:$0xff]  }
 0x3d8   :  { %3801 = vmatprep.subr.bf16.mxu0 %v9634_v61  ;;  %3883 = vmatprep.subr.bf16.mxu1 %v9637_v62  ;;  %v2958_v61 = vmax.f32 %v8854_v50, %v2954_v56  ;;  %v9721_v62 = vld [vmem:[#allocation5 + $0x100c] ss:$16 sps:$4 sm:$0xff]   ;;  %v9790_v50 = vld [vmem:[#allocation5 + $0x1184] ss:$16 sps:$4 sm:$0xff]  }
 0x3d9   :  { %v9799_v56 = vld [vmem:[#allocation5 + $0x11ac] ss:$16 sps:$4 sm:$0xff]  }
 0x3db   :  { %3802 = vmatpush1.bf16.msra.mxu0 %v9632_v63  ;;  %3884 = vmatpush1.bf16.msra.mxu1 %v9635_v0  ;;  %v9716_v63 = vld [vmem:[#allocation5 + $0x1000] ss:$16 sps:$4 sm:$0xff]   ;;  %v9719_v0 = vld [vmem:[#allocation5 + $0x1008] ss:$16 sps:$4 sm:$0xff]  }
 0x3dc   :  { %3803 = vmatprep.subr.bf16.mxu0 %v9640_v1  ;;  %3885 = vmatprep.subr.bf16.mxu1 %v9643_v2  ;;  %v2962_v1 = vpack.c.bf16 %v2958_v61, %v2958_v61  ;;  %v9724_v2 = vld [vmem:[#allocation5 + $0x1024] ss:$16 sps:$4 sm:$0xff]   ;;  %v9800_v61 = vld [vmem:[#allocation5 + $0x11c0] ss:$16 sps:$4 sm:$0xff]  }
 0x3df   :  { %3804 = vmatpush1.bf16.msra.mxu0 %v9638_v3  ;;  %3886 = vmatpush1.bf16.msra.mxu1 %v9641_v4  ;;  %v9727_v3 = vld [vmem:[#allocation5 + $0x102c] ss:$16 sps:$4 sm:$0xff]   ;;  %v9722_v4 = vld [vmem:[#allocation5 + $0x1020] ss:$16 sps:$4 sm:$0xff]  }
 0x3e0   :  { %3805 = vmatprep.subr.bf16.mxu0 %v9646_v5  ;;  %3887 = vmatprep.subr.bf16.mxu1 %v9649_v6  ;;  %v9725_v5 = vld [vmem:[#allocation5 + $0x1028] ss:$16 sps:$4 sm:$0xff]   ;;  %v9730_v6 = vld [vmem:[#allocation5 + $0x1044] ss:$16 sps:$4 sm:$0xff]  }
 0x3e3   :  { %3806 = vmatpush1.bf16.msra.mxu0 %v9644_v7  ;;  %3888 = vmatpush1.bf16.msra.mxu1 %v9647_v8  ;;  %v9733_v7 = vld [vmem:[#allocation5 + $0x104c] ss:$16 sps:$4 sm:$0xff]   ;;  %v9728_v8 = vld [vmem:[#allocation5 + $0x1040] ss:$16 sps:$4 sm:$0xff]  }
 0x3e4   :  { %3807 = vmatprep.subr.bf16.mxu0 %v9652_v9  ;;  %3889 = vmatprep.subr.bf16.mxu1 %v9655_v10  ;;  %v9731_v9 = vld [vmem:[#allocation5 + $0x1048] ss:$16 sps:$4 sm:$0xff]   ;;  %v9736_v10 = vld [vmem:[#allocation5 + $0x1064] ss:$16 sps:$4 sm:$0xff]  }
 0x3e7   :  { %3808 = vmatpush1.bf16.msra.mxu0 %v9650_v16  ;;  %3890 = vmatpush1.bf16.msra.mxu1 %v9653_v17  ;;  %v9739_v16 = vld [vmem:[#allocation5 + $0x106c] ss:$16 sps:$4 sm:$0xff]   ;;  %v9734_v17 = vld [vmem:[#allocation5 + $0x1060] ss:$16 sps:$4 sm:$0xff]  }
 0x3e8   :  { %3809 = vmatprep.subr.bf16.mxu0 %v9658_v18  ;;  %3891 = vmatprep.subr.bf16.mxu1 %v9661_v19  ;;  %v9737_v18 = vld [vmem:[#allocation5 + $0x1068] ss:$16 sps:$4 sm:$0xff]   ;;  %v9742_v19 = vld [vmem:[#allocation5 + $0x1084] ss:$16 sps:$4 sm:$0xff]  }
 0x3eb   :  { %3810 = vmatpush1.bf16.msra.mxu0 %v9656_v52  ;;  %3892 = vmatpush1.bf16.msra.mxu1 %v9659_v21  ;;  %v9745_v52 = vld [vmem:[#allocation5 + $0x108c] ss:$16 sps:$4 sm:$0xff]   ;;  %v9740_v21 = vld [vmem:[#allocation5 + $0x1080] ss:$16 sps:$4 sm:$0xff]  }
 0x3ec   :  { %3811 = vmatprep.subr.bf16.mxu0 %v9664_v22  ;;  %3893 = vmatprep.subr.bf16.mxu1 %v9667_v23  ;;  %v9743_v22 = vld [vmem:[#allocation5 + $0x1088] ss:$16 sps:$4 sm:$0xff]   ;;  %v9748_v23 = vld [vmem:[#allocation5 + $0x10a4] ss:$16 sps:$4 sm:$0xff]  }
 0x3ef   :  { %3812 = vmatpush1.bf16.msra.mxu0 %v9662_v24  ;;  %3894 = vmatpush1.bf16.msra.mxu1 %v9665_v57  ;;  %v9751_v24 = vld [vmem:[#allocation5 + $0x10ac] ss:$16 sps:$4 sm:$0xff]   ;;  %v9746_v57 = vld [vmem:[#allocation5 + $0x10a0] ss:$16 sps:$4 sm:$0xff]  }
 0x3f0   :  { %3813 = vmatprep.subr.bf16.mxu0 %v9670_v25  ;;  %3895 = vmatprep.subr.bf16.mxu1 %v9673_v26  ;;  %v9749_v25 = vld [vmem:[#allocation5 + $0x10a8] ss:$16 sps:$4 sm:$0xff]   ;;  %v9754_v26 = vld [vmem:[#allocation5 + $0x10c4] ss:$16 sps:$4 sm:$0xff]  }
 0x3f3   :  { %3814 = vmatpush1.bf16.msra.mxu0 %v9668_v27  ;;  %3896 = vmatpush1.bf16.msra.mxu1 %v9671_v28  ;;  %v9757_v27 = vld [vmem:[#allocation5 + $0x10cc] ss:$16 sps:$4 sm:$0xff]   ;;  %v9752_v28 = vld [vmem:[#allocation5 + $0x10c0] ss:$16 sps:$4 sm:$0xff]  }
 0x3f4   :  { %3815 = vmatprep.subr.bf16.mxu0 %v9676_v30  ;;  %3897 = vmatprep.subr.bf16.mxu1 %v9679_v31  ;;  %v9755_v30 = vld [vmem:[#allocation5 + $0x10c8] ss:$16 sps:$4 sm:$0xff]   ;;  %v9760_v31 = vld [vmem:[#allocation5 + $0x10e4] ss:$16 sps:$4 sm:$0xff]  }
 0x3f7   :  { %3816 = vmatpush1.bf16.msra.mxu0 %v9674_v33  ;;  %3898 = vmatpush1.bf16.msra.mxu1 %v9677_v34  ;;  %v9763_v33 = vld [vmem:[#allocation5 + $0x10ec] ss:$16 sps:$4 sm:$0xff]   ;;  %v9758_v34 = vld [vmem:[#allocation5 + $0x10e0] ss:$16 sps:$4 sm:$0xff]  }
 0x3f8   :  { %3817 = vmatprep.subr.bf16.mxu0 %v9682_v35  ;;  %3899 = vmatprep.subr.bf16.mxu1 %v9685_v36  ;;  %v9761_v35 = vld [vmem:[#allocation5 + $0x10e8] ss:$16 sps:$4 sm:$0xff]   ;;  %v9766_v36 = vld [vmem:[#allocation5 + $0x1104] ss:$16 sps:$4 sm:$0xff]  }
 0x3fb   :  { %3818 = vmatpush1.bf16.msra.mxu0 %v9680_v38  ;;  %3900 = vmatpush1.bf16.msra.mxu1 %v9683_v11  ;;  %v9769_v38 = vld [vmem:[#allocation5 + $0x110c] ss:$16 sps:$4 sm:$0xff]   ;;  %v9764_v11 = vld [vmem:[#allocation5 + $0x1100] ss:$16 sps:$4 sm:$0xff]  }
 0x3fc   :  { %3819 = vmatprep.subr.bf16.mxu0 %v9688_v39  ;;  %3901 = vmatprep.subr.bf16.mxu1 %v9691_v40  ;;  %v9767_v39 = vld [vmem:[#allocation5 + $0x1108] ss:$16 sps:$4 sm:$0xff]   ;;  %v9772_v40 = vld [vmem:[#allocation5 + $0x1124] ss:$16 sps:$4 sm:$0xff]  }
 0x3ff   :  { %3820 = vmatpush1.bf16.msra.mxu0 %v9686_v41  ;;  %3902 = vmatpush1.bf16.msra.mxu1 %v9689_v42  ;;  %v9775_v41 = vld [vmem:[#allocation5 + $0x112c] ss:$16 sps:$4 sm:$0xff]   ;;  %v9770_v42 = vld [vmem:[#allocation5 + $0x1120] ss:$16 sps:$4 sm:$0xff]  }
 0x400   :  { %3821 = vmatprep.subr.bf16.mxu0 %v9694_v43  ;;  %3903 = vmatprep.subr.bf16.mxu1 %v9697_v12  ;;  %v9773_v43 = vld [vmem:[#allocation5 + $0x1128] ss:$16 sps:$4 sm:$0xff]   ;;  %v9778_v12 = vld [vmem:[#allocation5 + $0x1144] ss:$16 sps:$4 sm:$0xff]  }
 0x403   :  { %3822 = vmatpush1.bf16.msra.mxu0 %v9692_v44  ;;  %3904 = vmatpush1.bf16.msra.mxu1 %v9695_v45  ;;  %v9781_v44 = vld [vmem:[#allocation5 + $0x114c] ss:$16 sps:$4 sm:$0xff]   ;;  %v9776_v45 = vld [vmem:[#allocation5 + $0x1140] ss:$16 sps:$4 sm:$0xff]  }
 0x404   :  { %3823 = vmatprep.subr.bf16.mxu0 %v9700_v47  ;;  %3905 = vmatprep.subr.bf16.mxu1 %v9703_v20  ;;  %v9784_v47 = vld [vmem:[#allocation5 + $0x1164] ss:$16 sps:$4 sm:$0xff]   ;;  %v9787_v20 = vld [vmem:[#allocation5 + $0x116c] ss:$16 sps:$4 sm:$0xff]  }
 0x407   :  { %3824 = vmatpush1.bf16.msra.mxu0 %v9698_v48  ;;  %3906 = vmatpush1.bf16.msra.mxu1 %v9701_v49  ;;  %v9782_v48 = vld [vmem:[#allocation5 + $0x1160] ss:$16 sps:$4 sm:$0xff]   ;;  %v9785_v49 = vld [vmem:[#allocation5 + $0x1168] ss:$16 sps:$4 sm:$0xff]  }
 0x408   :  { %3825 = vmatprep.subr.bf16.mxu0 %v9706_v51  ;;  %3907 = vmatprep.subr.bf16.mxu1 %v9709_v53  ;;  %v9793_v51 = vld [vmem:[#allocation5 + $0x118c] ss:$16 sps:$4 sm:$0xff]   ;;  %v9788_v53 = vld [vmem:[#allocation5 + $0x1180] ss:$16 sps:$4 sm:$0xff]  }
 0x40b   :  { %3826 = vmatpush1.bf16.msra.mxu0 %v9704_v54  ;;  %3908 = vmatpush1.bf16.msra.mxu1 %v9707_v55  ;;  %v9791_v54 = vld [vmem:[#allocation5 + $0x1188] ss:$16 sps:$4 sm:$0xff]   ;;  %v9796_v55 = vld [vmem:[#allocation5 + $0x11a4] ss:$16 sps:$4 sm:$0xff]  }
 0x40c   :  { %3827 = vmatprep.subr.bf16.mxu0 %v9712_v32  ;;  %3909 = vmatprep.subr.bf16.mxu1 %v9715_v58  ;;  %v9794_v32 = vld [vmem:[#allocation5 + $0x11a0] ss:$16 sps:$4 sm:$0xff]   ;;  %v9797_v58 = vld [vmem:[#allocation5 + $0x11a8] ss:$16 sps:$4 sm:$0xff]  }
 0x40f   :  { %3828 = vmatpush1.bf16.msra.mxu0 %v9710_v59  ;;  %3910 = vmatpush1.bf16.msra.mxu1 %v9713_v60  ;;  %v9802_v59 = vld [vmem:[#allocation5 + $0x11c4] ss:$16 sps:$4 sm:$0xff]   ;;  %v9805_v60 = vld [vmem:[#allocation5 + $0x11cc] ss:$16 sps:$4 sm:$0xff]  }
 0x410   :  { %4724 = vmatprep.subr.bf16.mxu0 %v9718_v37  ;;  %4806 = vmatprep.subr.bf16.mxu1 %v9721_v62  ;;  %v9803_v37 = vld [vmem:[#allocation5 + $0x11c8] ss:$16 sps:$4 sm:$0xff]   ;;  %v9808_v62 = vld [vmem:[#allocation5 + $0x11e4] ss:$16 sps:$4 sm:$0xff]  }
 0x412   :  { %3830 = vmatmul.mubr.bf16.vlgmr.msra.gmra.mrb[12].mxu0 %v2962_v1  ;;  %3912 = vmatmul.mubr.bf16.vlgmr.msra.gmra.mrb[12].mxu1 %v2962_v1  ;;  %v9809_v1 = vld [vmem:[#allocation5 + $0x11e8] ss:$16 sps:$4 sm:$0xff]  }
 0x413   :  { %4725 = vmatpush1.bf16.msra.mxu0 %v9716_v63  ;;  %4807 = vmatpush1.bf16.msra.mxu1 %v9719_v0  ;;  %v9811_v63 = vld [vmem:[#allocation5 + $0x11ec] ss:$16 sps:$4 sm:$0xff]   ;;  %v9806_v0 = vld [vmem:[#allocation5 + $0x11e0] ss:$16 sps:$4 sm:$0xff]  }
 0x414   :  { %4726 = vmatprep.subr.bf16.mxu0 %v9724_v2  ;;  %4808 = vmatprep.subr.bf16.mxu1 %v9727_v3  ;;  %v9814_v2 = vld [vmem:[#allocation5 + $0x1204] ss:$16 sps:$4 sm:$0xff]   ;;  %v9817_v3 = vld [vmem:[#allocation5 + $0x120c] ss:$16 sps:$4 sm:$0xff]  }
 0x417   :  { %4727 = vmatpush1.bf16.msra.mxu0 %v9722_v4  ;;  %4809 = vmatpush1.bf16.msra.mxu1 %v9725_v5  ;;  %v10695_v4 = vld [vmem:[#allocation7 + $0xc] sm:$0xf] }
 0x418   :  { %4728 = vmatprep.subr.bf16.mxu0 %v9730_v6  ;;  %4810 = vmatprep.subr.bf16.mxu1 %v9733_v7  ;;  %v3099_v5 = vrot.slane %v10695_v4, %v10647_v13  ;;  %v3103_v6 = vrot.slane %v10695_v4, %v10650_v14  ;;  %v3111_v7 = vrot.slane %v10695_v4, %v10653_v15 }
 0x41b   :  { %4729 = vmatpush1.bf16.msra.mxu0 %v9728_v8  ;;  %4811 = vmatpush1.bf16.msra.mxu1 %v9731_v9 }
 0x41c   :  { %4730 = vmatprep.subr.bf16.mxu0 %v9736_v10  ;;  %4812 = vmatprep.subr.bf16.mxu1 %v9739_v16 }
 0x41f   :  { %4731 = vmatpush1.bf16.msra.mxu0 %v9734_v17  ;;  %4813 = vmatpush1.bf16.msra.mxu1 %v9737_v18 }
 0x420   :  { %4732 = vmatprep.subr.bf16.mxu0 %v9742_v19  ;;  %4814 = vmatprep.subr.bf16.mxu1 %v9745_v52 }
 0x423   :  { %4733 = vmatpush1.bf16.msra.mxu0 %v9740_v21  ;;  %4815 = vmatpush1.bf16.msra.mxu1 %v9743_v22 }
 0x424   :  { %4734 = vmatprep.subr.bf16.mxu0 %v9748_v23  ;;  %4816 = vmatprep.subr.bf16.mxu1 %v9751_v24 }
 0x427   :  { %4735 = vmatpush1.bf16.msra.mxu0 %v9746_v57  ;;  %4817 = vmatpush1.bf16.msra.mxu1 %v9749_v25 }
 0x428   :  { %4736 = vmatprep.subr.bf16.mxu0 %v9754_v26  ;;  %4818 = vmatprep.subr.bf16.mxu1 %v9757_v27 }
 0x42b   :  { %4737 = vmatpush1.bf16.msra.mxu0 %v9752_v28  ;;  %4819 = vmatpush1.bf16.msra.mxu1 %v9755_v30 }
 0x42c   :  { %4738 = vmatprep.subr.bf16.mxu0 %v9760_v31  ;;  %4820 = vmatprep.subr.bf16.mxu1 %v9763_v33  ;;  %v9812_v31 = vld [vmem:[#allocation5 + $0x1200] ss:$16 sps:$4 sm:$0xff]   ;;  %v9815_v33 = vld [vmem:[#allocation5 + $0x1208] ss:$16 sps:$4 sm:$0xff]  }
 0x42f   :  { %4739 = vmatpush1.bf16.msra.mxu0 %v9758_v34  ;;  %4821 = vmatpush1.bf16.msra.mxu1 %v9761_v35  ;;  %v9820_v35 = vld [vmem:[#allocation5 + $0x1224] ss:$16 sps:$4 sm:$0xff]  }
 0x430   :  { %4740 = vmatprep.subr.bf16.mxu0 %v9766_v36  ;;  %4822 = vmatprep.subr.bf16.mxu1 %v9769_v38  ;;  %v9823_v36 = vld [vmem:[#allocation5 + $0x122c] ss:$16 sps:$4 sm:$0xff]  }
 0x433   :  { %4741 = vmatpush1.bf16.msra.mxu0 %v9764_v11  ;;  %4823 = vmatpush1.bf16.msra.mxu1 %v9767_v39  ;;  %v9818_v11 = vld [vmem:[#allocation5 + $0x1220] ss:$16 sps:$4 sm:$0xff]   ;;  %v9821_v39 = vld [vmem:[#allocation5 + $0x1228] ss:$16 sps:$4 sm:$0xff]  }
 0x434   :  { %4742 = vmatprep.subr.bf16.mxu0 %v9772_v40  ;;  %4824 = vmatprep.subr.bf16.mxu1 %v9775_v41  ;;  %v9826_v40 = vld [vmem:[#allocation5 + $0x1244] ss:$16 sps:$4 sm:$0xff]   ;;  %v9829_v41 = vld [vmem:[#allocation5 + $0x124c] ss:$16 sps:$4 sm:$0xff]  }
 0x437   :  { %4743 = vmatpush1.bf16.msra.mxu0 %v9770_v42  ;;  %4825 = vmatpush1.bf16.msra.mxu1 %v9773_v43  ;;  %v9824_v42 = vld [vmem:[#allocation5 + $0x1240] ss:$16 sps:$4 sm:$0xff]   ;;  %v9827_v43 = vld [vmem:[#allocation5 + $0x1248] ss:$16 sps:$4 sm:$0xff]  }
 0x438   :  { %4744 = vmatprep.subr.bf16.mxu0 %v9778_v12  ;;  %4826 = vmatprep.subr.bf16.mxu1 %v9781_v44  ;;  %v9832_v12 = vld [vmem:[#allocation5 + $0x1264] ss:$16 sps:$4 sm:$0xff]   ;;  %v9835_v44 = vld [vmem:[#allocation5 + $0x126c] ss:$16 sps:$4 sm:$0xff]  }
 0x43b   :  { %4745 = vmatpush1.bf16.msra.mxu0 %v9776_v45  ;;  %4827 = vmatpush1.bf16.msra.mxu1 %v9779_v46  ;;  %v9830_v45 = vld [vmem:[#allocation5 + $0x1260] ss:$16 sps:$4 sm:$0xff]   ;;  %v9833_v46 = vld [vmem:[#allocation5 + $0x1268] ss:$16 sps:$4 sm:$0xff]  }
 0x43c   :  { %4746 = vmatprep.subr.bf16.mxu0 %v9784_v47  ;;  %4828 = vmatprep.subr.bf16.mxu1 %v9787_v20  ;;  %v9838_v47 = vld [vmem:[#allocation5 + $0x1284] ss:$16 sps:$4 sm:$0xff]   ;;  %v9841_v20 = vld [vmem:[#allocation5 + $0x128c] ss:$16 sps:$4 sm:$0xff]  }
 0x43f   :  { %4747 = vmatpush1.bf16.msra.mxu0 %v9782_v48  ;;  %4829 = vmatpush1.bf16.msra.mxu1 %v9785_v49  ;;  %v9836_v48 = vld [vmem:[#allocation5 + $0x1280] ss:$16 sps:$4 sm:$0xff]   ;;  %v9839_v49 = vld [vmem:[#allocation5 + $0x1288] ss:$16 sps:$4 sm:$0xff]  }
 0x440   :  { %4748 = vmatprep.subr.bf16.mxu0 %v9790_v50  ;;  %4830 = vmatprep.subr.bf16.mxu1 %v9793_v51  ;;  %v9844_v50 = vld [vmem:[#allocation5 + $0x12a4] ss:$16 sps:$4 sm:$0xff]   ;;  %v9847_v51 = vld [vmem:[#allocation5 + $0x12ac] ss:$16 sps:$4 sm:$0xff]  }
 0x443   :  { %4749 = vmatpush1.bf16.msra.mxu0 %v9788_v53  ;;  %4831 = vmatpush1.bf16.msra.mxu1 %v9791_v54  ;;  %v9842_v53 = vld [vmem:[#allocation5 + $0x12a0] ss:$16 sps:$4 sm:$0xff]   ;;  %v9845_v54 = vld [vmem:[#allocation5 + $0x12a8] ss:$16 sps:$4 sm:$0xff]  }
 0x444   :  { %4750 = vmatprep.subr.bf16.mxu0 %v9796_v55  ;;  %4832 = vmatprep.subr.bf16.mxu1 %v9799_v56  ;;  %v9850_v55 = vld [vmem:[#allocation5 + $0x12c4] ss:$16 sps:$4 sm:$0xff]   ;;  %v9853_v56 = vld [vmem:[#allocation5 + $0x12cc] ss:$16 sps:$4 sm:$0xff]  }
 0x447   :  { %4751 = vmatpush1.bf16.msra.mxu0 %v9794_v32  ;;  %4833 = vmatpush1.bf16.msra.mxu1 %v9797_v58  ;;  %v9848_v32 = vld [vmem:[#allocation5 + $0x12c0] ss:$16 sps:$4 sm:$0xff]   ;;  %v9851_v58 = vld [vmem:[#allocation5 + $0x12c8] ss:$16 sps:$4 sm:$0xff]  }
 0x448   :  { %4752 = vmatprep.subr.bf16.mxu0 %v9802_v59  ;;  %4834 = vmatprep.subr.bf16.mxu1 %v9805_v60  ;;  %v9856_v59 = vld [vmem:[#allocation5 + $0x12e4] ss:$16 sps:$4 sm:$0xff]   ;;  %v9859_v60 = vld [vmem:[#allocation5 + $0x12ec] ss:$16 sps:$4 sm:$0xff]  }
 0x44b   :  { %4753 = vmatpush1.bf16.msra.mxu0 %v9800_v61  ;;  %4835 = vmatpush1.bf16.msra.mxu1 %v9803_v37  ;;  %v9854_v61 = vld [vmem:[#allocation5 + $0x12e0] ss:$16 sps:$4 sm:$0xff]   ;;  %v9857_v37 = vld [vmem:[#allocation5 + $0x12e8] ss:$16 sps:$4 sm:$0xff]  }
 0x44c   :  { %4754 = vmatprep.subr.bf16.mxu0 %v9808_v62  ;;  %4836 = vmatprep.subr.bf16.mxu1 %v9811_v63  ;;  %v9862_v62 = vld [vmem:[#allocation5 + $0x1304] ss:$16 sps:$4 sm:$0xff]   ;;  %v9865_v63 = vld [vmem:[#allocation5 + $0x130c] ss:$16 sps:$4 sm:$0xff]  }
 0x44f   :  { %4755 = vmatpush1.bf16.msra.mxu0 %v9806_v0  ;;  %4837 = vmatpush1.bf16.msra.mxu1 %v9809_v1  ;;  %v9860_v0 = vld [vmem:[#allocation5 + $0x1300] ss:$16 sps:$4 sm:$0xff]   ;;  %v9863_v1 = vld [vmem:[#allocation5 + $0x1308] ss:$16 sps:$4 sm:$0xff]  }
 0x450   :  { %4765 = vmatprep.subr.bf16.mxu0 %v9814_v2  ;;  %4847 = vmatprep.subr.bf16.mxu1 %v9817_v3  ;;  %v9868_v2 = vld [vmem:[#allocation5 + $0x1324] ss:$16 sps:$4 sm:$0xff]   ;;  %v9871_v3 = vld [vmem:[#allocation5 + $0x132c] ss:$16 sps:$4 sm:$0xff]  }
 0x4e5   :  { %v3831_v8 = vpop.f32.mrb[12].mxu0  ;;  %v10703_v9 = vpop.f32.mrb[12].mxu1 }
 0x4e6   :  { %v8856_v10 = vadd.f32 %v3831_v8, %v3099_v5  ;;  %v3833_v16 = vpop.f32.mrb[13].mxu0  ;;  %v3915_v17 = vpop.f32.mrb[13].mxu1  ;;  %v9866_v5 = vld [vmem:[#allocation5 + $0x1320] ss:$16 sps:$4 sm:$0xff]   ;;  %v9877_v8 = vld [vmem:[#allocation5 + $0x134c] ss:$16 sps:$4 sm:$0xff]  }
 0x4e7   :  { %v8857_v18 = vadd.f32 %v3833_v16, %v3103_v6  ;;  %v8859_v19 = vadd.f32 %v3915_v17, %v3111_v7  ;;  %v3835_v52 = vpop.f32.mrb[14].mxu0  ;;  %v3917_v21 = vpop.f32.mrb[14].mxu1  ;;  %v9869_v6 = vld [vmem:[#allocation5 + $0x1328] ss:$16 sps:$4 sm:$0xff]   ;;  %v9874_v7 = vld [vmem:[#allocation5 + $0x1344] ss:$16 sps:$4 sm:$0xff]  }
 0x4e8   :  { %v3920_v22 = vmul.f32 0.2, %v8856_v10  ;;  %v3836_v23 = vpop.f32.mrb[15].mxu0  ;;  %v3918_v24 = vpop.f32.mrb[15].mxu1  ;;  %v9875_v16 = vld [vmem:[#allocation5 + $0x1348] ss:$16 sps:$4 sm:$0xff]  }
 0x4e9   :  { %v3921_v57 = vmul.f32 0.2, %v8857_v18  ;;  %v3923_v25 = vmul.f32 0.2, %v8859_v19  ;;  %v9880_v17 = vld [vmem:[#allocation5 + $0x1364] ss:$16 sps:$4 sm:$0xff]  }
 0x4ea   :  { %v3924_v26 = vmax.f32 %v8856_v10, %v3920_v22  ;;  %v9872_v10 = vld [vmem:[#allocation5 + $0x1340] ss:$16 sps:$4 sm:$0xff]   ;;  %v9881_v52 = vld [vmem:[#allocation5 + $0x1368] ss:$16 sps:$4 sm:$0xff]   ;;  %v9886_v21 = vld [vmem:[#allocation5 + $0x1384] ss:$16 sps:$4 sm:$0xff]  }
 0x4eb   :  { %v3925_v27 = vmax.f32 %v8857_v18, %v3921_v57  ;;  %v3927_v28 = vmax.f32 %v8859_v19, %v3923_v25  ;;  %v9883_v18 = vld [vmem:[#allocation5 + $0x136c] ss:$16 sps:$4 sm:$0xff]   ;;  %v9878_v19 = vld [vmem:[#allocation5 + $0x1360] ss:$16 sps:$4 sm:$0xff]   ;;  %v9887_v24 = vld [vmem:[#allocation5 + $0x1388] ss:$16 sps:$4 sm:$0xff]   ;;  %v3107_v57 = vrot.slane %v10695_v4, %v10664_v29 }
 0x4ec   :  { %v3928_v34 = vpack.c.bf16 %v3924_v26, %v3924_v26  ;;  %v9889_v22 = vld [vmem:[#allocation5 + $0x138c] ss:$16 sps:$4 sm:$0xff]   ;;  %v9884_v23 = vld [vmem:[#allocation5 + $0x1380] ss:$16 sps:$4 sm:$0xff]   ;;  %v9892_v25 = vld [vmem:[#allocation5 + $0x13a4] ss:$16 sps:$4 sm:$0xff]  }
 0x4ed   :  { %v3929_v30 = vpack.c.bf16 %v3925_v27, %v3925_v27  ;;  %v3931_v38 = vpack.c.bf16 %v3927_v28, %v3927_v28  ;;  %v9895_v26 = vld [vmem:[#allocation5 + $0x13ac] ss:$16 sps:$4 sm:$0xff]   ;;  %v9890_v27 = vld [vmem:[#allocation5 + $0x13a0] ss:$16 sps:$4 sm:$0xff]   ;;  %v9893_v28 = vld [vmem:[#allocation5 + $0x13a8] ss:$16 sps:$4 sm:$0xff]  }
 0x4ee   :  { %v9904_v4 = vld [vmem:[#allocation5 + $0x13e4] ss:$16 sps:$4 sm:$0xff]  }
 0x4ef   :  { %4756 = vmatprep.mubr.bf16.mxu0 %v3929_v30  ;;  %4838 = vmatprep.mubr.bf16.mxu1 %v3929_v30  ;;  %v8858_v30 = vadd.f32 %v10703_v9, %v3107_v57  ;;  %v9910_v9 = vld [vmem:[#allocation5 + $0x1404] ss:$16 sps:$4 sm:$0xff]   ;;  %v9971_v57 = vld [vmem:[#allocation5 + $0x1548] ss:$16 sps:$4 sm:$0xff]  }
 0x4f0   :  { %4757 = vmatmul.mubr.bf16.vlgmr.msra.gmra.mrb[16].mxu0 %v3928_v34  ;;  %4839 = vmatmul.mubr.bf16.vlgmr.msra.gmra.mrb[16].mxu1 %v3928_v34  ;;  %v9896_v34 = vld [vmem:[#allocation5 + $0x13c0] ss:$16 sps:$4 sm:$0xff]  }
 0x4f1   :  { %4766 = vmatpush1.bf16.msra.mxu0 %v9812_v31  ;;  %4848 = vmatpush1.bf16.msra.mxu1 %v9815_v33  ;;  %v9898_v31 = vld [vmem:[#allocation5 + $0x13c4] ss:$16 sps:$4 sm:$0xff]   ;;  %v9901_v33 = vld [vmem:[#allocation5 + $0x13cc] ss:$16 sps:$4 sm:$0xff]  }
 0x4f2   :  { %4797 = vmatprep.mubr.bf16.mxu0 %v3931_v38  ;;  %4879 = vmatprep.mubr.bf16.mxu1 %v3931_v38  ;;  %v9907_v38 = vld [vmem:[#allocation5 + $0x13ec] ss:$16 sps:$4 sm:$0xff]  }
 0x4f3   :  { %4767 = vmatprep.subr.bf16.mxu0 %v9820_v35  ;;  %4849 = vmatprep.subr.bf16.mxu1 %v9823_v36  ;;  %v9899_v35 = vld [vmem:[#allocation5 + $0x13c8] ss:$16 sps:$4 sm:$0xff]   ;;  %v3922_v36 = vmul.f32 0.2, %v8858_v30 }
 0x4f5   :  { %4768 = vmatpush1.bf16.msra.mxu0 %v9818_v11  ;;  %4850 = vmatpush1.bf16.msra.mxu1 %v9821_v39  ;;  %v9902_v11 = vld [vmem:[#allocation5 + $0x13e0] ss:$16 sps:$4 sm:$0xff]   ;;  %v9905_v39 = vld [vmem:[#allocation5 + $0x13e8] ss:$16 sps:$4 sm:$0xff]  }
 0x4f6   :  { %4769 = vmatprep.subr.bf16.mxu0 %v9826_v40  ;;  %4851 = vmatprep.subr.bf16.mxu1 %v9829_v41  ;;  %v3926_v40 = vmax.f32 %v8858_v30, %v3922_v36  ;;  %v9913_v41 = vld [vmem:[#allocation5 + $0x140c] ss:$16 sps:$4 sm:$0xff]   ;;  %v9982_v30 = vld [vmem:[#allocation5 + $0x1584] ss:$16 sps:$4 sm:$0xff]  }
 0x4f7   :  { %v9991_v36 = vld [vmem:[#allocation5 + $0x15ac] ss:$16 sps:$4 sm:$0xff]  }
 0x4f9   :  { %4770 = vmatpush1.bf16.msra.mxu0 %v9824_v42  ;;  %4852 = vmatpush1.bf16.msra.mxu1 %v9827_v43  ;;  %v9908_v42 = vld [vmem:[#allocation5 + $0x1400] ss:$16 sps:$4 sm:$0xff]   ;;  %v9911_v43 = vld [vmem:[#allocation5 + $0x1408] ss:$16 sps:$4 sm:$0xff]  }
 0x4fa   :  { %4771 = vmatprep.subr.bf16.mxu0 %v9832_v12  ;;  %4853 = vmatprep.subr.bf16.mxu1 %v9835_v44  ;;  %v3930_v12 = vpack.c.bf16 %v3926_v40, %v3926_v40  ;;  %v9916_v44 = vld [vmem:[#allocation5 + $0x1424] ss:$16 sps:$4 sm:$0xff]   ;;  %v9992_v40 = vld [vmem:[#allocation5 + $0x15c0] ss:$16 sps:$4 sm:$0xff]  }
 0x4fd   :  { %4772 = vmatpush1.bf16.msra.mxu0 %v9830_v45  ;;  %4854 = vmatpush1.bf16.msra.mxu1 %v9833_v46  ;;  %v9919_v45 = vld [vmem:[#allocation5 + $0x142c] ss:$16 sps:$4 sm:$0xff]   ;;  %v9914_v46 = vld [vmem:[#allocation5 + $0x1420] ss:$16 sps:$4 sm:$0xff]  }
 0x4fe   :  { %4773 = vmatprep.subr.bf16.mxu0 %v9838_v47  ;;  %4855 = vmatprep.subr.bf16.mxu1 %v9841_v20  ;;  %v9917_v47 = vld [vmem:[#allocation5 + $0x1428] ss:$16 sps:$4 sm:$0xff]   ;;  %v9922_v20 = vld [vmem:[#allocation5 + $0x1444] ss:$16 sps:$4 sm:$0xff]  }
 0x501   :  { %4774 = vmatpush1.bf16.msra.mxu0 %v9836_v48  ;;  %4856 = vmatpush1.bf16.msra.mxu1 %v9839_v49  ;;  %v9925_v48 = vld [vmem:[#allocation5 + $0x144c] ss:$16 sps:$4 sm:$0xff]   ;;  %v9920_v49 = vld [vmem:[#allocation5 + $0x1440] ss:$16 sps:$4 sm:$0xff]  }
 0x502   :  { %4775 = vmatprep.subr.bf16.mxu0 %v9844_v50  ;;  %4857 = vmatprep.subr.bf16.mxu1 %v9847_v51  ;;  %v9923_v50 = vld [vmem:[#allocation5 + $0x1448] ss:$16 sps:$4 sm:$0xff]   ;;  %v9928_v51 = vld [vmem:[#allocation5 + $0x1464] ss:$16 sps:$4 sm:$0xff]  }
 0x505   :  { %4776 = vmatpush1.bf16.msra.mxu0 %v9842_v53  ;;  %4858 = vmatpush1.bf16.msra.mxu1 %v9845_v54  ;;  %v9931_v53 = vld [vmem:[#allocation5 + $0x146c] ss:$16 sps:$4 sm:$0xff]   ;;  %v9926_v54 = vld [vmem:[#allocation5 + $0x1460] ss:$16 sps:$4 sm:$0xff]  }
 0x506   :  { %4777 = vmatprep.subr.bf16.mxu0 %v9850_v55  ;;  %4859 = vmatprep.subr.bf16.mxu1 %v9853_v56  ;;  %v9929_v55 = vld [vmem:[#allocation5 + $0x1468] ss:$16 sps:$4 sm:$0xff]   ;;  %v9934_v56 = vld [vmem:[#allocation5 + $0x1484] ss:$16 sps:$4 sm:$0xff]  }
 0x509   :  { %4778 = vmatpush1.bf16.msra.mxu0 %v9848_v32  ;;  %4860 = vmatpush1.bf16.msra.mxu1 %v9851_v58  ;;  %v9937_v32 = vld [vmem:[#allocation5 + $0x148c] ss:$16 sps:$4 sm:$0xff]   ;;  %v9932_v58 = vld [vmem:[#allocation5 + $0x1480] ss:$16 sps:$4 sm:$0xff]  }
 0x50a   :  { %4779 = vmatprep.subr.bf16.mxu0 %v9856_v59  ;;  %4861 = vmatprep.subr.bf16.mxu1 %v9859_v60  ;;  %v9935_v59 = vld [vmem:[#allocation5 + $0x1488] ss:$16 sps:$4 sm:$0xff]   ;;  %v9940_v60 = vld [vmem:[#allocation5 + $0x14a4] ss:$16 sps:$4 sm:$0xff]  }
 0x50d   :  { %4780 = vmatpush1.bf16.msra.mxu0 %v9854_v61  ;;  %4862 = vmatpush1.bf16.msra.mxu1 %v9857_v37  ;;  %v9943_v61 = vld [vmem:[#allocation5 + $0x14ac] ss:$16 sps:$4 sm:$0xff]   ;;  %v9938_v37 = vld [vmem:[#allocation5 + $0x14a0] ss:$16 sps:$4 sm:$0xff]  }
 0x50e   :  { %4781 = vmatprep.subr.bf16.mxu0 %v9862_v62  ;;  %4863 = vmatprep.subr.bf16.mxu1 %v9865_v63  ;;  %v9941_v62 = vld [vmem:[#allocation5 + $0x14a8] ss:$16 sps:$4 sm:$0xff]   ;;  %v9946_v63 = vld [vmem:[#allocation5 + $0x14c4] ss:$16 sps:$4 sm:$0xff]  }
 0x511   :  { %4782 = vmatpush1.bf16.msra.mxu0 %v9860_v0  ;;  %4864 = vmatpush1.bf16.msra.mxu1 %v9863_v1  ;;  %v9949_v0 = vld [vmem:[#allocation5 + $0x14cc] ss:$16 sps:$4 sm:$0xff]   ;;  %v9944_v1 = vld [vmem:[#allocation5 + $0x14c0] ss:$16 sps:$4 sm:$0xff]  }
 0x512   :  { %4783 = vmatprep.subr.bf16.mxu0 %v9868_v2  ;;  %4865 = vmatprep.subr.bf16.mxu1 %v9871_v3  ;;  %v9947_v2 = vld [vmem:[#allocation5 + $0x14c8] ss:$16 sps:$4 sm:$0xff]   ;;  %v9952_v3 = vld [vmem:[#allocation5 + $0x14e4] ss:$16 sps:$4 sm:$0xff]  }
 0x515   :  { %4784 = vmatpush1.bf16.msra.mxu0 %v9866_v5  ;;  %4866 = vmatpush1.bf16.msra.mxu1 %v9869_v6  ;;  %v9955_v5 = vld [vmem:[#allocation5 + $0x14ec] ss:$16 sps:$4 sm:$0xff]   ;;  %v9950_v6 = vld [vmem:[#allocation5 + $0x14e0] ss:$16 sps:$4 sm:$0xff]  }
 0x516   :  { %4785 = vmatprep.subr.bf16.mxu0 %v9874_v7  ;;  %4867 = vmatprep.subr.bf16.mxu1 %v9877_v8  ;;  %v9953_v7 = vld [vmem:[#allocation5 + $0x14e8] ss:$16 sps:$4 sm:$0xff]   ;;  %v9958_v8 = vld [vmem:[#allocation5 + $0x1504] ss:$16 sps:$4 sm:$0xff]  }
 0x519   :  { %4786 = vmatpush1.bf16.msra.mxu0 %v9872_v10  ;;  %4868 = vmatpush1.bf16.msra.mxu1 %v9875_v16  ;;  %v9961_v10 = vld [vmem:[#allocation5 + $0x150c] ss:$16 sps:$4 sm:$0xff]   ;;  %v9956_v16 = vld [vmem:[#allocation5 + $0x1500] ss:$16 sps:$4 sm:$0xff]  }
 0x51a   :  { %4787 = vmatprep.subr.bf16.mxu0 %v9880_v17  ;;  %4869 = vmatprep.subr.bf16.mxu1 %v9883_v18  ;;  %v9959_v17 = vld [vmem:[#allocation5 + $0x1508] ss:$16 sps:$4 sm:$0xff]   ;;  %v9964_v18 = vld [vmem:[#allocation5 + $0x1524] ss:$16 sps:$4 sm:$0xff]  }
 0x51d   :  { %4788 = vmatpush1.bf16.msra.mxu0 %v9878_v19  ;;  %4870 = vmatpush1.bf16.msra.mxu1 %v9881_v52  ;;  %v9967_v19 = vld [vmem:[#allocation5 + $0x152c] ss:$16 sps:$4 sm:$0xff]   ;;  %v9962_v52 = vld [vmem:[#allocation5 + $0x1520] ss:$16 sps:$4 sm:$0xff]  }
 0x51e   :  { %4789 = vmatprep.subr.bf16.mxu0 %v9886_v21  ;;  %4871 = vmatprep.subr.bf16.mxu1 %v9889_v22  ;;  %v9965_v21 = vld [vmem:[#allocation5 + $0x1528] ss:$16 sps:$4 sm:$0xff]   ;;  %v9970_v22 = vld [vmem:[#allocation5 + $0x1544] ss:$16 sps:$4 sm:$0xff]  }
 0x521   :  { %4790 = vmatpush1.bf16.msra.mxu0 %v9884_v23  ;;  %4872 = vmatpush1.bf16.msra.mxu1 %v9887_v24  ;;  %v9973_v23 = vld [vmem:[#allocation5 + $0x154c] ss:$16 sps:$4 sm:$0xff]   ;;  %v9968_v24 = vld [vmem:[#allocation5 + $0x1540] ss:$16 sps:$4 sm:$0xff]  }
 0x522   :  { %4791 = vmatprep.subr.bf16.mxu0 %v9892_v25  ;;  %4873 = vmatprep.subr.bf16.mxu1 %v9895_v26  ;;  %v9976_v25 = vld [vmem:[#allocation5 + $0x1564] ss:$16 sps:$4 sm:$0xff]   ;;  %v9979_v26 = vld [vmem:[#allocation5 + $0x156c] ss:$16 sps:$4 sm:$0xff]  }
 0x525   :  { %4792 = vmatpush1.bf16.msra.mxu0 %v9890_v27  ;;  %4874 = vmatpush1.bf16.msra.mxu1 %v9893_v28  ;;  %v9974_v27 = vld [vmem:[#allocation5 + $0x1560] ss:$16 sps:$4 sm:$0xff]   ;;  %v9977_v28 = vld [vmem:[#allocation5 + $0x1568] ss:$16 sps:$4 sm:$0xff]  }
 0x526   :  { %4793 = vmatprep.subr.bf16.mxu0 %v9898_v31  ;;  %4875 = vmatprep.subr.bf16.mxu1 %v9901_v33  ;;  %v9985_v31 = vld [vmem:[#allocation5 + $0x158c] ss:$16 sps:$4 sm:$0xff]   ;;  %v9980_v33 = vld [vmem:[#allocation5 + $0x1580] ss:$16 sps:$4 sm:$0xff]  }
 0x529   :  { %4794 = vmatpush1.bf16.msra.mxu0 %v9896_v34  ;;  %4876 = vmatpush1.bf16.msra.mxu1 %v9899_v35  ;;  %v9983_v34 = vld [vmem:[#allocation5 + $0x1588] ss:$16 sps:$4 sm:$0xff]   ;;  %v9988_v35 = vld [vmem:[#allocation5 + $0x15a4] ss:$16 sps:$4 sm:$0xff]  }
 0x52a   :  { %4795 = vmatprep.subr.bf16.mxu0 %v9904_v4  ;;  %4877 = vmatprep.subr.bf16.mxu1 %v9907_v38  ;;  %v9986_v4 = vld [vmem:[#allocation5 + $0x15a0] ss:$16 sps:$4 sm:$0xff]   ;;  %v9989_v38 = vld [vmem:[#allocation5 + $0x15a8] ss:$16 sps:$4 sm:$0xff]  }
 0x52d   :  { %4796 = vmatpush1.bf16.msra.mxu0 %v9902_v11  ;;  %4878 = vmatpush1.bf16.msra.mxu1 %v9905_v39  ;;  %v9994_v11 = vld [vmem:[#allocation5 + $0x15c4] ss:$16 sps:$4 sm:$0xff]   ;;  %v9997_v39 = vld [vmem:[#allocation5 + $0x15cc] ss:$16 sps:$4 sm:$0xff]  }
 0x52e   :  { %5692 = vmatprep.subr.bf16.mxu0 %v9910_v9  ;;  %5774 = vmatprep.subr.bf16.mxu1 %v9913_v41  ;;  %v9995_v9 = vld [vmem:[#allocation5 + $0x15c8] ss:$16 sps:$4 sm:$0xff]   ;;  %v10000_v41 = vld [vmem:[#allocation5 + $0x15e4] ss:$16 sps:$4 sm:$0xff]  }
 0x530   :  { %4798 = vmatmul.mubr.bf16.vlgmr.msra.gmra.mrb[16].mxu0 %v3930_v12  ;;  %4880 = vmatmul.mubr.bf16.vlgmr.msra.gmra.mrb[16].mxu1 %v3930_v12  ;;  %v10001_v12 = vld [vmem:[#allocation5 + $0x15e8] ss:$16 sps:$4 sm:$0xff]  }
 0x531   :  { %5693 = vmatpush1.bf16.msra.mxu0 %v9908_v42  ;;  %5775 = vmatpush1.bf16.msra.mxu1 %v9911_v43  ;;  %v10003_v42 = vld [vmem:[#allocation5 + $0x15ec] ss:$16 sps:$4 sm:$0xff]   ;;  %v9998_v43 = vld [vmem:[#allocation5 + $0x15e0] ss:$16 sps:$4 sm:$0xff]  }
 0x532   :  { %5694 = vmatprep.subr.bf16.mxu0 %v9916_v44  ;;  %5776 = vmatprep.subr.bf16.mxu1 %v9919_v45  ;;  %v10006_v44 = vld [vmem:[#allocation5 + $0x1604] ss:$16 sps:$4 sm:$0xff]   ;;  %v10009_v45 = vld [vmem:[#allocation5 + $0x160c] ss:$16 sps:$4 sm:$0xff]  }
 0x535   :  { %5695 = vmatpush1.bf16.msra.mxu0 %v9914_v46  ;;  %5777 = vmatpush1.bf16.msra.mxu1 %v9917_v47  ;;  %v10708_v46 = vld [vmem:[#allocation7 + $0x10] sm:$0xf] }
 0x536   :  { %5696 = vmatprep.subr.bf16.mxu0 %v9922_v20  ;;  %5778 = vmatprep.subr.bf16.mxu1 %v9925_v48  ;;  %v4067_v47 = vrot.slane %v10708_v46, %v10647_v13  ;;  %v4071_v20 = vrot.slane %v10708_v46, %v10650_v14  ;;  %v4079_v48 = vrot.slane %v10708_v46, %v10653_v15 }
 0x539   :  { %5697 = vmatpush1.bf16.msra.mxu0 %v9920_v49  ;;  %5779 = vmatpush1.bf16.msra.mxu1 %v9923_v50 }
 0x53a   :  { %5698 = vmatprep.subr.bf16.mxu0 %v9928_v51  ;;  %5780 = vmatprep.subr.bf16.mxu1 %v9931_v53 }
 0x53d   :  { %5699 = vmatpush1.bf16.msra.mxu0 %v9926_v54  ;;  %5781 = vmatpush1.bf16.msra.mxu1 %v9929_v55 }
 0x53e   :  { %5700 = vmatprep.subr.bf16.mxu0 %v9934_v56  ;;  %5782 = vmatprep.subr.bf16.mxu1 %v9937_v32 }
 0x541   :  { %5701 = vmatpush1.bf16.msra.mxu0 %v9932_v58  ;;  %5783 = vmatpush1.bf16.msra.mxu1 %v9935_v59 }
 0x542   :  { %5702 = vmatprep.subr.bf16.mxu0 %v9940_v60  ;;  %5784 = vmatprep.subr.bf16.mxu1 %v9943_v61 }
 0x545   :  { %5703 = vmatpush1.bf16.msra.mxu0 %v9938_v37  ;;  %5785 = vmatpush1.bf16.msra.mxu1 %v9941_v62 }
 0x546   :  { %5704 = vmatprep.subr.bf16.mxu0 %v9946_v63  ;;  %5786 = vmatprep.subr.bf16.mxu1 %v9949_v0 }
 0x549   :  { %5705 = vmatpush1.bf16.msra.mxu0 %v9944_v1  ;;  %5787 = vmatpush1.bf16.msra.mxu1 %v9947_v2 }
 0x54a   :  { %5706 = vmatprep.subr.bf16.mxu0 %v9952_v3  ;;  %5788 = vmatprep.subr.bf16.mxu1 %v9955_v5  ;;  %v10004_v3 = vld [vmem:[#allocation5 + $0x1600] ss:$16 sps:$4 sm:$0xff]   ;;  %v10007_v5 = vld [vmem:[#allocation5 + $0x1608] ss:$16 sps:$4 sm:$0xff]  }
 0x54d   :  { %5707 = vmatpush1.bf16.msra.mxu0 %v9950_v6  ;;  %5789 = vmatpush1.bf16.msra.mxu1 %v9953_v7  ;;  %v10012_v7 = vld [vmem:[#allocation5 + $0x1624] ss:$16 sps:$4 sm:$0xff]  }
 0x54e   :  { %5708 = vmatprep.subr.bf16.mxu0 %v9958_v8  ;;  %5790 = vmatprep.subr.bf16.mxu1 %v9961_v10  ;;  %v10015_v8 = vld [vmem:[#allocation5 + $0x162c] ss:$16 sps:$4 sm:$0xff]  }
 0x551   :  { %5709 = vmatpush1.bf16.msra.mxu0 %v9956_v16  ;;  %5791 = vmatpush1.bf16.msra.mxu1 %v9959_v17  ;;  %v10010_v16 = vld [vmem:[#allocation5 + $0x1620] ss:$16 sps:$4 sm:$0xff]   ;;  %v10013_v17 = vld [vmem:[#allocation5 + $0x1628] ss:$16 sps:$4 sm:$0xff]  }
 0x552   :  { %5710 = vmatprep.subr.bf16.mxu0 %v9964_v18  ;;  %5792 = vmatprep.subr.bf16.mxu1 %v9967_v19  ;;  %v10018_v18 = vld [vmem:[#allocation5 + $0x1644] ss:$16 sps:$4 sm:$0xff]   ;;  %v10021_v19 = vld [vmem:[#allocation5 + $0x164c] ss:$16 sps:$4 sm:$0xff]  }
 0x555   :  { %5711 = vmatpush1.bf16.msra.mxu0 %v9962_v52  ;;  %5793 = vmatpush1.bf16.msra.mxu1 %v9965_v21  ;;  %v10016_v52 = vld [vmem:[#allocation5 + $0x1640] ss:$16 sps:$4 sm:$0xff]   ;;  %v10019_v21 = vld [vmem:[#allocation5 + $0x1648] ss:$16 sps:$4 sm:$0xff]  }
 0x556   :  { %5712 = vmatprep.subr.bf16.mxu0 %v9970_v22  ;;  %5794 = vmatprep.subr.bf16.mxu1 %v9973_v23  ;;  %v10024_v22 = vld [vmem:[#allocation5 + $0x1664] ss:$16 sps:$4 sm:$0xff]   ;;  %v10027_v23 = vld [vmem:[#allocation5 + $0x166c] ss:$16 sps:$4 sm:$0xff]  }
 0x559   :  { %5713 = vmatpush1.bf16.msra.mxu0 %v9968_v24  ;;  %5795 = vmatpush1.bf16.msra.mxu1 %v9971_v57  ;;  %v10022_v24 = vld [vmem:[#allocation5 + $0x1660] ss:$16 sps:$4 sm:$0xff]   ;;  %v10025_v57 = vld [vmem:[#allocation5 + $0x1668] ss:$16 sps:$4 sm:$0xff]  }
 0x55a   :  { %5714 = vmatprep.subr.bf16.mxu0 %v9976_v25  ;;  %5796 = vmatprep.subr.bf16.mxu1 %v9979_v26  ;;  %v10030_v25 = vld [vmem:[#allocation5 + $0x1684] ss:$16 sps:$4 sm:$0xff]   ;;  %v10033_v26 = vld [vmem:[#allocation5 + $0x168c] ss:$16 sps:$4 sm:$0xff]  }
 0x55d   :  { %5715 = vmatpush1.bf16.msra.mxu0 %v9974_v27  ;;  %5797 = vmatpush1.bf16.msra.mxu1 %v9977_v28  ;;  %v10028_v27 = vld [vmem:[#allocation5 + $0x1680] ss:$16 sps:$4 sm:$0xff]   ;;  %v10031_v28 = vld [vmem:[#allocation5 + $0x1688] ss:$16 sps:$4 sm:$0xff]  }
 0x55e   :  { %5716 = vmatprep.subr.bf16.mxu0 %v9982_v30  ;;  %5798 = vmatprep.subr.bf16.mxu1 %v9985_v31  ;;  %v10036_v30 = vld [vmem:[#allocation5 + $0x16a4] ss:$16 sps:$4 sm:$0xff]   ;;  %v10039_v31 = vld [vmem:[#allocation5 + $0x16ac] ss:$16 sps:$4 sm:$0xff]  }
 0x561   :  { %5717 = vmatpush1.bf16.msra.mxu0 %v9980_v33  ;;  %5799 = vmatpush1.bf16.msra.mxu1 %v9983_v34  ;;  %v10034_v33 = vld [vmem:[#allocation5 + $0x16a0] ss:$16 sps:$4 sm:$0xff]   ;;  %v10037_v34 = vld [vmem:[#allocation5 + $0x16a8] ss:$16 sps:$4 sm:$0xff]  }
 0x562   :  { %5718 = vmatprep.subr.bf16.mxu0 %v9988_v35  ;;  %5800 = vmatprep.subr.bf16.mxu1 %v9991_v36  ;;  %v10042_v35 = vld [vmem:[#allocation5 + $0x16c4] ss:$16 sps:$4 sm:$0xff]   ;;  %v10045_v36 = vld [vmem:[#allocation5 + $0x16cc] ss:$16 sps:$4 sm:$0xff]  }
 0x565   :  { %5719 = vmatpush1.bf16.msra.mxu0 %v9986_v4  ;;  %5801 = vmatpush1.bf16.msra.mxu1 %v9989_v38  ;;  %v10040_v4 = vld [vmem:[#allocation5 + $0x16c0] ss:$16 sps:$4 sm:$0xff]   ;;  %v10043_v38 = vld [vmem:[#allocation5 + $0x16c8] ss:$16 sps:$4 sm:$0xff]  }
 0x566   :  { %5720 = vmatprep.subr.bf16.mxu0 %v9994_v11  ;;  %5802 = vmatprep.subr.bf16.mxu1 %v9997_v39  ;;  %v10048_v11 = vld [vmem:[#allocation5 + $0x16e4] ss:$16 sps:$4 sm:$0xff]   ;;  %v10051_v39 = vld [vmem:[#allocation5 + $0x16ec] ss:$16 sps:$4 sm:$0xff]  }
 0x569   :  { %5721 = vmatpush1.bf16.msra.mxu0 %v9992_v40  ;;  %5803 = vmatpush1.bf16.msra.mxu1 %v9995_v9  ;;  %v10046_v40 = vld [vmem:[#allocation5 + $0x16e0] ss:$16 sps:$4 sm:$0xff]   ;;  %v10049_v9 = vld [vmem:[#allocation5 + $0x16e8] ss:$16 sps:$4 sm:$0xff]  }
 0x56a   :  { %5722 = vmatprep.subr.bf16.mxu0 %v10000_v41  ;;  %5804 = vmatprep.subr.bf16.mxu1 %v10003_v42  ;;  %v10054_v41 = vld [vmem:[#allocation5 + $0x1704] ss:$16 sps:$4 sm:$0xff]   ;;  %v10057_v42 = vld [vmem:[#allocation5 + $0x170c] ss:$16 sps:$4 sm:$0xff]  }
 0x56d   :  { %5723 = vmatpush1.bf16.msra.mxu0 %v9998_v43  ;;  %5805 = vmatpush1.bf16.msra.mxu1 %v10001_v12  ;;  %v10052_v43 = vld [vmem:[#allocation5 + $0x1700] ss:$16 sps:$4 sm:$0xff]   ;;  %v10055_v12 = vld [vmem:[#allocation5 + $0x1708] ss:$16 sps:$4 sm:$0xff]  }
 0x56e   :  { %5733 = vmatprep.subr.bf16.mxu0 %v10006_v44  ;;  %5815 = vmatprep.subr.bf16.mxu1 %v10009_v45  ;;  %v10060_v44 = vld [vmem:[#allocation5 + $0x1724] ss:$16 sps:$4 sm:$0xff]   ;;  %v10063_v45 = vld [vmem:[#allocation5 + $0x172c] ss:$16 sps:$4 sm:$0xff]  }
 0x603   :  { %v4799_v49 = vpop.f32.mrb[16].mxu0  ;;  %v10716_v50 = vpop.f32.mrb[16].mxu1 }
 0x604   :  { %v8860_v51 = vadd.f32 %v4799_v49, %v4067_v47  ;;  %v4801_v53 = vpop.f32.mrb[17].mxu0  ;;  %v4883_v54 = vpop.f32.mrb[17].mxu1  ;;  %v10058_v47 = vld [vmem:[#allocation5 + $0x1720] ss:$16 sps:$4 sm:$0xff]   ;;  %v10069_v49 = vld [vmem:[#allocation5 + $0x174c] ss:$16 sps:$4 sm:$0xff]  }
 0x605   :  { %v8861_v55 = vadd.f32 %v4801_v53, %v4071_v20  ;;  %v8863_v56 = vadd.f32 %v4883_v54, %v4079_v48  ;;  %v4803_v32 = vpop.f32.mrb[18].mxu0  ;;  %v4885_v58 = vpop.f32.mrb[18].mxu1  ;;  %v10061_v20 = vld [vmem:[#allocation5 + $0x1728] ss:$16 sps:$4 sm:$0xff]   ;;  %v10066_v48 = vld [vmem:[#allocation5 + $0x1744] ss:$16 sps:$4 sm:$0xff]  }
 0x606   :  { %v4888_v59 = vmul.f32 0.2, %v8860_v51  ;;  %v4804_v60 = vpop.f32.mrb[19].mxu0  ;;  %v4886_v61 = vpop.f32.mrb[19].mxu1  ;;  %v10067_v53 = vld [vmem:[#allocation5 + $0x1748] ss:$16 sps:$4 sm:$0xff]  }
 0x607   :  { %v4889_v37 = vmul.f32 0.2, %v8861_v55  ;;  %v4891_v62 = vmul.f32 0.2, %v8863_v56  ;;  %v10072_v54 = vld [vmem:[#allocation5 + $0x1764] ss:$16 sps:$4 sm:$0xff]  }
 0x608   :  { %v4892_v63 = vmax.f32 %v8860_v51, %v4888_v59  ;;  %v10064_v51 = vld [vmem:[#allocation5 + $0x1740] ss:$16 sps:$4 sm:$0xff]   ;;  %v10073_v32 = vld [vmem:[#allocation5 + $0x1768] ss:$16 sps:$4 sm:$0xff]   ;;  %v10078_v58 = vld [vmem:[#allocation5 + $0x1784] ss:$16 sps:$4 sm:$0xff]  }
 0x609   :  { %v4893_v0 = vmax.f32 %v8861_v55, %v4889_v37  ;;  %v4895_v1 = vmax.f32 %v8863_v56, %v4891_v62  ;;  %v10075_v55 = vld [vmem:[#allocation5 + $0x176c] ss:$16 sps:$4 sm:$0xff]   ;;  %v10070_v56 = vld [vmem:[#allocation5 + $0x1760] ss:$16 sps:$4 sm:$0xff]   ;;  %v10079_v61 = vld [vmem:[#allocation5 + $0x1788] ss:$16 sps:$4 sm:$0xff]   ;;  %v4075_v37 = vrot.slane %v10708_v46, %v10664_v29 }
 0x60a   :  { %v4896_v6 = vpack.c.bf16 %v4892_v63, %v4892_v63  ;;  %v10081_v59 = vld [vmem:[#allocation5 + $0x178c] ss:$16 sps:$4 sm:$0xff]   ;;  %v10076_v60 = vld [vmem:[#allocation5 + $0x1780] ss:$16 sps:$4 sm:$0xff]   ;;  %v10084_v62 = vld [vmem:[#allocation5 + $0x17a4] ss:$16 sps:$4 sm:$0xff]  }
 0x60b   :  { %v4897_v2 = vpack.c.bf16 %v4893_v0, %v4893_v0  ;;  %v4899_v10 = vpack.c.bf16 %v4895_v1, %v4895_v1  ;;  %v10087_v63 = vld [vmem:[#allocation5 + $0x17ac] ss:$16 sps:$4 sm:$0xff]   ;;  %v10082_v0 = vld [vmem:[#allocation5 + $0x17a0] ss:$16 sps:$4 sm:$0xff]   ;;  %v10085_v1 = vld [vmem:[#allocation5 + $0x17a8] ss:$16 sps:$4 sm:$0xff]  }
 0x60c   :  { %v10096_v46 = vld [vmem:[#allocation5 + $0x17e4] ss:$16 sps:$4 sm:$0xff]  }
 0x60d   :  { %5724 = vmatprep.mubr.bf16.mxu0 %v4897_v2  ;;  %5806 = vmatprep.mubr.bf16.mxu1 %v4897_v2  ;;  %v8862_v2 = vadd.f32 %v10716_v50, %v4075_v37  ;;  %v10102_v50 = vld [vmem:[#allocation5 + $0x1804] ss:$16 sps:$4 sm:$0xff]   ;;  %v10163_v37 = vld [vmem:[#allocation5 + $0x1948] ss:$16 sps:$4 sm:$0xff]  }
 0x60e   :  { %5725 = vmatmul.mubr.bf16.vlgmr.msra.gmra.mrb[20].mxu0 %v4896_v6  ;;  %5807 = vmatmul.mubr.bf16.vlgmr.msra.gmra.mrb[20].mxu1 %v4896_v6  ;;  %v10088_v6 = vld [vmem:[#allocation5 + $0x17c0] ss:$16 sps:$4 sm:$0xff]  }
 0x60f   :  { %5734 = vmatpush1.bf16.msra.mxu0 %v10004_v3  ;;  %5816 = vmatpush1.bf16.msra.mxu1 %v10007_v5  ;;  %v10090_v3 = vld [vmem:[#allocation5 + $0x17c4] ss:$16 sps:$4 sm:$0xff]   ;;  %v10093_v5 = vld [vmem:[#allocation5 + $0x17cc] ss:$16 sps:$4 sm:$0xff]  }
 0x610   :  { %5765 = vmatprep.mubr.bf16.mxu0 %v4899_v10  ;;  %5847 = vmatprep.mubr.bf16.mxu1 %v4899_v10  ;;  %v10099_v10 = vld [vmem:[#allocation5 + $0x17ec] ss:$16 sps:$4 sm:$0xff]  }
 0x611   :  { %5735 = vmatprep.subr.bf16.mxu0 %v10012_v7  ;;  %5817 = vmatprep.subr.bf16.mxu1 %v10015_v8  ;;  %v10091_v7 = vld [vmem:[#allocation5 + $0x17c8] ss:$16 sps:$4 sm:$0xff]   ;;  %v4890_v8 = vmul.f32 0.2, %v8862_v2 }
 0x613   :  { %5736 = vmatpush1.bf16.msra.mxu0 %v10010_v16  ;;  %5818 = vmatpush1.bf16.msra.mxu1 %v10013_v17  ;;  %v10094_v16 = vld [vmem:[#allocation5 + $0x17e0] ss:$16 sps:$4 sm:$0xff]   ;;  %v10097_v17 = vld [vmem:[#allocation5 + $0x17e8] ss:$16 sps:$4 sm:$0xff]  }
 0x614   :  { %5737 = vmatprep.subr.bf16.mxu0 %v10018_v18  ;;  %5819 = vmatprep.subr.bf16.mxu1 %v10021_v19  ;;  %v4894_v18 = vmax.f32 %v8862_v2, %v4890_v8  ;;  %v10105_v19 = vld [vmem:[#allocation5 + $0x180c] ss:$16 sps:$4 sm:$0xff]   ;;  %v10174_v2 = vld [vmem:[#allocation5 + $0x1984] ss:$16 sps:$4 sm:$0xff]  }
 0x615   :  { %v10183_v8 = vld [vmem:[#allocation5 + $0x19ac] ss:$16 sps:$4 sm:$0xff]  }
 0x617   :  { %5738 = vmatpush1.bf16.msra.mxu0 %v10016_v52  ;;  %5820 = vmatpush1.bf16.msra.mxu1 %v10019_v21  ;;  %v10100_v52 = vld [vmem:[#allocation5 + $0x1800] ss:$16 sps:$4 sm:$0xff]   ;;  %v10103_v21 = vld [vmem:[#allocation5 + $0x1808] ss:$16 sps:$4 sm:$0xff]  }
 0x618   :  { %5739 = vmatprep.subr.bf16.mxu0 %v10024_v22  ;;  %5821 = vmatprep.subr.bf16.mxu1 %v10027_v23  ;;  %v4898_v22 = vpack.c.bf16 %v4894_v18, %v4894_v18  ;;  %v10108_v23 = vld [vmem:[#allocation5 + $0x1824] ss:$16 sps:$4 sm:$0xff]   ;;  %v10184_v18 = vld [vmem:[#allocation5 + $0x19c0] ss:$16 sps:$4 sm:$0xff]  }
 0x61b   :  { %5740 = vmatpush1.bf16.msra.mxu0 %v10022_v24  ;;  %5822 = vmatpush1.bf16.msra.mxu1 %v10025_v57  ;;  %v10111_v24 = vld [vmem:[#allocation5 + $0x182c] ss:$16 sps:$4 sm:$0xff]   ;;  %v10106_v57 = vld [vmem:[#allocation5 + $0x1820] ss:$16 sps:$4 sm:$0xff]  }
 0x61c   :  { %5741 = vmatprep.subr.bf16.mxu0 %v10030_v25  ;;  %5823 = vmatprep.subr.bf16.mxu1 %v10033_v26  ;;  %v10109_v25 = vld [vmem:[#allocation5 + $0x1828] ss:$16 sps:$4 sm:$0xff]   ;;  %v10114_v26 = vld [vmem:[#allocation5 + $0x1844] ss:$16 sps:$4 sm:$0xff]  }
 0x61f   :  { %5742 = vmatpush1.bf16.msra.mxu0 %v10028_v27  ;;  %5824 = vmatpush1.bf16.msra.mxu1 %v10031_v28  ;;  %v10117_v27 = vld [vmem:[#allocation5 + $0x184c] ss:$16 sps:$4 sm:$0xff]   ;;  %v10112_v28 = vld [vmem:[#allocation5 + $0x1840] ss:$16 sps:$4 sm:$0xff]  }
 0x620   :  { %5743 = vmatprep.subr.bf16.mxu0 %v10036_v30  ;;  %5825 = vmatprep.subr.bf16.mxu1 %v10039_v31  ;;  %v10115_v30 = vld [vmem:[#allocation5 + $0x1848] ss:$16 sps:$4 sm:$0xff]   ;;  %v10120_v31 = vld [vmem:[#allocation5 + $0x1864] ss:$16 sps:$4 sm:$0xff]  }
 0x623   :  { %5744 = vmatpush1.bf16.msra.mxu0 %v10034_v33  ;;  %5826 = vmatpush1.bf16.msra.mxu1 %v10037_v34  ;;  %v10123_v33 = vld [vmem:[#allocation5 + $0x186c] ss:$16 sps:$4 sm:$0xff]   ;;  %v10118_v34 = vld [vmem:[#allocation5 + $0x1860] ss:$16 sps:$4 sm:$0xff]  }
 0x624   :  { %5745 = vmatprep.subr.bf16.mxu0 %v10042_v35  ;;  %5827 = vmatprep.subr.bf16.mxu1 %v10045_v36  ;;  %v10121_v35 = vld [vmem:[#allocation5 + $0x1868] ss:$16 sps:$4 sm:$0xff]   ;;  %v10126_v36 = vld [vmem:[#allocation5 + $0x1884] ss:$16 sps:$4 sm:$0xff]  }
 0x627   :  { %5746 = vmatpush1.bf16.msra.mxu0 %v10040_v4  ;;  %5828 = vmatpush1.bf16.msra.mxu1 %v10043_v38  ;;  %v10129_v4 = vld [vmem:[#allocation5 + $0x188c] ss:$16 sps:$4 sm:$0xff]   ;;  %v10124_v38 = vld [vmem:[#allocation5 + $0x1880] ss:$16 sps:$4 sm:$0xff]  }
 0x628   :  { %5747 = vmatprep.subr.bf16.mxu0 %v10048_v11  ;;  %5829 = vmatprep.subr.bf16.mxu1 %v10051_v39  ;;  %v10127_v11 = vld [vmem:[#allocation5 + $0x1888] ss:$16 sps:$4 sm:$0xff]   ;;  %v10132_v39 = vld [vmem:[#allocation5 + $0x18a4] ss:$16 sps:$4 sm:$0xff]  }
 0x62b   :  { %5748 = vmatpush1.bf16.msra.mxu0 %v10046_v40  ;;  %5830 = vmatpush1.bf16.msra.mxu1 %v10049_v9  ;;  %v10135_v40 = vld [vmem:[#allocation5 + $0x18ac] ss:$16 sps:$4 sm:$0xff]   ;;  %v10130_v9 = vld [vmem:[#allocation5 + $0x18a0] ss:$16 sps:$4 sm:$0xff]  }
 0x62c   :  { %5749 = vmatprep.subr.bf16.mxu0 %v10054_v41  ;;  %5831 = vmatprep.subr.bf16.mxu1 %v10057_v42  ;;  %v10133_v41 = vld [vmem:[#allocation5 + $0x18a8] ss:$16 sps:$4 sm:$0xff]   ;;  %v10138_v42 = vld [vmem:[#allocation5 + $0x18c4] ss:$16 sps:$4 sm:$0xff]  }
 0x62f   :  { %5750 = vmatpush1.bf16.msra.mxu0 %v10052_v43  ;;  %5832 = vmatpush1.bf16.msra.mxu1 %v10055_v12  ;;  %v10141_v43 = vld [vmem:[#allocation5 + $0x18cc] ss:$16 sps:$4 sm:$0xff]   ;;  %v10136_v12 = vld [vmem:[#allocation5 + $0x18c0] ss:$16 sps:$4 sm:$0xff]  }
 0x630   :  { %5751 = vmatprep.subr.bf16.mxu0 %v10060_v44  ;;  %5833 = vmatprep.subr.bf16.mxu1 %v10063_v45  ;;  %v10139_v44 = vld [vmem:[#allocation5 + $0x18c8] ss:$16 sps:$4 sm:$0xff]   ;;  %v10144_v45 = vld [vmem:[#allocation5 + $0x18e4] ss:$16 sps:$4 sm:$0xff]  }
 0x633   :  { %5752 = vmatpush1.bf16.msra.mxu0 %v10058_v47  ;;  %5834 = vmatpush1.bf16.msra.mxu1 %v10061_v20  ;;  %v10147_v47 = vld [vmem:[#allocation5 + $0x18ec] ss:$16 sps:$4 sm:$0xff]   ;;  %v10142_v20 = vld [vmem:[#allocation5 + $0x18e0] ss:$16 sps:$4 sm:$0xff]  }
 0x634   :  { %5753 = vmatprep.subr.bf16.mxu0 %v10066_v48  ;;  %5835 = vmatprep.subr.bf16.mxu1 %v10069_v49  ;;  %v10145_v48 = vld [vmem:[#allocation5 + $0x18e8] ss:$16 sps:$4 sm:$0xff]   ;;  %v10150_v49 = vld [vmem:[#allocation5 + $0x1904] ss:$16 sps:$4 sm:$0xff]  }
 0x637   :  { %5754 = vmatpush1.bf16.msra.mxu0 %v10064_v51  ;;  %5836 = vmatpush1.bf16.msra.mxu1 %v10067_v53  ;;  %v10153_v51 = vld [vmem:[#allocation5 + $0x190c] ss:$16 sps:$4 sm:$0xff]   ;;  %v10148_v53 = vld [vmem:[#allocation5 + $0x1900] ss:$16 sps:$4 sm:$0xff]  }
 0x638   :  { %5755 = vmatprep.subr.bf16.mxu0 %v10072_v54  ;;  %5837 = vmatprep.subr.bf16.mxu1 %v10075_v55  ;;  %v10151_v54 = vld [vmem:[#allocation5 + $0x1908] ss:$16 sps:$4 sm:$0xff]   ;;  %v10156_v55 = vld [vmem:[#allocation5 + $0x1924] ss:$16 sps:$4 sm:$0xff]  }
 0x63b   :  { %5756 = vmatpush1.bf16.msra.mxu0 %v10070_v56  ;;  %5838 = vmatpush1.bf16.msra.mxu1 %v10073_v32  ;;  %v10159_v56 = vld [vmem:[#allocation5 + $0x192c] ss:$16 sps:$4 sm:$0xff]   ;;  %v10154_v32 = vld [vmem:[#allocation5 + $0x1920] ss:$16 sps:$4 sm:$0xff]  }
 0x63c   :  { %5757 = vmatprep.subr.bf16.mxu0 %v10078_v58  ;;  %5839 = vmatprep.subr.bf16.mxu1 %v10081_v59  ;;  %v10157_v58 = vld [vmem:[#allocation5 + $0x1928] ss:$16 sps:$4 sm:$0xff]   ;;  %v10162_v59 = vld [vmem:[#allocation5 + $0x1944] ss:$16 sps:$4 sm:$0xff]  }
 0x63f   :  { %5758 = vmatpush1.bf16.msra.mxu0 %v10076_v60  ;;  %5840 = vmatpush1.bf16.msra.mxu1 %v10079_v61  ;;  %v10165_v60 = vld [vmem:[#allocation5 + $0x194c] ss:$16 sps:$4 sm:$0xff]   ;;  %v10160_v61 = vld [vmem:[#allocation5 + $0x1940] ss:$16 sps:$4 sm:$0xff]  }
 0x640   :  { %5759 = vmatprep.subr.bf16.mxu0 %v10084_v62  ;;  %5841 = vmatprep.subr.bf16.mxu1 %v10087_v63  ;;  %v10168_v62 = vld [vmem:[#allocation5 + $0x1964] ss:$16 sps:$4 sm:$0xff]   ;;  %v10171_v63 = vld [vmem:[#allocation5 + $0x196c] ss:$16 sps:$4 sm:$0xff]  }
 0x643   :  { %5760 = vmatpush1.bf16.msra.mxu0 %v10082_v0  ;;  %5842 = vmatpush1.bf16.msra.mxu1 %v10085_v1  ;;  %v10166_v0 = vld [vmem:[#allocation5 + $0x1960] ss:$16 sps:$4 sm:$0xff]   ;;  %v10169_v1 = vld [vmem:[#allocation5 + $0x1968] ss:$16 sps:$4 sm:$0xff]  }
 0x644   :  { %5761 = vmatprep.subr.bf16.mxu0 %v10090_v3  ;;  %5843 = vmatprep.subr.bf16.mxu1 %v10093_v5  ;;  %v10177_v3 = vld [vmem:[#allocation5 + $0x198c] ss:$16 sps:$4 sm:$0xff]   ;;  %v10172_v5 = vld [vmem:[#allocation5 + $0x1980] ss:$16 sps:$4 sm:$0xff]  }
 0x647   :  { %5762 = vmatpush1.bf16.msra.mxu0 %v10088_v6  ;;  %5844 = vmatpush1.bf16.msra.mxu1 %v10091_v7  ;;  %v10175_v6 = vld [vmem:[#allocation5 + $0x1988] ss:$16 sps:$4 sm:$0xff]   ;;  %v10180_v7 = vld [vmem:[#allocation5 + $0x19a4] ss:$16 sps:$4 sm:$0xff]  }
 0x648   :  { %5763 = vmatprep.subr.bf16.mxu0 %v10096_v46  ;;  %5845 = vmatprep.subr.bf16.mxu1 %v10099_v10  ;;  %v10178_v46 = vld [vmem:[#allocation5 + $0x19a0] ss:$16 sps:$4 sm:$0xff]   ;;  %v10181_v10 = vld [vmem:[#allocation5 + $0x19a8] ss:$16 sps:$4 sm:$0xff]  }
 0x64b   :  { %5764 = vmatpush1.bf16.msra.mxu0 %v10094_v16  ;;  %5846 = vmatpush1.bf16.msra.mxu1 %v10097_v17  ;;  %v10186_v16 = vld [vmem:[#allocation5 + $0x19c4] ss:$16 sps:$4 sm:$0xff]   ;;  %v10189_v17 = vld [vmem:[#allocation5 + $0x19cc] ss:$16 sps:$4 sm:$0xff]  }
 0x64c   :  { %6660 = vmatprep.subr.bf16.mxu0 %v10102_v50  ;;  %6742 = vmatprep.subr.bf16.mxu1 %v10105_v19  ;;  %v10187_v50 = vld [vmem:[#allocation5 + $0x19c8] ss:$16 sps:$4 sm:$0xff]   ;;  %v10192_v19 = vld [vmem:[#allocation5 + $0x19e4] ss:$16 sps:$4 sm:$0xff]  }
 0x64e   :  { %5766 = vmatmul.mubr.bf16.vlgmr.msra.gmra.mrb[20].mxu0 %v4898_v22  ;;  %5848 = vmatmul.mubr.bf16.vlgmr.msra.gmra.mrb[20].mxu1 %v4898_v22  ;;  %v10193_v22 = vld [vmem:[#allocation5 + $0x19e8] ss:$16 sps:$4 sm:$0xff]  }
 0x64f   :  { %6661 = vmatpush1.bf16.msra.mxu0 %v10100_v52  ;;  %6743 = vmatpush1.bf16.msra.mxu1 %v10103_v21  ;;  %v10195_v52 = vld [vmem:[#allocation5 + $0x19ec] ss:$16 sps:$4 sm:$0xff]   ;;  %v10190_v21 = vld [vmem:[#allocation5 + $0x19e0] ss:$16 sps:$4 sm:$0xff]  }
 0x650   :  { %6662 = vmatprep.subr.bf16.mxu0 %v10108_v23  ;;  %6744 = vmatprep.subr.bf16.mxu1 %v10111_v24  ;;  %v10198_v23 = vld [vmem:[#allocation5 + $0x1a04] ss:$16 sps:$4 sm:$0xff]   ;;  %v10201_v24 = vld [vmem:[#allocation5 + $0x1a0c] ss:$16 sps:$4 sm:$0xff]  }
 0x653   :  { %6663 = vmatpush1.bf16.msra.mxu0 %v10106_v57  ;;  %6745 = vmatpush1.bf16.msra.mxu1 %v10109_v25  ;;  %v10721_v57 = vld [vmem:[#allocation7 + $0x14] sm:$0xf] }
 0x654   :  { %6664 = vmatprep.subr.bf16.mxu0 %v10114_v26  ;;  %6746 = vmatprep.subr.bf16.mxu1 %v10117_v27  ;;  %v5035_v25 = vrot.slane %v10721_v57, %v10647_v13  ;;  %v5039_v26 = vrot.slane %v10721_v57, %v10650_v14  ;;  %v5047_v27 = vrot.slane %v10721_v57, %v10653_v15 }
 0x657   :  { %6665 = vmatpush1.bf16.msra.mxu0 %v10112_v28  ;;  %6747 = vmatpush1.bf16.msra.mxu1 %v10115_v30 }
 0x658   :  { %6666 = vmatprep.subr.bf16.mxu0 %v10120_v31  ;;  %6748 = vmatprep.subr.bf16.mxu1 %v10123_v33 }
 0x65b   :  { %6667 = vmatpush1.bf16.msra.mxu0 %v10118_v34  ;;  %6749 = vmatpush1.bf16.msra.mxu1 %v10121_v35 }
 0x65c   :  { %6668 = vmatprep.subr.bf16.mxu0 %v10126_v36  ;;  %6750 = vmatprep.subr.bf16.mxu1 %v10129_v4 }
 0x65f   :  { %6669 = vmatpush1.bf16.msra.mxu0 %v10124_v38  ;;  %6751 = vmatpush1.bf16.msra.mxu1 %v10127_v11 }
 0x660   :  { %6670 = vmatprep.subr.bf16.mxu0 %v10132_v39  ;;  %6752 = vmatprep.subr.bf16.mxu1 %v10135_v40 }
 0x663   :  { %6671 = vmatpush1.bf16.msra.mxu0 %v10130_v9  ;;  %6753 = vmatpush1.bf16.msra.mxu1 %v10133_v41 }
 0x664   :  { %6672 = vmatprep.subr.bf16.mxu0 %v10138_v42  ;;  %6754 = vmatprep.subr.bf16.mxu1 %v10141_v43 }
 0x667   :  { %6673 = vmatpush1.bf16.msra.mxu0 %v10136_v12  ;;  %6755 = vmatpush1.bf16.msra.mxu1 %v10139_v44 }
 0x668   :  { %6674 = vmatprep.subr.bf16.mxu0 %v10144_v45  ;;  %6756 = vmatprep.subr.bf16.mxu1 %v10147_v47  ;;  %v10196_v45 = vld [vmem:[#allocation5 + $0x1a00] ss:$16 sps:$4 sm:$0xff]   ;;  %v10199_v47 = vld [vmem:[#allocation5 + $0x1a08] ss:$16 sps:$4 sm:$0xff]  }
 0x66b   :  { %6675 = vmatpush1.bf16.msra.mxu0 %v10142_v20  ;;  %6757 = vmatpush1.bf16.msra.mxu1 %v10145_v48  ;;  %v10204_v48 = vld [vmem:[#allocation5 + $0x1a24] ss:$16 sps:$4 sm:$0xff]  }
 0x66c   :  { %6676 = vmatprep.subr.bf16.mxu0 %v10150_v49  ;;  %6758 = vmatprep.subr.bf16.mxu1 %v10153_v51  ;;  %v10207_v49 = vld [vmem:[#allocation5 + $0x1a2c] ss:$16 sps:$4 sm:$0xff]  }
 0x66f   :  { %6677 = vmatpush1.bf16.msra.mxu0 %v10148_v53  ;;  %6759 = vmatpush1.bf16.msra.mxu1 %v10151_v54  ;;  %v10202_v53 = vld [vmem:[#allocation5 + $0x1a20] ss:$16 sps:$4 sm:$0xff]   ;;  %v10205_v54 = vld [vmem:[#allocation5 + $0x1a28] ss:$16 sps:$4 sm:$0xff]  }
 0x670   :  { %6678 = vmatprep.subr.bf16.mxu0 %v10156_v55  ;;  %6760 = vmatprep.subr.bf16.mxu1 %v10159_v56  ;;  %v10210_v55 = vld [vmem:[#allocation5 + $0x1a44] ss:$16 sps:$4 sm:$0xff]   ;;  %v10213_v56 = vld [vmem:[#allocation5 + $0x1a4c] ss:$16 sps:$4 sm:$0xff]  }
 0x673   :  { %6679 = vmatpush1.bf16.msra.mxu0 %v10154_v32  ;;  %6761 = vmatpush1.bf16.msra.mxu1 %v10157_v58  ;;  %v10208_v32 = vld [vmem:[#allocation5 + $0x1a40] ss:$16 sps:$4 sm:$0xff]   ;;  %v10211_v58 = vld [vmem:[#allocation5 + $0x1a48] ss:$16 sps:$4 sm:$0xff]  }
 0x674   :  { %6680 = vmatprep.subr.bf16.mxu0 %v10162_v59  ;;  %6762 = vmatprep.subr.bf16.mxu1 %v10165_v60  ;;  %v10216_v59 = vld [vmem:[#allocation5 + $0x1a64] ss:$16 sps:$4 sm:$0xff]   ;;  %v10219_v60 = vld [vmem:[#allocation5 + $0x1a6c] ss:$16 sps:$4 sm:$0xff]  }
 0x677   :  { %6681 = vmatpush1.bf16.msra.mxu0 %v10160_v61  ;;  %6763 = vmatpush1.bf16.msra.mxu1 %v10163_v37  ;;  %v10214_v61 = vld [vmem:[#allocation5 + $0x1a60] ss:$16 sps:$4 sm:$0xff]   ;;  %v10217_v37 = vld [vmem:[#allocation5 + $0x1a68] ss:$16 sps:$4 sm:$0xff]  }
 0x678   :  { %6682 = vmatprep.subr.bf16.mxu0 %v10168_v62  ;;  %6764 = vmatprep.subr.bf16.mxu1 %v10171_v63  ;;  %v10222_v62 = vld [vmem:[#allocation5 + $0x1a84] ss:$16 sps:$4 sm:$0xff]   ;;  %v10225_v63 = vld [vmem:[#allocation5 + $0x1a8c] ss:$16 sps:$4 sm:$0xff]  }
 0x67b   :  { %6683 = vmatpush1.bf16.msra.mxu0 %v10166_v0  ;;  %6765 = vmatpush1.bf16.msra.mxu1 %v10169_v1  ;;  %v10220_v0 = vld [vmem:[#allocation5 + $0x1a80] ss:$16 sps:$4 sm:$0xff]   ;;  %v10223_v1 = vld [vmem:[#allocation5 + $0x1a88] ss:$16 sps:$4 sm:$0xff]  }
 0x67c   :  { %6684 = vmatprep.subr.bf16.mxu0 %v10174_v2  ;;  %6766 = vmatprep.subr.bf16.mxu1 %v10177_v3  ;;  %v10228_v2 = vld [vmem:[#allocation5 + $0x1aa4] ss:$16 sps:$4 sm:$0xff]   ;;  %v10231_v3 = vld [vmem:[#allocation5 + $0x1aac] ss:$16 sps:$4 sm:$0xff]  }
 0x67f   :  { %6685 = vmatpush1.bf16.msra.mxu0 %v10172_v5  ;;  %6767 = vmatpush1.bf16.msra.mxu1 %v10175_v6  ;;  %v10226_v5 = vld [vmem:[#allocation5 + $0x1aa0] ss:$16 sps:$4 sm:$0xff]   ;;  %v10229_v6 = vld [vmem:[#allocation5 + $0x1aa8] ss:$16 sps:$4 sm:$0xff]  }
 0x680   :  { %6686 = vmatprep.subr.bf16.mxu0 %v10180_v7  ;;  %6768 = vmatprep.subr.bf16.mxu1 %v10183_v8  ;;  %v10234_v7 = vld [vmem:[#allocation5 + $0x1ac4] ss:$16 sps:$4 sm:$0xff]   ;;  %v10237_v8 = vld [vmem:[#allocation5 + $0x1acc] ss:$16 sps:$4 sm:$0xff]  }
 0x683   :  { %6687 = vmatpush1.bf16.msra.mxu0 %v10178_v46  ;;  %6769 = vmatpush1.bf16.msra.mxu1 %v10181_v10  ;;  %v10232_v46 = vld [vmem:[#allocation5 + $0x1ac0] ss:$16 sps:$4 sm:$0xff]   ;;  %v10235_v10 = vld [vmem:[#allocation5 + $0x1ac8] ss:$16 sps:$4 sm:$0xff]  }
 0x684   :  { %6688 = vmatprep.subr.bf16.mxu0 %v10186_v16  ;;  %6770 = vmatprep.subr.bf16.mxu1 %v10189_v17  ;;  %v10240_v16 = vld [vmem:[#allocation5 + $0x1ae4] ss:$16 sps:$4 sm:$0xff]   ;;  %v10243_v17 = vld [vmem:[#allocation5 + $0x1aec] ss:$16 sps:$4 sm:$0xff]  }
 0x687   :  { %6689 = vmatpush1.bf16.msra.mxu0 %v10184_v18  ;;  %6771 = vmatpush1.bf16.msra.mxu1 %v10187_v50  ;;  %v10238_v18 = vld [vmem:[#allocation5 + $0x1ae0] ss:$16 sps:$4 sm:$0xff]   ;;  %v10241_v50 = vld [vmem:[#allocation5 + $0x1ae8] ss:$16 sps:$4 sm:$0xff]  }
 0x688   :  { %6690 = vmatprep.subr.bf16.mxu0 %v10192_v19  ;;  %6772 = vmatprep.subr.bf16.mxu1 %v10195_v52  ;;  %v10246_v19 = vld [vmem:[#allocation5 + $0x1b04] ss:$16 sps:$4 sm:$0xff]   ;;  %v10249_v52 = vld [vmem:[#allocation5 + $0x1b0c] ss:$16 sps:$4 sm:$0xff]  }
 0x68b   :  { %6691 = vmatpush1.bf16.msra.mxu0 %v10190_v21  ;;  %6773 = vmatpush1.bf16.msra.mxu1 %v10193_v22  ;;  %v10244_v21 = vld [vmem:[#allocation5 + $0x1b00] ss:$16 sps:$4 sm:$0xff]   ;;  %v10247_v22 = vld [vmem:[#allocation5 + $0x1b08] ss:$16 sps:$4 sm:$0xff]  }
 0x68c   :  { %6701 = vmatprep.subr.bf16.mxu0 %v10198_v23  ;;  %6783 = vmatprep.subr.bf16.mxu1 %v10201_v24  ;;  %v10252_v23 = vld [vmem:[#allocation5 + $0x1b24] ss:$16 sps:$4 sm:$0xff]   ;;  %v10255_v24 = vld [vmem:[#allocation5 + $0x1b2c] ss:$16 sps:$4 sm:$0xff]  }
 0x721   :  { %v5767_v28 = vpop.f32.mrb[20].mxu0  ;;  %v10729_v30 = vpop.f32.mrb[20].mxu1 }
 0x722   :  { %v8864_v31 = vadd.f32 %v5767_v28, %v5035_v25  ;;  %v5769_v33 = vpop.f32.mrb[21].mxu0  ;;  %v5851_v34 = vpop.f32.mrb[21].mxu1  ;;  %v10250_v25 = vld [vmem:[#allocation5 + $0x1b20] ss:$16 sps:$4 sm:$0xff]   ;;  %v10261_v28 = vld [vmem:[#allocation5 + $0x1b4c] ss:$16 sps:$4 sm:$0xff]  }
 0x723   :  { %v8865_v35 = vadd.f32 %v5769_v33, %v5039_v26  ;;  %v8867_v36 = vadd.f32 %v5851_v34, %v5047_v27  ;;  %v5771_v4 = vpop.f32.mrb[22].mxu0  ;;  %v5853_v38 = vpop.f32.mrb[22].mxu1  ;;  %v10253_v26 = vld [vmem:[#allocation5 + $0x1b28] ss:$16 sps:$4 sm:$0xff]   ;;  %v10258_v27 = vld [vmem:[#allocation5 + $0x1b44] ss:$16 sps:$4 sm:$0xff]  }
 0x724   :  { %v5856_v11 = vmul.f32 0.2, %v8864_v31  ;;  %v5772_v39 = vpop.f32.mrb[23].mxu0  ;;  %v5854_v40 = vpop.f32.mrb[23].mxu1  ;;  %v10259_v33 = vld [vmem:[#allocation5 + $0x1b48] ss:$16 sps:$4 sm:$0xff]  }
 0x725   :  { %v5857_v9 = vmul.f32 0.2, %v8865_v35  ;;  %v5859_v41 = vmul.f32 0.2, %v8867_v36  ;;  %v10264_v34 = vld [vmem:[#allocation5 + $0x1b64] ss:$16 sps:$4 sm:$0xff]  }
 0x726   :  { %v5860_v42 = vmax.f32 %v8864_v31, %v5856_v11  ;;  %v10256_v31 = vld [vmem:[#allocation5 + $0x1b40] ss:$16 sps:$4 sm:$0xff]   ;;  %v10265_v4 = vld [vmem:[#allocation5 + $0x1b68] ss:$16 sps:$4 sm:$0xff]   ;;  %v10270_v38 = vld [vmem:[#allocation5 + $0x1b84] ss:$16 sps:$4 sm:$0xff]  }
 0x727   :  { %v5861_v43 = vmax.f32 %v8865_v35, %v5857_v9  ;;  %v5863_v12 = vmax.f32 %v8867_v36, %v5859_v41  ;;  %v10267_v35 = vld [vmem:[#allocation5 + $0x1b6c] ss:$16 sps:$4 sm:$0xff]   ;;  %v10262_v36 = vld [vmem:[#allocation5 + $0x1b60] ss:$16 sps:$4 sm:$0xff]   ;;  %v10271_v40 = vld [vmem:[#allocation5 + $0x1b88] ss:$16 sps:$4 sm:$0xff]   ;;  %v5043_v9 = vrot.slane %v10721_v57, %v10664_v29 }
 0x728   :  { %v5864_v20 = vpack.c.bf16 %v5860_v42, %v5860_v42  ;;  %v10273_v11 = vld [vmem:[#allocation5 + $0x1b8c] ss:$16 sps:$4 sm:$0xff]   ;;  %v10268_v39 = vld [vmem:[#allocation5 + $0x1b80] ss:$16 sps:$4 sm:$0xff]   ;;  %v10276_v41 = vld [vmem:[#allocation5 + $0x1ba4] ss:$16 sps:$4 sm:$0xff]  }
 0x729   :  { %v5865_v44 = vpack.c.bf16 %v5861_v43, %v5861_v43  ;;  %v5867_v51 = vpack.c.bf16 %v5863_v12, %v5863_v12  ;;  %v10279_v42 = vld [vmem:[#allocation5 + $0x1bac] ss:$16 sps:$4 sm:$0xff]   ;;  %v10274_v43 = vld [vmem:[#allocation5 + $0x1ba0] ss:$16 sps:$4 sm:$0xff]   ;;  %v10277_v12 = vld [vmem:[#allocation5 + $0x1ba8] ss:$16 sps:$4 sm:$0xff]  }
 0x72a   :  { %v10288_v57 = vld [vmem:[#allocation5 + $0x1be4] ss:$16 sps:$4 sm:$0xff]  }
 0x72b   :  { %6692 = vmatprep.mubr.bf16.mxu0 %v5865_v44  ;;  %6774 = vmatprep.mubr.bf16.mxu1 %v5865_v44  ;;  %v8866_v44 = vadd.f32 %v10729_v30, %v5043_v9  ;;  %v10294_v30 = vld [vmem:[#allocation5 + $0x1c04] ss:$16 sps:$4 sm:$0xff]   ;;  %v10355_v9 = vld [vmem:[#allocation5 + $0x1d48] ss:$16 sps:$4 sm:$0xff]  }
 0x72c   :  { %6693 = vmatmul.mubr.bf16.vlgmr.msra.gmra.mrb[24].mxu0 %v5864_v20  ;;  %6775 = vmatmul.mubr.bf16.vlgmr.msra.gmra.mrb[24].mxu1 %v5864_v20  ;;  %v10280_v20 = vld [vmem:[#allocation5 + $0x1bc0] ss:$16 sps:$4 sm:$0xff]  }
 0x72d   :  { %6702 = vmatpush1.bf16.msra.mxu0 %v10196_v45  ;;  %6784 = vmatpush1.bf16.msra.mxu1 %v10199_v47  ;;  %v10282_v45 = vld [vmem:[#allocation5 + $0x1bc4] ss:$16 sps:$4 sm:$0xff]   ;;  %v10285_v47 = vld [vmem:[#allocation5 + $0x1bcc] ss:$16 sps:$4 sm:$0xff]  }
 0x72e   :  { %6733 = vmatprep.mubr.bf16.mxu0 %v5867_v51  ;;  %6815 = vmatprep.mubr.bf16.mxu1 %v5867_v51  ;;  %v10291_v51 = vld [vmem:[#allocation5 + $0x1bec] ss:$16 sps:$4 sm:$0xff]  }
 0x72f   :  { %6703 = vmatprep.subr.bf16.mxu0 %v10204_v48  ;;  %6785 = vmatprep.subr.bf16.mxu1 %v10207_v49  ;;  %v10283_v48 = vld [vmem:[#allocation5 + $0x1bc8] ss:$16 sps:$4 sm:$0xff]   ;;  %v5858_v49 = vmul.f32 0.2, %v8866_v44 }
 0x731   :  { %6704 = vmatpush1.bf16.msra.mxu0 %v10202_v53  ;;  %6786 = vmatpush1.bf16.msra.mxu1 %v10205_v54  ;;  %v10286_v53 = vld [vmem:[#allocation5 + $0x1be0] ss:$16 sps:$4 sm:$0xff]   ;;  %v10289_v54 = vld [vmem:[#allocation5 + $0x1be8] ss:$16 sps:$4 sm:$0xff]  }
 0x732   :  { %6705 = vmatprep.subr.bf16.mxu0 %v10210_v55  ;;  %6787 = vmatprep.subr.bf16.mxu1 %v10213_v56  ;;  %v5862_v55 = vmax.f32 %v8866_v44, %v5858_v49  ;;  %v10297_v56 = vld [vmem:[#allocation5 + $0x1c0c] ss:$16 sps:$4 sm:$0xff]   ;;  %v10366_v44 = vld [vmem:[#allocation5 + $0x1d84] ss:$16 sps:$4 sm:$0xff]  }
 0x733   :  { %v10375_v49 = vld [vmem:[#allocation5 + $0x1dac] ss:$16 sps:$4 sm:$0xff]  }
 0x735   :  { %6706 = vmatpush1.bf16.msra.mxu0 %v10208_v32  ;;  %6788 = vmatpush1.bf16.msra.mxu1 %v10211_v58  ;;  %v10292_v32 = vld [vmem:[#allocation5 + $0x1c00] ss:$16 sps:$4 sm:$0xff]   ;;  %v10295_v58 = vld [vmem:[#allocation5 + $0x1c08] ss:$16 sps:$4 sm:$0xff]  }
 0x736   :  { %6707 = vmatprep.subr.bf16.mxu0 %v10216_v59  ;;  %6789 = vmatprep.subr.bf16.mxu1 %v10219_v60  ;;  %v5866_v59 = vpack.c.bf16 %v5862_v55, %v5862_v55  ;;  %v10300_v60 = vld [vmem:[#allocation5 + $0x1c24] ss:$16 sps:$4 sm:$0xff]   ;;  %v10376_v55 = vld [vmem:[#allocation5 + $0x1dc0] ss:$16 sps:$4 sm:$0xff]  }
 0x739   :  { %6708 = vmatpush1.bf16.msra.mxu0 %v10214_v61  ;;  %6790 = vmatpush1.bf16.msra.mxu1 %v10217_v37  ;;  %v10303_v61 = vld [vmem:[#allocation5 + $0x1c2c] ss:$16 sps:$4 sm:$0xff]   ;;  %v10298_v37 = vld [vmem:[#allocation5 + $0x1c20] ss:$16 sps:$4 sm:$0xff]  }
 0x73a   :  { %6709 = vmatprep.subr.bf16.mxu0 %v10222_v62  ;;  %6791 = vmatprep.subr.bf16.mxu1 %v10225_v63  ;;  %v10301_v62 = vld [vmem:[#allocation5 + $0x1c28] ss:$16 sps:$4 sm:$0xff]   ;;  %v10306_v63 = vld [vmem:[#allocation5 + $0x1c44] ss:$16 sps:$4 sm:$0xff]  }
 0x73d   :  { %6710 = vmatpush1.bf16.msra.mxu0 %v10220_v0  ;;  %6792 = vmatpush1.bf16.msra.mxu1 %v10223_v1  ;;  %v10309_v0 = vld [vmem:[#allocation5 + $0x1c4c] ss:$16 sps:$4 sm:$0xff]   ;;  %v10304_v1 = vld [vmem:[#allocation5 + $0x1c40] ss:$16 sps:$4 sm:$0xff]  }
 0x73e   :  { %6711 = vmatprep.subr.bf16.mxu0 %v10228_v2  ;;  %6793 = vmatprep.subr.bf16.mxu1 %v10231_v3  ;;  %v10307_v2 = vld [vmem:[#allocation5 + $0x1c48] ss:$16 sps:$4 sm:$0xff]   ;;  %v10312_v3 = vld [vmem:[#allocation5 + $0x1c64] ss:$16 sps:$4 sm:$0xff]  }
 0x741   :  { %6712 = vmatpush1.bf16.msra.mxu0 %v10226_v5  ;;  %6794 = vmatpush1.bf16.msra.mxu1 %v10229_v6  ;;  %v10315_v5 = vld [vmem:[#allocation5 + $0x1c6c] ss:$16 sps:$4 sm:$0xff]   ;;  %v10310_v6 = vld [vmem:[#allocation5 + $0x1c60] ss:$16 sps:$4 sm:$0xff]  }
 0x742   :  { %6713 = vmatprep.subr.bf16.mxu0 %v10234_v7  ;;  %6795 = vmatprep.subr.bf16.mxu1 %v10237_v8  ;;  %v10313_v7 = vld [vmem:[#allocation5 + $0x1c68] ss:$16 sps:$4 sm:$0xff]   ;;  %v10318_v8 = vld [vmem:[#allocation5 + $0x1c84] ss:$16 sps:$4 sm:$0xff]  }
 0x745   :  { %6714 = vmatpush1.bf16.msra.mxu0 %v10232_v46  ;;  %6796 = vmatpush1.bf16.msra.mxu1 %v10235_v10  ;;  %v10321_v46 = vld [vmem:[#allocation5 + $0x1c8c] ss:$16 sps:$4 sm:$0xff]   ;;  %v10316_v10 = vld [vmem:[#allocation5 + $0x1c80] ss:$16 sps:$4 sm:$0xff]  }
 0x746   :  { %6715 = vmatprep.subr.bf16.mxu0 %v10240_v16  ;;  %6797 = vmatprep.subr.bf16.mxu1 %v10243_v17  ;;  %v10319_v16 = vld [vmem:[#allocation5 + $0x1c88] ss:$16 sps:$4 sm:$0xff]   ;;  %v10324_v17 = vld [vmem:[#allocation5 + $0x1ca4] ss:$16 sps:$4 sm:$0xff]  }
 0x749   :  { %6716 = vmatpush1.bf16.msra.mxu0 %v10238_v18  ;;  %6798 = vmatpush1.bf16.msra.mxu1 %v10241_v50  ;;  %v10327_v18 = vld [vmem:[#allocation5 + $0x1cac] ss:$16 sps:$4 sm:$0xff]   ;;  %v10322_v50 = vld [vmem:[#allocation5 + $0x1ca0] ss:$16 sps:$4 sm:$0xff]  }
 0x74a   :  { %6717 = vmatprep.subr.bf16.mxu0 %v10246_v19  ;;  %6799 = vmatprep.subr.bf16.mxu1 %v10249_v52  ;;  %v10325_v19 = vld [vmem:[#allocation5 + $0x1ca8] ss:$16 sps:$4 sm:$0xff]   ;;  %v10330_v52 = vld [vmem:[#allocation5 + $0x1cc4] ss:$16 sps:$4 sm:$0xff]  }
 0x74d   :  { %6718 = vmatpush1.bf16.msra.mxu0 %v10244_v21  ;;  %6800 = vmatpush1.bf16.msra.mxu1 %v10247_v22  ;;  %v10333_v21 = vld [vmem:[#allocation5 + $0x1ccc] ss:$16 sps:$4 sm:$0xff]   ;;  %v10328_v22 = vld [vmem:[#allocation5 + $0x1cc0] ss:$16 sps:$4 sm:$0xff]  }
 0x74e   :  { %6719 = vmatprep.subr.bf16.mxu0 %v10252_v23  ;;  %6801 = vmatprep.subr.bf16.mxu1 %v10255_v24  ;;  %v10331_v23 = vld [vmem:[#allocation5 + $0x1cc8] ss:$16 sps:$4 sm:$0xff]   ;;  %v10336_v24 = vld [vmem:[#allocation5 + $0x1ce4] ss:$16 sps:$4 sm:$0xff]  }
 0x751   :  { %6720 = vmatpush1.bf16.msra.mxu0 %v10250_v25  ;;  %6802 = vmatpush1.bf16.msra.mxu1 %v10253_v26  ;;  %v10339_v25 = vld [vmem:[#allocation5 + $0x1cec] ss:$16 sps:$4 sm:$0xff]   ;;  %v10334_v26 = vld [vmem:[#allocation5 + $0x1ce0] ss:$16 sps:$4 sm:$0xff]  }
 0x752   :  { %6721 = vmatprep.subr.bf16.mxu0 %v10258_v27  ;;  %6803 = vmatprep.subr.bf16.mxu1 %v10261_v28  ;;  %v10337_v27 = vld [vmem:[#allocation5 + $0x1ce8] ss:$16 sps:$4 sm:$0xff]   ;;  %v10342_v28 = vld [vmem:[#allocation5 + $0x1d04] ss:$16 sps:$4 sm:$0xff]  }
 0x755   :  { %6722 = vmatpush1.bf16.msra.mxu0 %v10256_v31  ;;  %6804 = vmatpush1.bf16.msra.mxu1 %v10259_v33  ;;  %v10345_v31 = vld [vmem:[#allocation5 + $0x1d0c] ss:$16 sps:$4 sm:$0xff]   ;;  %v10340_v33 = vld [vmem:[#allocation5 + $0x1d00] ss:$16 sps:$4 sm:$0xff]  }
 0x756   :  { %6723 = vmatprep.subr.bf16.mxu0 %v10264_v34  ;;  %6805 = vmatprep.subr.bf16.mxu1 %v10267_v35  ;;  %v10343_v34 = vld [vmem:[#allocation5 + $0x1d08] ss:$16 sps:$4 sm:$0xff]   ;;  %v10348_v35 = vld [vmem:[#allocation5 + $0x1d24] ss:$16 sps:$4 sm:$0xff]  }
 0x759   :  { %6724 = vmatpush1.bf16.msra.mxu0 %v10262_v36  ;;  %6806 = vmatpush1.bf16.msra.mxu1 %v10265_v4  ;;  %v10351_v36 = vld [vmem:[#allocation5 + $0x1d2c] ss:$16 sps:$4 sm:$0xff]   ;;  %v10346_v4 = vld [vmem:[#allocation5 + $0x1d20] ss:$16 sps:$4 sm:$0xff]  }
 0x75a   :  { %6725 = vmatprep.subr.bf16.mxu0 %v10270_v38  ;;  %6807 = vmatprep.subr.bf16.mxu1 %v10273_v11  ;;  %v10349_v38 = vld [vmem:[#allocation5 + $0x1d28] ss:$16 sps:$4 sm:$0xff]   ;;  %v10354_v11 = vld [vmem:[#allocation5 + $0x1d44] ss:$16 sps:$4 sm:$0xff]  }
 0x75d   :  { %6726 = vmatpush1.bf16.msra.mxu0 %v10268_v39  ;;  %6808 = vmatpush1.bf16.msra.mxu1 %v10271_v40  ;;  %v10357_v39 = vld [vmem:[#allocation5 + $0x1d4c] ss:$16 sps:$4 sm:$0xff]   ;;  %v10352_v40 = vld [vmem:[#allocation5 + $0x1d40] ss:$16 sps:$4 sm:$0xff]  }
 0x75e   :  { %6727 = vmatprep.subr.bf16.mxu0 %v10276_v41  ;;  %6809 = vmatprep.subr.bf16.mxu1 %v10279_v42  ;;  %v10360_v41 = vld [vmem:[#allocation5 + $0x1d64] ss:$16 sps:$4 sm:$0xff]   ;;  %v10363_v42 = vld [vmem:[#allocation5 + $0x1d6c] ss:$16 sps:$4 sm:$0xff]  }
 0x761   :  { %6728 = vmatpush1.bf16.msra.mxu0 %v10274_v43  ;;  %6810 = vmatpush1.bf16.msra.mxu1 %v10277_v12  ;;  %v10358_v43 = vld [vmem:[#allocation5 + $0x1d60] ss:$16 sps:$4 sm:$0xff]   ;;  %v10361_v12 = vld [vmem:[#allocation5 + $0x1d68] ss:$16 sps:$4 sm:$0xff]  }
 0x762   :  { %6729 = vmatprep.subr.bf16.mxu0 %v10282_v45  ;;  %6811 = vmatprep.subr.bf16.mxu1 %v10285_v47  ;;  %v10369_v45 = vld [vmem:[#allocation5 + $0x1d8c] ss:$16 sps:$4 sm:$0xff]   ;;  %v10364_v47 = vld [vmem:[#allocation5 + $0x1d80] ss:$16 sps:$4 sm:$0xff]  }
 0x765   :  { %6730 = vmatpush1.bf16.msra.mxu0 %v10280_v20  ;;  %6812 = vmatpush1.bf16.msra.mxu1 %v10283_v48  ;;  %v10367_v20 = vld [vmem:[#allocation5 + $0x1d88] ss:$16 sps:$4 sm:$0xff]   ;;  %v10372_v48 = vld [vmem:[#allocation5 + $0x1da4] ss:$16 sps:$4 sm:$0xff]  }
 0x766   :  { %6731 = vmatprep.subr.bf16.mxu0 %v10288_v57  ;;  %6813 = vmatprep.subr.bf16.mxu1 %v10291_v51  ;;  %v10370_v57 = vld [vmem:[#allocation5 + $0x1da0] ss:$16 sps:$4 sm:$0xff]   ;;  %v10373_v51 = vld [vmem:[#allocation5 + $0x1da8] ss:$16 sps:$4 sm:$0xff]  }
 0x769   :  { %6732 = vmatpush1.bf16.msra.mxu0 %v10286_v53  ;;  %6814 = vmatpush1.bf16.msra.mxu1 %v10289_v54  ;;  %v10378_v53 = vld [vmem:[#allocation5 + $0x1dc4] ss:$16 sps:$4 sm:$0xff]   ;;  %v10381_v54 = vld [vmem:[#allocation5 + $0x1dcc] ss:$16 sps:$4 sm:$0xff]  }
 0x76a   :  { %7628 = vmatprep.subr.bf16.mxu0 %v10294_v30  ;;  %7710 = vmatprep.subr.bf16.mxu1 %v10297_v56  ;;  %v10379_v30 = vld [vmem:[#allocation5 + $0x1dc8] ss:$16 sps:$4 sm:$0xff]   ;;  %v10384_v56 = vld [vmem:[#allocation5 + $0x1de4] ss:$16 sps:$4 sm:$0xff]  }
 0x76c   :  { %6734 = vmatmul.mubr.bf16.vlgmr.msra.gmra.mrb[24].mxu0 %v5866_v59  ;;  %6816 = vmatmul.mubr.bf16.vlgmr.msra.gmra.mrb[24].mxu1 %v5866_v59  ;;  %v10385_v59 = vld [vmem:[#allocation5 + $0x1de8] ss:$16 sps:$4 sm:$0xff]  }
 0x76d   :  { %7629 = vmatpush1.bf16.msra.mxu0 %v10292_v32  ;;  %7711 = vmatpush1.bf16.msra.mxu1 %v10295_v58  ;;  %v10387_v32 = vld [vmem:[#allocation5 + $0x1dec] ss:$16 sps:$4 sm:$0xff]   ;;  %v10382_v58 = vld [vmem:[#allocation5 + $0x1de0] ss:$16 sps:$4 sm:$0xff]  }
 0x76e   :  { %7630 = vmatprep.subr.bf16.mxu0 %v10300_v60  ;;  %7712 = vmatprep.subr.bf16.mxu1 %v10303_v61  ;;  %v10390_v60 = vld [vmem:[#allocation5 + $0x1e04] ss:$16 sps:$4 sm:$0xff]   ;;  %v10393_v61 = vld [vmem:[#allocation5 + $0x1e0c] ss:$16 sps:$4 sm:$0xff]  }
 0x771   :  { %7631 = vmatpush1.bf16.msra.mxu0 %v10298_v37  ;;  %7713 = vmatpush1.bf16.msra.mxu1 %v10301_v62  ;;  %v10734_v37 = vld [vmem:[#allocation7 + $0x18] sm:$0xf] }
 0x772   :  { %7632 = vmatprep.subr.bf16.mxu0 %v10306_v63  ;;  %7714 = vmatprep.subr.bf16.mxu1 %v10309_v0  ;;  %v6003_v62 = vrot.slane %v10734_v37, %v10647_v13  ;;  %v6007_v63 = vrot.slane %v10734_v37, %v10650_v14  ;;  %v6015_v0 = vrot.slane %v10734_v37, %v10653_v15 }
 0x775   :  { %7633 = vmatpush1.bf16.msra.mxu0 %v10304_v1  ;;  %7715 = vmatpush1.bf16.msra.mxu1 %v10307_v2 }
 0x776   :  { %7634 = vmatprep.subr.bf16.mxu0 %v10312_v3  ;;  %7716 = vmatprep.subr.bf16.mxu1 %v10315_v5 }
 0x779   :  { %7635 = vmatpush1.bf16.msra.mxu0 %v10310_v6  ;;  %7717 = vmatpush1.bf16.msra.mxu1 %v10313_v7 }
 0x77a   :  { %7636 = vmatprep.subr.bf16.mxu0 %v10318_v8  ;;  %7718 = vmatprep.subr.bf16.mxu1 %v10321_v46 }
 0x77d   :  { %7637 = vmatpush1.bf16.msra.mxu0 %v10316_v10  ;;  %7719 = vmatpush1.bf16.msra.mxu1 %v10319_v16 }
 0x77e   :  { %7638 = vmatprep.subr.bf16.mxu0 %v10324_v17  ;;  %7720 = vmatprep.subr.bf16.mxu1 %v10327_v18 }
 0x781   :  { %7639 = vmatpush1.bf16.msra.mxu0 %v10322_v50  ;;  %7721 = vmatpush1.bf16.msra.mxu1 %v10325_v19 }
 0x782   :  { %7640 = vmatprep.subr.bf16.mxu0 %v10330_v52  ;;  %7722 = vmatprep.subr.bf16.mxu1 %v10333_v21 }
 0x785   :  { %7641 = vmatpush1.bf16.msra.mxu0 %v10328_v22  ;;  %7723 = vmatpush1.bf16.msra.mxu1 %v10331_v23 }
 0x786   :  { %7642 = vmatprep.subr.bf16.mxu0 %v10336_v24  ;;  %7724 = vmatprep.subr.bf16.mxu1 %v10339_v25  ;;  %v10388_v24 = vld [vmem:[#allocation5 + $0x1e00] ss:$16 sps:$4 sm:$0xff]   ;;  %v10391_v25 = vld [vmem:[#allocation5 + $0x1e08] ss:$16 sps:$4 sm:$0xff]  }
 0x789   :  { %7643 = vmatpush1.bf16.msra.mxu0 %v10334_v26  ;;  %7725 = vmatpush1.bf16.msra.mxu1 %v10337_v27  ;;  %v10396_v27 = vld [vmem:[#allocation5 + $0x1e24] ss:$16 sps:$4 sm:$0xff]  }
 0x78a   :  { %7644 = vmatprep.subr.bf16.mxu0 %v10342_v28  ;;  %7726 = vmatprep.subr.bf16.mxu1 %v10345_v31  ;;  %v10399_v28 = vld [vmem:[#allocation5 + $0x1e2c] ss:$16 sps:$4 sm:$0xff]  }
 0x78d   :  { %7645 = vmatpush1.bf16.msra.mxu0 %v10340_v33  ;;  %7727 = vmatpush1.bf16.msra.mxu1 %v10343_v34  ;;  %v10394_v33 = vld [vmem:[#allocation5 + $0x1e20] ss:$16 sps:$4 sm:$0xff]   ;;  %v10397_v34 = vld [vmem:[#allocation5 + $0x1e28] ss:$16 sps:$4 sm:$0xff]  }
 0x78e   :  { %7646 = vmatprep.subr.bf16.mxu0 %v10348_v35  ;;  %7728 = vmatprep.subr.bf16.mxu1 %v10351_v36  ;;  %v10402_v35 = vld [vmem:[#allocation5 + $0x1e44] ss:$16 sps:$4 sm:$0xff]   ;;  %v10405_v36 = vld [vmem:[#allocation5 + $0x1e4c] ss:$16 sps:$4 sm:$0xff]  }
 0x791   :  { %7647 = vmatpush1.bf16.msra.mxu0 %v10346_v4  ;;  %7729 = vmatpush1.bf16.msra.mxu1 %v10349_v38  ;;  %v10400_v4 = vld [vmem:[#allocation5 + $0x1e40] ss:$16 sps:$4 sm:$0xff]   ;;  %v10403_v38 = vld [vmem:[#allocation5 + $0x1e48] ss:$16 sps:$4 sm:$0xff]  }
 0x792   :  { %7648 = vmatprep.subr.bf16.mxu0 %v10354_v11  ;;  %7730 = vmatprep.subr.bf16.mxu1 %v10357_v39  ;;  %v10408_v11 = vld [vmem:[#allocation5 + $0x1e64] ss:$16 sps:$4 sm:$0xff]   ;;  %v10411_v39 = vld [vmem:[#allocation5 + $0x1e6c] ss:$16 sps:$4 sm:$0xff]  }
 0x795   :  { %7649 = vmatpush1.bf16.msra.mxu0 %v10352_v40  ;;  %7731 = vmatpush1.bf16.msra.mxu1 %v10355_v9  ;;  %v10406_v40 = vld [vmem:[#allocation5 + $0x1e60] ss:$16 sps:$4 sm:$0xff]   ;;  %v10409_v9 = vld [vmem:[#allocation5 + $0x1e68] ss:$16 sps:$4 sm:$0xff]  }
 0x796   :  { %7650 = vmatprep.subr.bf16.mxu0 %v10360_v41  ;;  %7732 = vmatprep.subr.bf16.mxu1 %v10363_v42  ;;  %v10414_v41 = vld [vmem:[#allocation5 + $0x1e84] ss:$16 sps:$4 sm:$0xff]   ;;  %v10417_v42 = vld [vmem:[#allocation5 + $0x1e8c] ss:$16 sps:$4 sm:$0xff]  }
 0x799   :  { %7651 = vmatpush1.bf16.msra.mxu0 %v10358_v43  ;;  %7733 = vmatpush1.bf16.msra.mxu1 %v10361_v12  ;;  %v10412_v43 = vld [vmem:[#allocation5 + $0x1e80] ss:$16 sps:$4 sm:$0xff]   ;;  %v10415_v12 = vld [vmem:[#allocation5 + $0x1e88] ss:$16 sps:$4 sm:$0xff]  }
 0x79a   :  { %7652 = vmatprep.subr.bf16.mxu0 %v10366_v44  ;;  %7734 = vmatprep.subr.bf16.mxu1 %v10369_v45  ;;  %v10420_v44 = vld [vmem:[#allocation5 + $0x1ea4] ss:$16 sps:$4 sm:$0xff]   ;;  %v10423_v45 = vld [vmem:[#allocation5 + $0x1eac] ss:$16 sps:$4 sm:$0xff]  }
 0x79d   :  { %7653 = vmatpush1.bf16.msra.mxu0 %v10364_v47  ;;  %7735 = vmatpush1.bf16.msra.mxu1 %v10367_v20  ;;  %v10418_v47 = vld [vmem:[#allocation5 + $0x1ea0] ss:$16 sps:$4 sm:$0xff]   ;;  %v10421_v20 = vld [vmem:[#allocation5 + $0x1ea8] ss:$16 sps:$4 sm:$0xff]  }
 0x79e   :  { %7654 = vmatprep.subr.bf16.mxu0 %v10372_v48  ;;  %7736 = vmatprep.subr.bf16.mxu1 %v10375_v49  ;;  %v10426_v48 = vld [vmem:[#allocation5 + $0x1ec4] ss:$16 sps:$4 sm:$0xff]   ;;  %v10429_v49 = vld [vmem:[#allocation5 + $0x1ecc] ss:$16 sps:$4 sm:$0xff]  }
 0x7a1   :  { %7655 = vmatpush1.bf16.msra.mxu0 %v10370_v57  ;;  %7737 = vmatpush1.bf16.msra.mxu1 %v10373_v51  ;;  %v10424_v57 = vld [vmem:[#allocation5 + $0x1ec0] ss:$16 sps:$4 sm:$0xff]   ;;  %v10427_v51 = vld [vmem:[#allocation5 + $0x1ec8] ss:$16 sps:$4 sm:$0xff]  }
 0x7a2   :  { %7656 = vmatprep.subr.bf16.mxu0 %v10378_v53  ;;  %7738 = vmatprep.subr.bf16.mxu1 %v10381_v54  ;;  %v10432_v53 = vld [vmem:[#allocation5 + $0x1ee4] ss:$16 sps:$4 sm:$0xff]   ;;  %v10435_v54 = vld [vmem:[#allocation5 + $0x1eec] ss:$16 sps:$4 sm:$0xff]  }
 0x7a5   :  { %7657 = vmatpush1.bf16.msra.mxu0 %v10376_v55  ;;  %7739 = vmatpush1.bf16.msra.mxu1 %v10379_v30  ;;  %v10430_v55 = vld [vmem:[#allocation5 + $0x1ee0] ss:$16 sps:$4 sm:$0xff]   ;;  %v10433_v30 = vld [vmem:[#allocation5 + $0x1ee8] ss:$16 sps:$4 sm:$0xff]  }
 0x7a6   :  { %7658 = vmatprep.subr.bf16.mxu0 %v10384_v56  ;;  %7740 = vmatprep.subr.bf16.mxu1 %v10387_v32  ;;  %v10438_v56 = vld [vmem:[#allocation5 + $0x1f04] ss:$16 sps:$4 sm:$0xff]   ;;  %v10441_v32 = vld [vmem:[#allocation5 + $0x1f0c] ss:$16 sps:$4 sm:$0xff]  }
 0x7a9   :  { %7659 = vmatpush1.bf16.msra.mxu0 %v10382_v58  ;;  %7741 = vmatpush1.bf16.msra.mxu1 %v10385_v59  ;;  %v10436_v58 = vld [vmem:[#allocation5 + $0x1f00] ss:$16 sps:$4 sm:$0xff]   ;;  %v10439_v59 = vld [vmem:[#allocation5 + $0x1f08] ss:$16 sps:$4 sm:$0xff]  }
 0x7aa   :  { %7669 = vmatprep.subr.bf16.mxu0 %v10390_v60  ;;  %7751 = vmatprep.subr.bf16.mxu1 %v10393_v61  ;;  %v10444_v60 = vld [vmem:[#allocation5 + $0x1f24] ss:$16 sps:$4 sm:$0xff]   ;;  %v10447_v61 = vld [vmem:[#allocation5 + $0x1f2c] ss:$16 sps:$4 sm:$0xff]  }
 0x83f   :  { %v6735_v1 = vpop.f32.mrb[24].mxu0  ;;  %v10742_v2 = vpop.f32.mrb[24].mxu1 }
 0x840   :  { %v8868_v3 = vadd.f32 %v6735_v1, %v6003_v62  ;;  %v6737_v5 = vpop.f32.mrb[25].mxu0  ;;  %v6819_v6 = vpop.f32.mrb[25].mxu1  ;;  %v10442_v62 = vld [vmem:[#allocation5 + $0x1f20] ss:$16 sps:$4 sm:$0xff]   ;;  %v10453_v1 = vld [vmem:[#allocation5 + $0x1f4c] ss:$16 sps:$4 sm:$0xff]  }
 0x841   :  { %v8869_v7 = vadd.f32 %v6737_v5, %v6007_v63  ;;  %v8871_v8 = vadd.f32 %v6819_v6, %v6015_v0  ;;  %v6739_v46 = vpop.f32.mrb[26].mxu0  ;;  %v6821_v10 = vpop.f32.mrb[26].mxu1  ;;  %v10445_v63 = vld [vmem:[#allocation5 + $0x1f28] ss:$16 sps:$4 sm:$0xff]   ;;  %v10450_v0 = vld [vmem:[#allocation5 + $0x1f44] ss:$16 sps:$4 sm:$0xff]  }
 0x842   :  { %v6824_v16 = vmul.f32 0.2, %v8868_v3  ;;  %v6740_v17 = vpop.f32.mrb[27].mxu0  ;;  %v6822_v18 = vpop.f32.mrb[27].mxu1  ;;  %v10451_v5 = vld [vmem:[#allocation5 + $0x1f48] ss:$16 sps:$4 sm:$0xff]  }
 0x843   :  { %v6825_v50 = vmul.f32 0.2, %v8869_v7  ;;  %v6827_v19 = vmul.f32 0.2, %v8871_v8  ;;  %v10456_v6 = vld [vmem:[#allocation5 + $0x1f64] ss:$16 sps:$4 sm:$0xff]  }
 0x844   :  { %v6828_v52 = vmax.f32 %v8868_v3, %v6824_v16  ;;  %v10448_v3 = vld [vmem:[#allocation5 + $0x1f40] ss:$16 sps:$4 sm:$0xff]   ;;  %v10457_v46 = vld [vmem:[#allocation5 + $0x1f68] ss:$16 sps:$4 sm:$0xff]   ;;  %v10462_v10 = vld [vmem:[#allocation5 + $0x1f84] ss:$16 sps:$4 sm:$0xff]  }
 0x845   :  { %v6829_v21 = vmax.f32 %v8869_v7, %v6825_v50  ;;  %v6831_v22 = vmax.f32 %v8871_v8, %v6827_v19  ;;  %v10459_v7 = vld [vmem:[#allocation5 + $0x1f6c] ss:$16 sps:$4 sm:$0xff]   ;;  %v10454_v8 = vld [vmem:[#allocation5 + $0x1f60] ss:$16 sps:$4 sm:$0xff]   ;;  %v10463_v18 = vld [vmem:[#allocation5 + $0x1f88] ss:$16 sps:$4 sm:$0xff]   ;;  %v6011_v50 = vrot.slane %v10734_v37, %v10664_v29 }
 0x846   :  { %v6832_v26 = vpack.c.bf16 %v6828_v52, %v6828_v52  ;;  %v10465_v16 = vld [vmem:[#allocation5 + $0x1f8c] ss:$16 sps:$4 sm:$0xff]   ;;  %v10460_v17 = vld [vmem:[#allocation5 + $0x1f80] ss:$16 sps:$4 sm:$0xff]   ;;  %v10468_v19 = vld [vmem:[#allocation5 + $0x1fa4] ss:$16 sps:$4 sm:$0xff]  }
 0x847   :  { %v6833_v23 = vpack.c.bf16 %v6829_v21, %v6829_v21  ;;  %v6835_v31 = vpack.c.bf16 %v6831_v22, %v6831_v22  ;;  %v10471_v52 = vld [vmem:[#allocation5 + $0x1fac] ss:$16 sps:$4 sm:$0xff]   ;;  %v10466_v21 = vld [vmem:[#allocation5 + $0x1fa0] ss:$16 sps:$4 sm:$0xff]   ;;  %v10469_v22 = vld [vmem:[#allocation5 + $0x1fa8] ss:$16 sps:$4 sm:$0xff]  }
 0x848   :  { %v10480_v37 = vld [vmem:[#allocation5 + $0x1fe4] ss:$16 sps:$4 sm:$0xff]  }
 0x849   :  { %7660 = vmatprep.mubr.bf16.mxu0 %v6833_v23  ;;  %7742 = vmatprep.mubr.bf16.mxu1 %v6833_v23  ;;  %v8870_v23 = vadd.f32 %v10742_v2, %v6011_v50 }
 0x84a   :  { %7661 = vmatmul.mubr.bf16.vlgmr.msra.gmra.mrb[28].mxu0 %v6832_v26  ;;  %7743 = vmatmul.mubr.bf16.vlgmr.msra.gmra.mrb[28].mxu1 %v6832_v26  ;;  %v10472_v26 = vld [vmem:[#allocation5 + $0x1fc0] ss:$16 sps:$4 sm:$0xff]  }
 0x84b   :  { %7670 = vmatpush1.bf16.msra.mxu0 %v10388_v24  ;;  %7752 = vmatpush1.bf16.msra.mxu1 %v10391_v25  ;;  %v10474_v24 = vld [vmem:[#allocation5 + $0x1fc4] ss:$16 sps:$4 sm:$0xff]   ;;  %v10477_v25 = vld [vmem:[#allocation5 + $0x1fcc] ss:$16 sps:$4 sm:$0xff]  }
 0x84c   :  { %7701 = vmatprep.mubr.bf16.mxu0 %v6835_v31  ;;  %7783 = vmatprep.mubr.bf16.mxu1 %v6835_v31  ;;  %v10483_v31 = vld [vmem:[#allocation5 + $0x1fec] ss:$16 sps:$4 sm:$0xff]  }
 0x84d   :  { %7671 = vmatprep.subr.bf16.mxu0 %v10396_v27  ;;  %7753 = vmatprep.subr.bf16.mxu1 %v10399_v28  ;;  %v10475_v27 = vld [vmem:[#allocation5 + $0x1fc8] ss:$16 sps:$4 sm:$0xff]   ;;  %v6826_v28 = vmul.f32 0.2, %v8870_v23 }
 0x84f   :  { %7672 = vmatpush1.bf16.msra.mxu0 %v10394_v33  ;;  %7754 = vmatpush1.bf16.msra.mxu1 %v10397_v34  ;;  %v10478_v33 = vld [vmem:[#allocation5 + $0x1fe0] ss:$16 sps:$4 sm:$0xff]   ;;  %v10481_v34 = vld [vmem:[#allocation5 + $0x1fe8] ss:$16 sps:$4 sm:$0xff]  }
 0x850   :  { %7673 = vmatprep.subr.bf16.mxu0 %v10402_v35  ;;  %7755 = vmatprep.subr.bf16.mxu1 %v10405_v36  ;;  %v6830_v35 = vmax.f32 %v8870_v23, %v6826_v28  ;;  %v6966_v36 = vld [vmem:[#allocation7 + $0x1c] sm:$0xf] }
 0x852   :  { %v6834_v2 = vpack.c.bf16 %v6830_v35, %v6830_v35 }
 0x853   :  { %7674 = vmatpush1.bf16.msra.mxu0 %v10400_v4  ;;  %7756 = vmatpush1.bf16.msra.mxu1 %v10403_v38  ;;  %v6971_v4 = vrot.slane %v6966_v36, %v10647_v13  ;;  %v6979_v38 = vrot.slane %v6966_v36, %v10664_v29 }
 0x854   :  { %7675 = vmatprep.subr.bf16.mxu0 %v10408_v11  ;;  %7757 = vmatprep.subr.bf16.mxu1 %v10411_v39  ;;  %v6975_v11 = vrot.slane %v6966_v36, %v10650_v14  ;;  %v6983_v39 = vrot.slane %v6966_v36, %v10653_v15 }
 0x857   :  { %7676 = vmatpush1.bf16.msra.mxu0 %v10406_v40  ;;  %7758 = vmatpush1.bf16.msra.mxu1 %v10409_v9 }
 0x858   :  { %7677 = vmatprep.subr.bf16.mxu0 %v10414_v41  ;;  %7759 = vmatprep.subr.bf16.mxu1 %v10417_v42 }
 0x85b   :  { %7678 = vmatpush1.bf16.msra.mxu0 %v10412_v43  ;;  %7760 = vmatpush1.bf16.msra.mxu1 %v10415_v12 }
 0x85c   :  { %7679 = vmatprep.subr.bf16.mxu0 %v10420_v44  ;;  %7761 = vmatprep.subr.bf16.mxu1 %v10423_v45 }
 0x85f   :  { %7680 = vmatpush1.bf16.msra.mxu0 %v10418_v47  ;;  %7762 = vmatpush1.bf16.msra.mxu1 %v10421_v20 }
 0x860   :  { %7681 = vmatprep.subr.bf16.mxu0 %v10426_v48  ;;  %7763 = vmatprep.subr.bf16.mxu1 %v10429_v49 }
 0x863   :  { %7682 = vmatpush1.bf16.msra.mxu0 %v10424_v57  ;;  %7764 = vmatpush1.bf16.msra.mxu1 %v10427_v51 }
 0x864   :  { %7683 = vmatprep.subr.bf16.mxu0 %v10432_v53  ;;  %7765 = vmatprep.subr.bf16.mxu1 %v10435_v54 }
 0x867   :  { %7684 = vmatpush1.bf16.msra.mxu0 %v10430_v55  ;;  %7766 = vmatpush1.bf16.msra.mxu1 %v10433_v30 }
 0x868   :  { %7685 = vmatprep.subr.bf16.mxu0 %v10438_v56  ;;  %7767 = vmatprep.subr.bf16.mxu1 %v10441_v32 }
 0x86b   :  { %7686 = vmatpush1.bf16.msra.mxu0 %v10436_v58  ;;  %7768 = vmatpush1.bf16.msra.mxu1 %v10439_v59 }
 0x86c   :  { %7687 = vmatprep.subr.bf16.mxu0 %v10444_v60  ;;  %7769 = vmatprep.subr.bf16.mxu1 %v10447_v61 }
 0x86f   :  { %7688 = vmatpush1.bf16.msra.mxu0 %v10442_v62  ;;  %7770 = vmatpush1.bf16.msra.mxu1 %v10445_v63 }
 0x870   :  { %7689 = vmatprep.subr.bf16.mxu0 %v10450_v0  ;;  %7771 = vmatprep.subr.bf16.mxu1 %v10453_v1 }
 0x873   :  { %7690 = vmatpush1.bf16.msra.mxu0 %v10448_v3  ;;  %7772 = vmatpush1.bf16.msra.mxu1 %v10451_v5 }
 0x874   :  { %7691 = vmatprep.subr.bf16.mxu0 %v10456_v6  ;;  %7773 = vmatprep.subr.bf16.mxu1 %v10459_v7 }
 0x877   :  { %7692 = vmatpush1.bf16.msra.mxu0 %v10454_v8  ;;  %7774 = vmatpush1.bf16.msra.mxu1 %v10457_v46 }
 0x878   :  { %7693 = vmatprep.subr.bf16.mxu0 %v10462_v10  ;;  %7775 = vmatprep.subr.bf16.mxu1 %v10465_v16 }
 0x87b   :  { %7694 = vmatpush1.bf16.msra.mxu0 %v10460_v17  ;;  %7776 = vmatpush1.bf16.msra.mxu1 %v10463_v18 }
 0x87c   :  { %7695 = vmatprep.subr.bf16.mxu0 %v10468_v19  ;;  %7777 = vmatprep.subr.bf16.mxu1 %v10471_v52 }
 0x87f   :  { %7696 = vmatpush1.bf16.msra.mxu0 %v10466_v21  ;;  %7778 = vmatpush1.bf16.msra.mxu1 %v10469_v22 }
 0x880   :  { %7697 = vmatprep.subr.bf16.mxu0 %v10474_v24  ;;  %7779 = vmatprep.subr.bf16.mxu1 %v10477_v25 }
 0x883   :  { %7698 = vmatpush1.bf16.msra.mxu0 %v10472_v26  ;;  %7780 = vmatpush1.bf16.msra.mxu1 %v10475_v27 }
 0x884   :  { %7699 = vmatprep.subr.bf16.mxu0 %v10480_v37  ;;  %7781 = vmatprep.subr.bf16.mxu1 %v10483_v31 }
 0x887   :  { %7700 = vmatpush1.bf16.msra.mxu0 %v10478_v33  ;;  %7782 = vmatpush1.bf16.msra.mxu1 %v10481_v34 }
 0x88a   :  { %7702 = vmatmul.mubr.bf16.vlgmr.msra.gmra.mrb[28].mxu0 %v6834_v2  ;;  %7784 = vmatmul.mubr.bf16.vlgmr.msra.gmra.mrb[28].mxu1 %v6834_v2 }
 0x95d   :  { %v7703_v40 = vpop.f32.mrb[28].mxu0  ;;  %v7785_v9 = vpop.f32.mrb[28].mxu1 }
 0x95e   :  { %v8872_v41 = vadd.f32 %v7703_v40, %v6971_v4  ;;  %v8874_v42 = vadd.f32 %v7785_v9, %v6979_v38  ;;  %v7705_v43 = vpop.f32.mrb[29].mxu0  ;;  %v7787_v12 = vpop.f32.mrb[29].mxu1 }
 0x95f   :  { %v8873_v44 = vadd.f32 %v7705_v43, %v6975_v11  ;;  %v8875_v45 = vadd.f32 %v7787_v12, %v6983_v39  ;;  %v7707_v47 = vpop.f32.mrb[30].mxu0  ;;  %v7789_v20 = vpop.f32.mrb[30].mxu1 }
 0x960   :  { %v7792_v48 = vmul.f32 0.2, %v8872_v41  ;;  %v7794_v13 = vmul.f32 0.2, %v8874_v42  ;;  %v7708_v49 = vpop.f32.mrb[31].mxu0  ;;  %v7790_v29 = vpop.f32.mrb[31].mxu1 }
 0x961   :  { %v7793_v57 = vmul.f32 0.2, %v8873_v44  ;;  %v7795_v14 = vmul.f32 0.2, %v8875_v45 }
 0x962   :  { %v7796_v51 = vmax.f32 %v8872_v41, %v7792_v48  ;;  %v7798_v15 = vmax.f32 %v8874_v42, %v7794_v13 }
 0x963   :  { %v7797_v53 = vmax.f32 %v8873_v44, %v7793_v57  ;;  %v7799_v54 = vmax.f32 %v8875_v45, %v7795_v14 }
 0x964   :  { %7800 = vst [vmem:[#allocation8] sm:$0xff] %v7796_v51  ;;  %7802 = vst [vmem:[#allocation8 + $0x10] sm:$0xff] %v7798_v15 }
 0x965   :  { %7801 = vst [vmem:[#allocation8 + $0x8] sm:$0xff] %v7797_v53  ;;  %7803 = vst [vmem:[#allocation8 + $0x18] sm:$0xff] %v7799_v54 }
 0x966   :  { %10561 = shalt.err (!%p10558_p0)
}
 0x967   :  { %s10562_s27 = scalar_lea.hbm %s10766_s3, 512 }
 0x968   :  { %p10563_p1 = scmp.ne.s32.totalorder %s10766_s3, %s10562_s27  ;;  %p10566_p2 = scmp.lt.u32.totalorder %s10562_s27, %s10766_s3 }
 0x96a   :  { %p10568_p3 = pnand %p10566_p2, %p10563_p1 }
 0x96c   :  { %10571 = shalt.err (!%p10568_p3)
}
 0x96d   :  { %7813 = dma.vmem_to_hbm [thread:$0]  %s7811_s23, 512, %s10766_s3, [#allocation4]  }
 0x96e   :  { %10576 = dma.done.wait [#allocation4], 512  }
 0x96f   :  { %10577 = vsyncadd [#allocation4], 4294966784 }
 0x970   :  { %7817 = vsyncpa [#allocation3], 1 }
 0x971   :  { %7818 = vsyncpa [#allocation6], 1 }
 0x972   :  { %7819 = vsyncpa [#allocation4], 1 }

</bundles_post_ra>
